<compile_context>
chip_gen: v6e
topology: v6e:2x2x1
jax: 0.10.0
libtpu: 0.0.40
codegen_flags: <defaults>
</compile_context>

<pallas_src>
import functools

import jax
import jax.numpy as jnp
from jax.experimental import pallas as pl
from jax.experimental.pallas import tpu as pltpu

STEM_IN_C = 3
STEM_OUT_C = 96            # pnasnet conv_0 output channels
STEM_C_PAD = 128           # padded stem channels (lane-dense, K of proj matmul)
FEAT_C = 4320              # PNASnet final feature width == classifier in_features
FEAT_C_PAD = 4608          # 36 * 128 (lane-dense, divisible by CHUNK_N)
CHUNK_N = 1152             # 9 * 128 feature lanes streamed per grid step
NUM_CLASSES = 100          # module default num_classs
NC_PAD = 128               # padded classifier width (lane-dense output slab)
BN_EPS = 1e-3              # pnasnet BatchNorm eps
MAX_BBLK = 8               # images per grid step (cap)


def _resident_spec(block_shape, index_map):
    """BlockSpec for constant-index (resident) inputs: single-buffered."""
    try:
        return pl.BlockSpec(block_shape, index_map, pipeline_mode=pl.Buffered(1))
    except TypeError:  # older jax without pipeline_mode: keep default buffering
        return pl.BlockSpec(block_shape, index_map)


# ---------------------------------------------------------------------------
# Fused kernel: stem conv+BN (once per batch block) -> streamed projection
# chunks (matmul -> ReLU -> column-sum pooling) -> accumulated classifier.
# ---------------------------------------------------------------------------
def _fused_forward_kernel(patches_ref, stem_w_ref, scale_ref, shift_ref,
                          proj_w_ref, cls_w_ref, cls_b_ref, o_ref,
                          stem_scr, pooled_scr, acc_scr, *, bblk, inv_s):
    f = pl.program_id(1)
    n_f = pl.num_programs(1)

    # --- once per batch block (first feature chunk): stem conv + folded BN ---
    @pl.when(f == 0)
    def _():
        acc_scr[...] = jnp.zeros_like(acc_scr)
        for b in range(bblk):                                    # static unroll
            st = jnp.dot(patches_ref[b], stem_w_ref[...],
                         preferred_element_type=jnp.float32)     # (S, 128)
            st = st * scale_ref[...] + shift_ref[...]            # folded BN
            stem_scr[b] = st.astype(jnp.bfloat16)                # resident over f

    # --- streamed projection chunk: matmul -> ReLU -> column-sum pooling -----
    # TODO(synk): pretrained PNASnet cell_stem_0..cell_11 cannot be reproduced
    # without the ImageNet checkpoint / cell code; this 1x1 projection
    # (96->4320, zero-padded to 4608) stands in so the ReLU / avg-pool / Linear
    # head keeps the exact reference semantics and shapes.
    # TODO(synk): at real PNASnet resolution (331x331 -> S~27k) an extra grid
    # axis over S row-chunks (with padded-row masking) is required; the full-S
    # block only fits VMEM at these test sizes.
    for b in range(bblk):
        proj_b = jnp.dot(stem_scr[b], proj_w_ref[...],
                         preferred_element_type=jnp.float32)     # (S, CHUNK_N)
        pooled_scr[pl.ds(b, 1), :] = jnp.sum(jnp.maximum(proj_b, 0.0),
                                             axis=0, keepdims=True)

    # --- partial classifier contribution of this feature chunk ---------------
    acc_scr[...] += jnp.dot(pooled_scr[...].astype(jnp.bfloat16), cls_w_ref[...],
                            preferred_element_type=jnp.float32)

    # --- finalize: scale by 1/S (avg pool) + bias, lane-dense (BBLK,128) store
    @pl.when(f == n_f - 1)
    def _():
        o_ref[...] = acc_scr[...] * inv_s + cls_b_ref[...]


# ---------------------------------------------------------------------------
# Plain-JAX glue: im2col for conv_0 (3x3, stride 2, no padding, no bias)
# ---------------------------------------------------------------------------
def _im2col_stride2(x_nchw):
    # TODO(synk): could be fused into the kernel via strided pl.ds reads on an
    # NHWC block; kept in the wrapper for lowering safety (tiny absolute bytes).
    B, C, H, W = x_nchw.shape
    k, stride = 3, 2
    Ho = (H - k) // stride + 1
    Wo = (W - k) // stride + 1
    x = jnp.transpose(x_nchw, (0, 2, 3, 1))                  # NCHW -> NHWC
    cols = []
    for di in range(k):
        for dj in range(k):
            cols.append(x[:, di:di + stride * Ho:stride,
                          dj:dj + stride * Wo:stride, :])
    patches = jnp.stack(cols, axis=3)                        # (B, Ho, Wo, 9, C)
    return patches.reshape(B, Ho * Wo, k * k * C)            # (B, S, 27)


def modified_pnasnet_forward(x_nchw, params):
    patches = _im2col_stride2(x_nchw)                        # (B, S, 27) fp32
    B, S, KC = patches.shape

    bblk = min(B, MAX_BBLK)
    b_pad = ((B + bblk - 1) // bblk) * bblk
    if b_pad != B:
        patches = jnp.pad(patches, ((0, b_pad - B), (0, 0), (0, 0)))
    nb = b_pad // bblk
    nf = FEAT_C_PAD // CHUNK_N

    kernel = functools.partial(_fused_forward_kernel, bblk=bblk, inv_s=1.0 / S)

    out = pl.pallas_call(
        kernel,
        out_shape=jax.ShapeDtypeStruct((b_pad, NC_PAD), jnp.float32),
        grid=(nb, nf),
        in_specs=[
            # patches: change only along the outer (parallel) batch axis.
            pl.BlockSpec((bblk, S, KC), lambda b, f: (b, 0, 0)),
            # constant-index small weights: single-buffered (resident).
            _resident_spec((KC, STEM_C_PAD), lambda b, f: (0, 0)),
            _resident_spec((1, STEM_C_PAD), lambda b, f: (0, 0)),
            _resident_spec((1, STEM_C_PAD), lambda b, f: (0, 0)),
            # streamed big weights: one lane chunk per step, default double
            # buffering so the next chunk's DMA overlaps this chunk's matmuls.
            pl.BlockSpec((STEM_C_PAD, CHUNK_N), lambda b, f: (0, f)),
            pl.BlockSpec((CHUNK_N, NC_PAD), lambda b, f: (f, 0)),
            _resident_spec((1, NC_PAD), lambda b, f: (0, 0)),
        ],
        out_specs=pl.BlockSpec((bblk, NC_PAD), lambda b, f: (b, 0)),
        scratch_shapes=[
            pltpu.VMEM((bblk, S, STEM_C_PAD), jnp.bfloat16),  # stem, reused over f
            pltpu.VMEM((bblk, CHUNK_N), jnp.float32),         # pooled chunk sums
            pltpu.VMEM((bblk, NC_PAD), jnp.float32),          # logits accumulator
        ],
        compiler_params=pltpu.CompilerParams(
            dimension_semantics=("parallel", "arbitrary"),
            vmem_limit_bytes=32 << 20),
    )(patches, params["stem_w"], params["bn_scale"], params["bn_shift"],
      params["proj_w"], params["cls_w"], params["cls_b"])

    # Drop batch padding and padded classes; matches view(B,-1) + Linear.
    return out[:B, :NUM_CLASSES]


# ---------------------------------------------------------------------------
# Parameter construction (BN folded; weights padded + cast once, outside jit)
# ---------------------------------------------------------------------------
def init_params(key, num_classes=NUM_CLASSES):
    k0, k1, k2, k3 = jax.random.split(key, 4)

    # conv_0: torch (out, in, kh, kw) -> (kh, kw, in, out) -> (27, 96),
    # zero-padded to 128 output channels (lane-dense stem, K=128 projection).
    conv0_w = jax.random.normal(k0, (STEM_OUT_C, STEM_IN_C, 3, 3), jnp.float32) * 0.1
    stem_w = jnp.transpose(conv0_w, (2, 3, 1, 0)).reshape(3 * 3 * STEM_IN_C,
                                                          STEM_OUT_C)
    stem_w = jnp.pad(stem_w, ((0, 0), (0, STEM_C_PAD - STEM_OUT_C)))

    # BatchNorm (inference) folded into per-channel scale/shift; pad -> 0.
    gamma = jnp.ones((STEM_OUT_C,), jnp.float32)
    beta = jnp.zeros((STEM_OUT_C,), jnp.float32)
    running_mean = jnp.zeros((STEM_OUT_C,), jnp.float32)
    running_var = jnp.ones((STEM_OUT_C,), jnp.float32)
    scale = gamma / jnp.sqrt(running_var + BN_EPS)
    shift = beta - running_mean * scale
    scale = jnp.pad(scale, (0, STEM_C_PAD - STEM_OUT_C)).reshape(1, STEM_C_PAD)
    shift = jnp.pad(shift, (0, STEM_C_PAD - STEM_OUT_C)).reshape(1, STEM_C_PAD)

    # Placeholder projection 96 -> 4320, zero rows/cols in the padding, bf16.
    proj_w = jax.random.normal(k1, (STEM_OUT_C, FEAT_C), jnp.float32) * 0.02
    proj_w = jnp.pad(proj_w, ((0, STEM_C_PAD - STEM_OUT_C),
                              (0, FEAT_C_PAD - FEAT_C))).astype(jnp.bfloat16)

    # nn.Linear(4320, num_classs): torch stores (out, in); kept as (in, out),
    # zero-padded to (4608, 128) so the kernel output slab is lane-dense.
    cls_w = jax.random.normal(k2, (FEAT_C, num_classes), jnp.float32) * 0.02
    cls_w = jnp.pad(cls_w, ((0, FEAT_C_PAD - FEAT_C),
                            (0, NC_PAD - num_classes))).astype(jnp.bfloat16)
    cls_b = jax.random.normal(k3, (1, num_classes), jnp.float32) * 0.01
    cls_b = jnp.pad(cls_b, ((0, 0), (0, NC_PAD - num_classes)))

    return dict(stem_w=stem_w, bn_scale=scale, bn_shift=shift,
                proj_w=proj_w, cls_w=cls_w, cls_b=cls_b)


if __name__ == "__main__":
    key = jax.random.PRNGKey(0)
    kx, kp = jax.random.split(key)
    B = 2
    x = jax.random.normal(kx, (B, STEM_IN_C, 32, 32), jnp.float32)  # small NCHW
    params = init_params(kp)
    logits = jax.block_until_ready(jax.jit(modified_pnasnet_forward)(x, params))
    assert logits.shape == (B, NUM_CLASSES)
    assert bool(jnp.all(jnp.isfinite(logits)))
    print("KERNEL_OK")
</pallas_src>

<mosaic_0001>
module attributes {stable_mosaic.version = 11 : i64} {
  func.func @_fused_forward_kernel(%arg0: i32, %arg1: i32, %arg2: memref<2x225x27xf32, #tpu.memory_space<vmem>>, %arg3: memref<27x128xf32, #tpu.memory_space<vmem>>, %arg4: memref<1x128xf32, #tpu.memory_space<vmem>>, %arg5: memref<1x128xf32, #tpu.memory_space<vmem>>, %arg6: memref<128x1152xbf16, #tpu.memory_space<vmem>>, %arg7: memref<1152x128xbf16, #tpu.memory_space<vmem>>, %arg8: memref<1x128xf32, #tpu.memory_space<vmem>>, %arg9: memref<2x128xf32, #tpu.memory_space<vmem>>, %arg10: memref<2x225x128xbf16, #tpu.memory_space<vmem>>, %arg11: memref<2x1152xf32, #tpu.memory_space<vmem>>, %arg12: memref<2x128xf32, #tpu.memory_space<vmem>>) attributes {dimension_semantics = [#tpu.dimension_semantics<parallel>, #tpu.dimension_semantics<arbitrary>], iteration_bounds = array<i64: 1, 4>, scalar_prefetch = 0 : i64, scratch_operands = 3 : i64, tpu.core_type = #tpu.core_type<tc>, window_params = [{transform_indices = @transform_0, window_bounds = array<i64: 2, 225, 27>}, {pipeline_mode = #tpu.pipeline_mode<synchronous>, transform_indices = @transform_1, window_bounds = array<i64: 27, 128>}, {pipeline_mode = #tpu.pipeline_mode<synchronous>, transform_indices = @transform_2, window_bounds = array<i64: 1, 128>}, {pipeline_mode = #tpu.pipeline_mode<synchronous>, transform_indices = @transform_3, window_bounds = array<i64: 1, 128>}, {transform_indices = @transform_4, window_bounds = array<i64: 128, 1152>}, {transform_indices = @transform_5, window_bounds = array<i64: 1152, 128>}, {pipeline_mode = #tpu.pipeline_mode<synchronous>, transform_indices = @transform_6, window_bounds = array<i64: 1, 128>}, {transform_indices = @transform_7, window_bounds = array<i64: 2, 128>}]} {
    %c0_i32 = arith.constant 0 : i32
    %0 = arith.cmpi eq, %arg1, %c0_i32 : i32
    %1 = arith.extui %0 : i1 to i32
    %c0_i32_0 = arith.constant 0 : i32
    %2 = arith.cmpi ne, %1, %c0_i32_0 : i32
    scf.if %2 {
      %cst_28 = arith.constant 0.000000e+00 : f32
      %31 = vector.broadcast %cst_28 : f32 to vector<2x128xf32>
      %c0_29 = arith.constant 0 : index
      %c0_30 = arith.constant 0 : index
      %32 = vector.load %arg12[%c0_29, %c0_30] : memref<2x128xf32, #tpu.memory_space<vmem>>, vector<2x128xf32>
      tpu.vector_store %arg12[%c0_29, %c0_30], %31 {strides = array<i32>} : memref<2x128xf32, #tpu.memory_space<vmem>>, vector<2x128xf32>,
      %c0_31 = arith.constant 0 : index
      %c0_32 = arith.constant 0 : index
      %c0_33 = arith.constant 0 : index
      %33 = vector.load %arg2[%c0_31, %c0_32, %c0_33] : memref<2x225x27xf32, #tpu.memory_space<vmem>>, vector<1x225x27xf32>
      %34 = vector.shape_cast %33 : vector<1x225x27xf32> to vector<225x27xf32>
      %c0_34 = arith.constant 0 : index
      %c0_35 = arith.constant 0 : index
      %35 = vector.load %arg3[%c0_34, %c0_35] : memref<27x128xf32, #tpu.memory_space<vmem>>, vector<27x128xf32>
      %cst_36 = arith.constant dense<0.000000e+00> : vector<225x128xf32>
      %36 = tpu.matmul %34, %35, %cst_36 {dimension_numbers = #tpu.dot_dimension_numbers<[1], [0], [0], [1], [0, 0, 1, 1], [], []>} : vector<225x27xf32>, vector<27x128xf32>, vector<225x128xf32> -> vector<225x128xf32>
      %c0_37 = arith.constant 0 : index
      %c0_38 = arith.constant 0 : index
      %37 = vector.load %arg4[%c0_37, %c0_38] : memref<1x128xf32, #tpu.memory_space<vmem>>, vector<1x128xf32>
      %38 = vector.broadcast %37 : vector<1x128xf32> to vector<225x128xf32>
      %39 = arith.mulf %36, %38 : vector<225x128xf32>
      %c0_39 = arith.constant 0 : index
      %c0_40 = arith.constant 0 : index
      %40 = vector.load %arg5[%c0_39, %c0_40] : memref<1x128xf32, #tpu.memory_space<vmem>>, vector<1x128xf32>
      %41 = vector.broadcast %40 : vector<1x128xf32> to vector<225x128xf32>
      %42 = arith.addf %39, %41 : vector<225x128xf32>
      %43 = arith.truncf %42 : vector<225x128xf32> to vector<225x128xbf16>
      %c0_41 = arith.constant 0 : index
      %c0_42 = arith.constant 0 : index
      %c0_43 = arith.constant 0 : index
      %44 = vector.load %arg10[%c0_41, %c0_42, %c0_43] : memref<2x225x128xbf16, #tpu.memory_space<vmem>>, vector<1x225x128xbf16>
      %45 = vector.shape_cast %44 : vector<1x225x128xbf16> to vector<225x128xbf16>
      %46 = vector.shape_cast %43 : vector<225x128xbf16> to vector<1x225x128xbf16>
      tpu.vector_store %arg10[%c0_41, %c0_42, %c0_43], %46 {strides = array<i32>} : memref<2x225x128xbf16, #tpu.memory_space<vmem>>, vector<1x225x128xbf16>,
      %c1_44 = arith.constant 1 : index
      %c0_45 = arith.constant 0 : index
      %c0_46 = arith.constant 0 : index
      %47 = vector.load %arg2[%c1_44, %c0_45, %c0_46] : memref<2x225x27xf32, #tpu.memory_space<vmem>>, vector<1x225x27xf32>
      %48 = vector.shape_cast %47 : vector<1x225x27xf32> to vector<225x27xf32>
      %c0_47 = arith.constant 0 : index
      %c0_48 = arith.constant 0 : index
      %49 = vector.load %arg3[%c0_47, %c0_48] : memref<27x128xf32, #tpu.memory_space<vmem>>, vector<27x128xf32>
      %cst_49 = arith.constant dense<0.000000e+00> : vector<225x128xf32>
      %50 = tpu.matmul %48, %49, %cst_49 {dimension_numbers = #tpu.dot_dimension_numbers<[1], [0], [0], [1], [0, 0, 1, 1], [], []>} : vector<225x27xf32>, vector<27x128xf32>, vector<225x128xf32> -> vector<225x128xf32>
      %c0_50 = arith.constant 0 : index
      %c0_51 = arith.constant 0 : index
      %51 = vector.load %arg4[%c0_50, %c0_51] : memref<1x128xf32, #tpu.memory_space<vmem>>, vector<1x128xf32>
      %52 = vector.broadcast %51 : vector<1x128xf32> to vector<225x128xf32>
      %53 = arith.mulf %50, %52 : vector<225x128xf32>
      %c0_52 = arith.constant 0 : index
      %c0_53 = arith.constant 0 : index
      %54 = vector.load %arg5[%c0_52, %c0_53] : memref<1x128xf32, #tpu.memory_space<vmem>>, vector<1x128xf32>
      %55 = vector.broadcast %54 : vector<1x128xf32> to vector<225x128xf32>
      %56 = arith.addf %53, %55 : vector<225x128xf32>
      %57 = arith.truncf %56 : vector<225x128xf32> to vector<225x128xbf16>
      %c1_54 = arith.constant 1 : index
      %c0_55 = arith.constant 0 : index
      %c0_56 = arith.constant 0 : index
      %58 = vector.load %arg10[%c1_54, %c0_55, %c0_56] : memref<2x225x128xbf16, #tpu.memory_space<vmem>>, vector<1x225x128xbf16>
      %59 = vector.shape_cast %58 : vector<1x225x128xbf16> to vector<225x128xbf16>
      %60 = vector.shape_cast %57 : vector<225x128xbf16> to vector<1x225x128xbf16>
      tpu.vector_store %arg10[%c1_54, %c0_55, %c0_56], %60 {strides = array<i32>} : memref<2x225x128xbf16, #tpu.memory_space<vmem>>, vector<1x225x128xbf16>,
    } else {
    }
    %c0 = arith.constant 0 : index
    %c0_1 = arith.constant 0 : index
    %c0_2 = arith.constant 0 : index
    %3 = vector.load %arg10[%c0, %c0_1, %c0_2] : memref<2x225x128xbf16, #tpu.memory_space<vmem>>, vector<1x225x128xbf16>
    %4 = vector.shape_cast %3 : vector<1x225x128xbf16> to vector<225x128xbf16>
    %c0_3 = arith.constant 0 : index
    %c0_4 = arith.constant 0 : index
    %5 = vector.load %arg6[%c0_3, %c0_4] : memref<128x1152xbf16, #tpu.memory_space<vmem>>, vector<128x1152xbf16>
    %cst = arith.constant dense<0.000000e+00> : vector<225x1152xf32>
    %6 = tpu.matmul %4, %5, %cst {dimension_numbers = #tpu.dot_dimension_numbers<[1], [0], [0], [1], [0, 0, 1, 1], [], []>} : vector<225x128xbf16>, vector<128x1152xbf16>, vector<225x1152xf32> -> vector<225x1152xf32>
    %cst_5 = arith.constant 0.000000e+00 : f32
    %7 = vector.broadcast %cst_5 : f32 to vector<225x1152xf32>
    %8 = arith.maximumf %6, %7 : vector<225x1152xf32>
    %cst_6 = arith.constant dense<0.000000e+00> : vector<1152xf32>
    %9 = vector.multi_reduction <add>, %8, %cst_6 [0] : vector<225x1152xf32> to vector<1152xf32>
    %10 = vector.shape_cast %9 : vector<1152xf32> to vector<1x1152xf32>
    %c0_7 = arith.constant 0 : index
    %c0_8 = arith.constant 0 : index
    %11 = vector.load %arg11[%c0_7, %c0_8] : memref<2x1152xf32, #tpu.memory_space<vmem>>, vector<1x1152xf32>
    tpu.vector_store %arg11[%c0_7, %c0_8], %10 {strides = array<i32>} : memref<2x1152xf32, #tpu.memory_space<vmem>>, vector<1x1152xf32>,
    %c1 = arith.constant 1 : index
    %c0_9 = arith.constant 0 : index
    %c0_10 = arith.constant 0 : index
    %12 = vector.load %arg10[%c1, %c0_9, %c0_10] : memref<2x225x128xbf16, #tpu.memory_space<vmem>>, vector<1x225x128xbf16>
    %13 = vector.shape_cast %12 : vector<1x225x128xbf16> to vector<225x128xbf16>
    %c0_11 = arith.constant 0 : index
    %c0_12 = arith.constant 0 : index
    %14 = vector.load %arg6[%c0_11, %c0_12] : memref<128x1152xbf16, #tpu.memory_space<vmem>>, vector<128x1152xbf16>
    %cst_13 = arith.constant dense<0.000000e+00> : vector<225x1152xf32>
    %15 = tpu.matmul %13, %14, %cst_13 {dimension_numbers = #tpu.dot_dimension_numbers<[1], [0], [0], [1], [0, 0, 1, 1], [], []>} : vector<225x128xbf16>, vector<128x1152xbf16>, vector<225x1152xf32> -> vector<225x1152xf32>
    %cst_14 = arith.constant 0.000000e+00 : f32
    %16 = vector.broadcast %cst_14 : f32 to vector<225x1152xf32>
    %17 = arith.maximumf %15, %16 : vector<225x1152xf32>
    %cst_15 = arith.constant dense<0.000000e+00> : vector<1152xf32>
    %18 = vector.multi_reduction <add>, %17, %cst_15 [0] : vector<225x1152xf32> to vector<1152xf32>
    %19 = vector.shape_cast %18 : vector<1152xf32> to vector<1x1152xf32>
    %c1_16 = arith.constant 1 : index
    %c0_17 = arith.constant 0 : index
    %20 = vector.load %arg11[%c1_16, %c0_17] : memref<2x1152xf32, #tpu.memory_space<vmem>>, vector<1x1152xf32>
    tpu.vector_store %arg11[%c1_16, %c0_17], %19 {strides = array<i32>} : memref<2x1152xf32, #tpu.memory_space<vmem>>, vector<1x1152xf32>,
    %c0_18 = arith.constant 0 : index
    %c0_19 = arith.constant 0 : index
    %21 = vector.load %arg12[%c0_18, %c0_19] : memref<2x128xf32, #tpu.memory_space<vmem>>, vector<2x128xf32>
    %c0_20 = arith.constant 0 : index
    %c0_21 = arith.constant 0 : index
    %22 = vector.load %arg11[%c0_20, %c0_21] : memref<2x1152xf32, #tpu.memory_space<vmem>>, vector<2x1152xf32>
    %23 = arith.truncf %22 : vector<2x1152xf32> to vector<2x1152xbf16>
    %c0_22 = arith.constant 0 : index
    %c0_23 = arith.constant 0 : index
    %24 = vector.load %arg7[%c0_22, %c0_23] : memref<1152x128xbf16, #tpu.memory_space<vmem>>, vector<1152x128xbf16>
    %cst_24 = arith.constant dense<0.000000e+00> : vector<2x128xf32>
    %25 = tpu.matmul %23, %24, %cst_24 {dimension_numbers = #tpu.dot_dimension_numbers<[1], [0], [0], [1], [0, 0, 1, 1], [], []>} : vector<2x1152xbf16>, vector<1152x128xbf16>, vector<2x128xf32> -> vector<2x128xf32>
    %26 = arith.addf %21, %25 : vector<2x128xf32>
    %c0_25 = arith.constant 0 : index
    %c0_26 = arith.constant 0 : index
    %27 = vector.load %arg12[%c0_25, %c0_26] : memref<2x128xf32, #tpu.memory_space<vmem>>, vector<2x128xf32>
    tpu.vector_store %arg12[%c0_25, %c0_26], %26 {strides = array<i32>} : memref<2x128xf32, #tpu.memory_space<vmem>>, vector<2x128xf32>,
    %c3_i32 = arith.constant 3 : i32
    %28 = arith.cmpi eq, %arg1, %c3_i32 : i32
    %29 = arith.extui %28 : i1 to i32
    %c0_i32_27 = arith.constant 0 : i32
    %30 = arith.cmpi ne, %29, %c0_i32_27 : i32
    scf.if %30 {
      %c0_28 = arith.constant 0 : index
      %c0_29 = arith.constant 0 : index
      %31 = vector.load %arg12[%c0_28, %c0_29] : memref<2x128xf32, #tpu.memory_space<vmem>>, vector<2x128xf32>
      %cst_30 = arith.constant 0.00444444455 : f32
      %32 = vector.broadcast %cst_30 : f32 to vector<2x128xf32>
      %33 = arith.mulf %31, %32 : vector<2x128xf32>
      %c0_31 = arith.constant 0 : index
      %c0_32 = arith.constant 0 : index
      %34 = vector.load %arg8[%c0_31, %c0_32] : memref<1x128xf32, #tpu.memory_space<vmem>>, vector<1x128xf32>
      %35 = vector.broadcast %34 : vector<1x128xf32> to vector<2x128xf32>
      %36 = arith.addf %33, %35 : vector<2x128xf32>
      %c0_33 = arith.constant 0 : index
      %c0_34 = arith.constant 0 : index
      %37 = vector.load %arg9[%c0_33, %c0_34] : memref<2x128xf32, #tpu.memory_space<vmem>>, vector<2x128xf32>
      tpu.vector_store %arg9[%c0_33, %c0_34], %36 {strides = array<i32>} : memref<2x128xf32, #tpu.memory_space<vmem>>, vector<2x128xf32>,
    } else {
    }
    return
  }
  func.func @transform_0(%arg0: i32, %arg1: i32) -> (i32, i32, i32) {
    %c0_i32 = arith.constant 0 : i32
    %c0_i32_0 = arith.constant 0 : i32
    %c0_i32_1 = arith.constant 0 : i32
    return %arg0, %c0_i32, %c0_i32_0 : i32, i32, i32
  }
  func.func @transform_1(%arg0: i32, %arg1: i32) -> (i32, i32) {
    %c0_i32 = arith.constant 0 : i32
    %c0_i32_0 = arith.constant 0 : i32
    %c0_i32_1 = arith.constant 0 : i32
    return %c0_i32, %c0_i32_0 : i32, i32
  }
  func.func @transform_2(%arg0: i32, %arg1: i32) -> (i32, i32) {
    %c0_i32 = arith.constant 0 : i32
    %c0_i32_0 = arith.constant 0 : i32
    %c0_i32_1 = arith.constant 0 : i32
    return %c0_i32, %c0_i32_0 : i32, i32
  }
  func.func @transform_3(%arg0: i32, %arg1: i32) -> (i32, i32) {
    %c0_i32 = arith.constant 0 : i32
    %c0_i32_0 = arith.constant 0 : i32
    %c0_i32_1 = arith.constant 0 : i32
    return %c0_i32, %c0_i32_0 : i32, i32
  }
  func.func @transform_4(%arg0: i32, %arg1: i32) -> (i32, i32) {
    %c0_i32 = arith.constant 0 : i32
    %c0_i32_0 = arith.constant 0 : i32
    return %c0_i32, %arg1 : i32, i32
  }
  func.func @transform_5(%arg0: i32, %arg1: i32) -> (i32, i32) {
    %c0_i32 = arith.constant 0 : i32
    %c0_i32_0 = arith.constant 0 : i32
    return %arg1, %c0_i32 : i32, i32
  }
  func.func @transform_6(%arg0: i32, %arg1: i32) -> (i32, i32) {
    %c0_i32 = arith.constant 0 : i32
    %c0_i32_0 = arith.constant 0 : i32
    %c0_i32_1 = arith.constant 0 : i32
    return %c0_i32, %c0_i32_0 : i32, i32
  }
  func.func @transform_7(%arg0: i32, %arg1: i32) -> (i32, i32) {
    %c0_i32 = arith.constant 0 : i32
    %c0_i32_0 = arith.constant 0 : i32
    return %arg0, %c0_i32 : i32, i32
  }
}

</mosaic_0001>

<bundles_post_ra>
// kernel: modified_pnasnet_forward.1
= control target key start
LH: loop header
LB: loop body
LE: loop exit
PB: predicated region body
PF: predicated region fallthrough
CT: control target
= control target key end

     0   :  { %12 = vsyncpa [#allocation7], 0  ;;  %s8525_s24 = smov 0   ;;  %s8527_s25 = smov 0   ;;  %s10310_s0 = inlined_call_operand.vmem [shape: f32[2,225,27], index: 0, kind: input, shape index: {}]   ;;  %s10311_s1 = inlined_call_operand.vmem [shape: f32[27,128], index: 1, kind: input, shape index: {}]   ;;  %s10312_s2 = inlined_call_operand.vmem [shape: f32[1,128], index: 2, kind: input, shape index: {}]   ;;  %s10313_s3 = inlined_call_operand.vmem [shape: f32[1,128], index: 3, kind: input, shape index: {}]   ;;  %s10314_s4 = inlined_call_operand.vmem [shape: bf16[128,4608], index: 4, kind: input, shape index: {}]   ;;  %s10315_s5 = inlined_call_operand.vmem [shape: bf16[4608,128], index: 5, kind: input, shape index: {}]   ;;  %s10316_s6 = inlined_call_operand.vmem [shape: f32[1,128], index: 6, kind: input, shape index: {}]   ;;  %s10317_s7 = inlined_call_operand.hbm [shape: f32[2,128], index: 7, kind: output, shape index: {}]  }
   0x1   :  { %s8529_s26 = smov 0   ;;  %s8531_s27 = smov 0  }
   0x2   :  { %s8533_s28 = smov 0  }
   0x3 LB: > { %s6787_s29 = sadd.s32 4294967295, %s8475_s28   ;;  %s27_s30 = sadd.s32 1, %s8471_s27  ;;  %s8475_s28 = sphi %s8533_s28, %s18_s28   ;;  %s8471_s27 = sphi %s8531_s27, %s10336_s27   ;;  %s8467_s26 = sphi %s8529_s26, %s10335_s26   ;;  %s8463_s25 = sphi %s8527_s25, %s10334_s25   ;;  %s8459_s24 = sphi %s8525_s24, %s10333_s24  }
   0x4   : > { %p28_p0 = scmp.ge.s32.totalorder %s27_s30, 4  ;;  %p133_p1 = scmp.ne.s32.totalorder %s8463_s25, %s8459_s24 }
   0x5   : > { %p134_p2 = scmp.eq.s32.totalorder %s8475_s28, 0  ;;  %s126_s9 = sadd.s32 1, %s8463_s25 }
   0x6   : > { %s10338_s30 = smov (%p28_p0, %s27_s30), 0  ;;  %p6790_p5 = scmp.ge.s32.totalorder %s8475_s28, 4 }
   0x7   : > { %p135_p3 = por %p134_p2, %p133_p1  ;;  %s123_s8 = ssub.s32 %s8471_s27, %s10338_s30 }
   0x8   : > { %p124_p4 = scmp.eq.s32.totalorder %s123_s8, 0  ;;  %254 = sbr.rel (%p6790_p5) target bundleno = 60 (0x3c), region = 36 }
   0xa   : > { %s8561_s10 = scalar_select %p124_p4, %s8463_s25, %s126_s9  }
   0xd   : > { %257 = sbr.rel (!%p135_p3) target bundleno = 60 (0x3c), region = 40  ;;  %s259_s11 = sand.u32 (%p135_p3), 1, %s8463_s25  }
   0xe   : > { %s7231_s12 = smul.u32 (%p135_p3), 36, %s8471_s27 }
   0xf   : > { %s8022_s13 = smul.u32 (%p135_p3), 576, %s259_s11 }
  0x10   : > { %s8569_s16 = scalar_lea.vmem (%p135_p3), %s10314_s4, %s7231_s12 }
  0x11   : > { %v279_v0 = vld [vmem:[%s8569_s16] sm:$0xff] (%p135_p3)  ;;  %v281_v1 = vld [vmem:[%s8569_s16 + $0x8] sm:$0xff] (%p135_p3)  ;;  %v283_v2 = vld [vmem:[%s8569_s16 + $0x10] sm:$0xff] (%p135_p3)  ;;  %s8574_s17 = scalar_lea.vmem (%p135_p3), [#allocation5], %s8022_s13 }
  0x12   : > { %280 = vst [vmem:[%s8574_s17] sm:$0xff] %v279_v0  ;;  %282 = vst [vmem:[%s8574_s17 + $0x8] sm:$0xff] %v281_v1  ;;  %v285_v3 = vld [vmem:[%s8569_s16 + $0x18] sm:$0xff]  ;;  %v287_v4 = vld [vmem:[%s8569_s16 + $0x90] sm:$0xff] }
  0x13   : > { %284 = vst [vmem:[%s8574_s17 + $0x10] sm:$0xff] %v283_v2  ;;  %v289_v5 = vld [vmem:[%s8569_s16 + $0x98] sm:$0xff]  ;;  %286 = vst [vmem:[%s8574_s17 + $0x18] sm:$0xff] %v285_v3  ;;  %v291_v6 = vld [vmem:[%s8569_s16 + $0xa0] sm:$0xff] }
  0x14   : > { %288 = vst [vmem:[%s8574_s17 + $0x24] sm:$0xff] %v287_v4  ;;  %290 = vst [vmem:[%s8574_s17 + $0x2c] sm:$0xff] %v289_v5  ;;  %v293_v7 = vld [vmem:[%s8569_s16 + $0xa8] sm:$0xff]  ;;  %v295_v8 = vld [vmem:[%s8569_s16 + $0x120] sm:$0xff] }
  0x15   : > { %292 = vst [vmem:[%s8574_s17 + $0x34] sm:$0xff] %v291_v6  ;;  %294 = vst [vmem:[%s8574_s17 + $0x3c] sm:$0xff] %v293_v7  ;;  %v297_v9 = vld [vmem:[%s8569_s16 + $0x128] sm:$0xff]  ;;  %v299_v10 = vld [vmem:[%s8569_s16 + $0x130] sm:$0xff] }
  0x16   : > { %296 = vst [vmem:[%s8574_s17 + $0x48] sm:$0xff] %v295_v8  ;;  %v301_v11 = vld [vmem:[%s8569_s16 + $0x138] sm:$0xff]  ;;  %298 = vst [vmem:[%s8574_s17 + $0x50] sm:$0xff] %v297_v9  ;;  %v303_v12 = vld [vmem:[%s8569_s16 + $0x1b0] sm:$0xff] }
  0x17   : > { %300 = vst [vmem:[%s8574_s17 + $0x58] sm:$0xff] %v299_v10  ;;  %302 = vst [vmem:[%s8574_s17 + $0x60] sm:$0xff] %v301_v11  ;;  %v305_v13 = vld [vmem:[%s8569_s16 + $0x1b8] sm:$0xff]  ;;  %v307_v14 = vld [vmem:[%s8569_s16 + $0x1c0] sm:$0xff] }
  0x18   : > { %304 = vst [vmem:[%s8574_s17 + $0x6c] sm:$0xff] %v303_v12  ;;  %306 = vst [vmem:[%s8574_s17 + $0x74] sm:$0xff] %v305_v13  ;;  %v309_v15 = vld [vmem:[%s8569_s16 + $0x1c8] sm:$0xff]  ;;  %v311_v16 = vld [vmem:[%s8569_s16 + $0x240] sm:$0xff] }
  0x19   : > { %308 = vst [vmem:[%s8574_s17 + $0x7c] sm:$0xff] %v307_v14  ;;  %v313_v17 = vld [vmem:[%s8569_s16 + $0x248] sm:$0xff]  ;;  %310 = vst [vmem:[%s8574_s17 + $0x84] sm:$0xff] %v309_v15  ;;  %v315_v18 = vld [vmem:[%s8569_s16 + $0x250] sm:$0xff] }
  0x1a   : > { %312 = vst [vmem:[%s8574_s17 + $0x90] sm:$0xff] %v311_v16  ;;  %314 = vst [vmem:[%s8574_s17 + $0x98] sm:$0xff] %v313_v17  ;;  %v317_v19 = vld [vmem:[%s8569_s16 + $0x258] sm:$0xff]  ;;  %v319_v20 = vld [vmem:[%s8569_s16 + $0x2d0] sm:$0xff] }
  0x1b   : > { %316 = vst [vmem:[%s8574_s17 + $0xa0] sm:$0xff] %v315_v18  ;;  %318 = vst [vmem:[%s8574_s17 + $0xa8] sm:$0xff] %v317_v19  ;;  %v321_v21 = vld [vmem:[%s8569_s16 + $0x2d8] sm:$0xff]  ;;  %v323_v22 = vld [vmem:[%s8569_s16 + $0x2e0] sm:$0xff] }
  0x1c   : > { %320 = vst [vmem:[%s8574_s17 + $0xb4] sm:$0xff] %v319_v20  ;;  %v325_v23 = vld [vmem:[%s8569_s16 + $0x2e8] sm:$0xff]  ;;  %322 = vst [vmem:[%s8574_s17 + $0xbc] sm:$0xff] %v321_v21  ;;  %v327_v24 = vld [vmem:[%s8569_s16 + $0x360] sm:$0xff] }
  0x1d   : > { %324 = vst [vmem:[%s8574_s17 + $0xc4] sm:$0xff] %v323_v22  ;;  %326 = vst [vmem:[%s8574_s17 + $0xcc] sm:$0xff] %v325_v23  ;;  %v329_v25 = vld [vmem:[%s8569_s16 + $0x368] sm:$0xff]  ;;  %v331_v26 = vld [vmem:[%s8569_s16 + $0x370] sm:$0xff] }
  0x1e   : > { %328 = vst [vmem:[%s8574_s17 + $0xd8] sm:$0xff] %v327_v24  ;;  %330 = vst [vmem:[%s8574_s17 + $0xe0] sm:$0xff] %v329_v25  ;;  %v333_v27 = vld [vmem:[%s8569_s16 + $0x378] sm:$0xff]  ;;  %v335_v28 = vld [vmem:[%s8569_s16 + $0x3f0] sm:$0xff] }
  0x1f   : > { %332 = vst [vmem:[%s8574_s17 + $0xe8] sm:$0xff] %v331_v26  ;;  %v337_v29 = vld [vmem:[%s8569_s16 + $0x3f8] sm:$0xff]  ;;  %334 = vst [vmem:[%s8574_s17 + $0xf0] sm:$0xff] %v333_v27  ;;  %v339_v30 = vld [vmem:[%s8569_s16 + $0x400] sm:$0xff] }
  0x20   : > { %336 = vst [vmem:[%s8574_s17 + $0xfc] sm:$0xff] %v335_v28  ;;  %338 = vst [vmem:[%s8574_s17 + $0x104] sm:$0xff] %v337_v29  ;;  %v341_v31 = vld [vmem:[%s8569_s16 + $0x408] sm:$0xff]  ;;  %v343_v32 = vld [vmem:[%s8569_s16 + $0x480] sm:$0xff] }
  0x21   : > { %340 = vst [vmem:[%s8574_s17 + $0x10c] sm:$0xff] %v339_v30  ;;  %342 = vst [vmem:[%s8574_s17 + $0x114] sm:$0xff] %v341_v31  ;;  %v345_v33 = vld [vmem:[%s8569_s16 + $0x488] sm:$0xff]  ;;  %v347_v34 = vld [vmem:[%s8569_s16 + $0x490] sm:$0xff] }
  0x22   : > { %344 = vst [vmem:[%s8574_s17 + $0x120] sm:$0xff] %v343_v32  ;;  %v349_v35 = vld [vmem:[%s8569_s16 + $0x498] sm:$0xff]  ;;  %346 = vst [vmem:[%s8574_s17 + $0x128] sm:$0xff] %v345_v33  ;;  %v351_v36 = vld [vmem:[%s8569_s16 + $0x510] sm:$0xff] }
  0x23   : > { %348 = vst [vmem:[%s8574_s17 + $0x130] sm:$0xff] %v347_v34  ;;  %350 = vst [vmem:[%s8574_s17 + $0x138] sm:$0xff] %v349_v35  ;;  %v353_v37 = vld [vmem:[%s8569_s16 + $0x518] sm:$0xff]  ;;  %v355_v38 = vld [vmem:[%s8569_s16 + $0x520] sm:$0xff] }
  0x24   : > { %352 = vst [vmem:[%s8574_s17 + $0x144] sm:$0xff] %v351_v36  ;;  %354 = vst [vmem:[%s8574_s17 + $0x14c] sm:$0xff] %v353_v37  ;;  %v357_v39 = vld [vmem:[%s8569_s16 + $0x528] sm:$0xff]  ;;  %v359_v40 = vld [vmem:[%s8569_s16 + $0x5a0] sm:$0xff] }
  0x25   : > { %356 = vst [vmem:[%s8574_s17 + $0x154] sm:$0xff] %v355_v38  ;;  %v361_v41 = vld [vmem:[%s8569_s16 + $0x5a8] sm:$0xff]  ;;  %358 = vst [vmem:[%s8574_s17 + $0x15c] sm:$0xff] %v357_v39  ;;  %v363_v42 = vld [vmem:[%s8569_s16 + $0x5b0] sm:$0xff] }
  0x26   : > { %360 = vst [vmem:[%s8574_s17 + $0x168] sm:$0xff] %v359_v40  ;;  %362 = vst [vmem:[%s8574_s17 + $0x170] sm:$0xff] %v361_v41  ;;  %v365_v43 = vld [vmem:[%s8569_s16 + $0x5b8] sm:$0xff]  ;;  %v367_v44 = vld [vmem:[%s8569_s16 + $0x630] sm:$0xff] }
  0x27   : > { %364 = vst [vmem:[%s8574_s17 + $0x178] sm:$0xff] %v363_v42  ;;  %366 = vst [vmem:[%s8574_s17 + $0x180] sm:$0xff] %v365_v43  ;;  %v369_v45 = vld [vmem:[%s8569_s16 + $0x638] sm:$0xff]  ;;  %v371_v46 = vld [vmem:[%s8569_s16 + $0x640] sm:$0xff] }
  0x28   : > { %368 = vst [vmem:[%s8574_s17 + $0x18c] sm:$0xff] %v367_v44  ;;  %v373_v47 = vld [vmem:[%s8569_s16 + $0x648] sm:$0xff]  ;;  %370 = vst [vmem:[%s8574_s17 + $0x194] sm:$0xff] %v369_v45  ;;  %v375_v48 = vld [vmem:[%s8569_s16 + $0x6c0] sm:$0xff] }
  0x29   : > { %372 = vst [vmem:[%s8574_s17 + $0x19c] sm:$0xff] %v371_v46  ;;  %374 = vst [vmem:[%s8574_s17 + $0x1a4] sm:$0xff] %v373_v47  ;;  %v377_v49 = vld [vmem:[%s8569_s16 + $0x6c8] sm:$0xff]  ;;  %v379_v50 = vld [vmem:[%s8569_s16 + $0x6d0] sm:$0xff] }
  0x2a   : > { %376 = vst [vmem:[%s8574_s17 + $0x1b0] sm:$0xff] %v375_v48  ;;  %378 = vst [vmem:[%s8574_s17 + $0x1b8] sm:$0xff] %v377_v49  ;;  %v381_v51 = vld [vmem:[%s8569_s16 + $0x6d8] sm:$0xff]  ;;  %v383_v52 = vld [vmem:[%s8569_s16 + $0x750] sm:$0xff] }
  0x2b   : > { %380 = vst [vmem:[%s8574_s17 + $0x1c0] sm:$0xff] %v379_v50  ;;  %v385_v53 = vld [vmem:[%s8569_s16 + $0x758] sm:$0xff]  ;;  %382 = vst [vmem:[%s8574_s17 + $0x1c8] sm:$0xff] %v381_v51  ;;  %v387_v54 = vld [vmem:[%s8569_s16 + $0x760] sm:$0xff] }
  0x2c   : > { %384 = vst [vmem:[%s8574_s17 + $0x1d4] sm:$0xff] %v383_v52  ;;  %386 = vst [vmem:[%s8574_s17 + $0x1dc] sm:$0xff] %v385_v53  ;;  %v389_v55 = vld [vmem:[%s8569_s16 + $0x768] sm:$0xff]  ;;  %v391_v56 = vld [vmem:[%s8569_s16 + $0x7e0] sm:$0xff] }
  0x2d   : > { %388 = vst [vmem:[%s8574_s17 + $0x1e4] sm:$0xff] %v387_v54  ;;  %390 = vst [vmem:[%s8574_s17 + $0x1ec] sm:$0xff] %v389_v55  ;;  %v393_v57 = vld [vmem:[%s8569_s16 + $0x7e8] sm:$0xff]  ;;  %v395_v58 = vld [vmem:[%s8569_s16 + $0x7f0] sm:$0xff] }
  0x2e   : > { %392 = vst [vmem:[%s8574_s17 + $0x1f8] sm:$0xff] %v391_v56  ;;  %v397_v59 = vld [vmem:[%s8569_s16 + $0x7f8] sm:$0xff]  ;;  %394 = vst [vmem:[%s8574_s17 + $0x200] sm:$0xff] %v393_v57  ;;  %v399_v60 = vld [vmem:[%s8569_s16 + $0x870] sm:$0xff] }
  0x2f   : > { %396 = vst [vmem:[%s8574_s17 + $0x208] sm:$0xff] %v395_v58  ;;  %398 = vst [vmem:[%s8574_s17 + $0x210] sm:$0xff] %v397_v59  ;;  %v401_v61 = vld [vmem:[%s8569_s16 + $0x878] sm:$0xff]  ;;  %v403_v62 = vld [vmem:[%s8569_s16 + $0x880] sm:$0xff] }
  0x30   : > { %400 = vst [vmem:[%s8574_s17 + $0x21c] sm:$0xff] %v399_v60  ;;  %402 = vst [vmem:[%s8574_s17 + $0x224] sm:$0xff] %v401_v61  ;;  %v405_v63 = vld [vmem:[%s8569_s16 + $0x888] sm:$0xff]  ;;  %v6792_v0 = vld [vmem:[%s8569_s16 + $0x20] sm:$0xf] }
  0x31   : > { %404 = vst [vmem:[%s8574_s17 + $0x22c] sm:$0xff] %v403_v62  ;;  %v6794_v1 = vld [vmem:[%s8569_s16 + $0xb0] sm:$0xf]  ;;  %406 = vst [vmem:[%s8574_s17 + $0x234] sm:$0xff] %v405_v63  ;;  %v6796_v2 = vld [vmem:[%s8569_s16 + $0x140] sm:$0xf] }
  0x32   : > { %6793 = vst [vmem:[%s8574_s17 + $0x20] sm:$0xf] %v6792_v0  ;;  %6795 = vst [vmem:[%s8574_s17 + $0x44] sm:$0xf] %v6794_v1  ;;  %v6798_v3 = vld [vmem:[%s8569_s16 + $0x1d0] sm:$0xf] }
  0x33   : > { %v6800_v4 = vld [vmem:[%s8569_s16 + $0x260] sm:$0xf]  ;;  %6797 = vst [vmem:[%s8574_s17 + $0x68] sm:$0xf] %v6796_v2  ;;  %6799 = vst [vmem:[%s8574_s17 + $0x8c] sm:$0xf] %v6798_v3 }
  0x34   : > { %6801 = vst [vmem:[%s8574_s17 + $0xb0] sm:$0xf] %v6800_v4  ;;  %v6802_v5 = vld [vmem:[%s8569_s16 + $0x2f0] sm:$0xf]  ;;  %v6804_v6 = vld [vmem:[%s8569_s16 + $0x380] sm:$0xf] }
  0x35   : > { %v6806_v7 = vld [vmem:[%s8569_s16 + $0x410] sm:$0xf]  ;;  %6803 = vst [vmem:[%s8574_s17 + $0xd4] sm:$0xf] %v6802_v5  ;;  %6805 = vst [vmem:[%s8574_s17 + $0xf8] sm:$0xf] %v6804_v6 }
  0x36   : > { %6807 = vst [vmem:[%s8574_s17 + $0x11c] sm:$0xf] %v6806_v7  ;;  %v6808_v8 = vld [vmem:[%s8569_s16 + $0x4a0] sm:$0xf]  ;;  %v6810_v9 = vld [vmem:[%s8569_s16 + $0x530] sm:$0xf] }
  0x37   : > { %v6812_v10 = vld [vmem:[%s8569_s16 + $0x5c0] sm:$0xf]  ;;  %6809 = vst [vmem:[%s8574_s17 + $0x140] sm:$0xf] %v6808_v8  ;;  %6811 = vst [vmem:[%s8574_s17 + $0x164] sm:$0xf] %v6810_v9 }
  0x38   : > { %6813 = vst [vmem:[%s8574_s17 + $0x188] sm:$0xf] %v6812_v10  ;;  %v6814_v11 = vld [vmem:[%s8569_s16 + $0x650] sm:$0xf]  ;;  %v6816_v12 = vld [vmem:[%s8569_s16 + $0x6e0] sm:$0xf] }
  0x39   : > { %v6818_v13 = vld [vmem:[%s8569_s16 + $0x770] sm:$0xf]  ;;  %6815 = vst [vmem:[%s8574_s17 + $0x1ac] sm:$0xf] %v6814_v11  ;;  %6817 = vst [vmem:[%s8574_s17 + $0x1d0] sm:$0xf] %v6816_v12 }
  0x3a   : > { %6819 = vst [vmem:[%s8574_s17 + $0x1f4] sm:$0xf] %v6818_v13  ;;  %v6820_v14 = vld [vmem:[%s8569_s16 + $0x800] sm:$0xf]  ;;  %v6822_v15 = vld [vmem:[%s8569_s16 + $0x890] sm:$0xf] }
  0x3b   : > { %6821 = vst [vmem:[%s8574_s17 + $0x218] sm:$0xf] %v6820_v14  ;;  %6823 = vst [vmem:[%s8574_s17 + $0x23c] sm:$0xf] %v6822_v15 }
  0x3c PF: > { %p6824_p6 = scmp.ge.s32.totalorder %s8475_s28, 1  ;;  %p460_p7 = scmp.lt.s32.totalorder %s8475_s28, 5 }
  0x3e   : > { %p461_p8 = pnand %p6824_p6, %p460_p7 }
  0x40   : > { %464 = sbr.rel (%p461_p8) target bundleno = 1552 (0x610), region = 70 }
  0x45   : > { %s467_s18 = sand.u32 1, %s8459_s24   ;;  %s512_s19 = smul.u32 144, %s8467_s26 }
  0x46   : > { %s8023_s20 = smul.u32 576, %s467_s18  ;;  %p6826_p10 = scmp.ne.s32.totalorder %s8467_s26, 0 }
  0x47   : > { %p513_p9 = scmp.lt.s32.totalorder %s512_s19, 575 }
  0x48   : > { %s8742_s9 = scalar_lea.vmem [#allocation5], %s8023_s20  ;;  %522 = sbr.rel (%p6826_p10) target bundleno = 400 (0x190), region = 78 }
  0x49   : > { %s10340_s19 = smov (!%p513_p9, %s512_s19), 575 }
  0x4a   : > { %s6825_s21 = sshll.u32 %s10340_s19, 2 }
  0x4b   : > { %s8740_s8 = scalar_lea.vmem %s10315_s5, %s6825_s21 }
  0x4d   : > { %v556_v16 = vld [vmem:[%s10311_s1 + $0x18] sm:$0x7]  ;;  %vm645_vm0 = vcmask 1042432   ;;  %v8477_v18 = vmov 0.0   ;;  %v555_v19 = vld [vmem:[%s10311_s1 + $0x10] sm:$0xff]  ;;  %v554_v20 = vld [vmem:[%s10311_s1 + $0x8] sm:$0xff] }
  0x4e   : > { %v1115_v17 = vld [vmem:[%s10311_s1 + $0x18] sm:$0x7]  ;;  %523 = vst [vmem:[#allocation4] sm:$0x3] %v8477_v18  ;;  %7660 = vmatprep.subr.mxu0 %v8477_v18  ;;  %7755 = vmatprep.subr.mxu1 %v8477_v18  ;;  %v553_v21 = vld [vmem:[%s10311_s1] sm:$0xff]  ;;  %vm557_vm1 = vcmask 220160  }
  0x4f   : > { %7661 = vmatpush3.msk.msra.mxu0 %vm645_vm0, %v556_v16  ;;  %7756 = vmatpush3.msk.msra.mxu1 %vm645_vm0, %v1115_v17  ;;  %v524_v22 = vld [vmem:[%s10310_s0] sm:$0xff]  ;;  %v6888_v23 = vld [vmem:[%s10310_s0 + $0xe8] sm:$0xff]  ;;  %vm8478_vm2 = vmmov 0   ;;  %v6889_v25 = vld [vmem:[%s10310_s0 + $0xf0] sm:$0xff]  ;;  %vm1076_vm3 = vcmask 1040384  }
  0x50   : > { %7662 = vmatprep.subr.mxu0 %v8477_v18  ;;  %7757 = vmatprep.subr.mxu1 %v8477_v18  ;;  %v525_v24 = vld [vmem:[%s10310_s0 + $0x8] sm:$0xff]  ;;  %v526_v26 = vld [vmem:[%s10310_s0 + $0x10] sm:$0xff]  ;;  %v6890_v27 = vld [vmem:[%s10310_s0 + $0xf8] sm:$0xff]  ;;  %vm1077_vm4 = vsmask.f32 256 }
  0x51   : > { %7663 = vmatpush3.msra.mxu0 %v555_v19  ;;  %7758 = vmatpush3.msra.mxu1 %v555_v19  ;;  %v527_v28 = vld [vmem:[%s10310_s0 + $0x18] sm:$0xff]  ;;  %v6891_v29 = vld [vmem:[%s10310_s0 + $0x100] sm:$0xff]  ;;  %v6892_v31 = vld [vmem:[%s10310_s0 + $0x108] sm:$0xff] }
  0x52   : > { %7664 = vmatprep.subr.mxu0 %v8477_v18  ;;  %7759 = vmatprep.subr.mxu1 %v8477_v18  ;;  %v528_v30 = vld [vmem:[%s10310_s0 + $0x20] sm:$0xff]  ;;  %v529_v32 = vld [vmem:[%s10310_s0 + $0x28] sm:$0xff]  ;;  %v6893_v33 = vld [vmem:[%s10310_s0 + $0x110] sm:$0xff] }
  0x53   : > { %7665 = vmatpush3.msra.mxu0 %v554_v20  ;;  %7760 = vmatpush3.msra.mxu1 %v554_v20  ;;  %v530_v34 = vld [vmem:[%s10310_s0 + $0x30] sm:$0xff]  ;;  %v6894_v35 = vld [vmem:[%s10310_s0 + $0x118] sm:$0xff]  ;;  %v6895_v37 = vld [vmem:[%s10310_s0 + $0x120] sm:$0xff] }
  0x54   : > { %7666 = vmatprep.subr.mxu0 %v8477_v18  ;;  %7761 = vmatprep.subr.mxu1 %v8477_v18  ;;  %v531_v36 = vld [vmem:[%s10310_s0 + $0x38] sm:$0xff]  ;;  %v532_v38 = vld [vmem:[%s10310_s0 + $0x40] sm:$0xff]  ;;  %v6896_v39 = vld [vmem:[%s10310_s0 + $0x128] sm:$0xff] }
  0x55   : > { %7667 = vmatpush3.msra.mxu0 %v553_v21  ;;  %7668 = vmatprep.mubr.msk.f32.mxu0 %vm8478_vm2, %v8477_v18  ;;  %v533_v40 = vld [vmem:[%s10310_s0 + $0x48] sm:$0xff]  ;;  %v6897_v41 = vld [vmem:[%s10310_s0 + $0x130] sm:$0xff]  ;;  %v6898_v43 = vld [vmem:[%s10310_s0 + $0x138] sm:$0xff] }
  0x56   : > { %7762 = vmatpush3.msra.mxu1 %v553_v21  ;;  %7763 = vmatprep.mubr.msk.f32.mxu1 %vm8478_vm2, %v8477_v18  ;;  %v534_v42 = vld [vmem:[%s10310_s0 + $0x50] sm:$0xff]  ;;  %v535_v44 = vld [vmem:[%s10310_s0 + $0x58] sm:$0xff]  ;;  %v6899_v45 = vld [vmem:[%s10310_s0 + $0x140] sm:$0xff] }
  0x57   : > { %7669 = vmatmul.mubr.msk.f32.vlgmr.msra.gmra.mxu0 %vm557_vm1, %v524_v22  ;;  %7764 = vmatmul.mubr.msk.f32.vlgmr.msra.gmra.mxu1 %vm557_vm1, %v6888_v23  ;;  %v536_v46 = vld [vmem:[%s10310_s0 + $0x60] sm:$0xff]  ;;  %v6900_v47 = vld [vmem:[%s10310_s0 + $0x148] sm:$0xff]  ;;  %v6901_v49 = vld [vmem:[%s10310_s0 + $0x150] sm:$0xff] }
  0x58   : > { %7671 = vmatprep.mubr.msk.f32.mxu0 %vm8478_vm2, %v8477_v18  ;;  %7766 = vmatprep.mubr.msk.f32.mxu1 %vm8478_vm2, %v8477_v18  ;;  %v537_v48 = vld [vmem:[%s10310_s0 + $0x68] sm:$0xff]  ;;  %v538_v50 = vld [vmem:[%s10310_s0 + $0x70] sm:$0xff]  ;;  %v6902_v51 = vld [vmem:[%s10310_s0 + $0x158] sm:$0xff] }
  0x59   : > { %v539_v52 = vld [vmem:[%s10310_s0 + $0x78] sm:$0xff]  ;;  %v6903_v53 = vld [vmem:[%s10310_s0 + $0x160] sm:$0xff]  ;;  %v6904_v55 = vld [vmem:[%s10310_s0 + $0x168] sm:$0xff] }
  0x5a   : > { %v540_v54 = vld [vmem:[%s10310_s0 + $0x80] sm:$0xff]  ;;  %v541_v56 = vld [vmem:[%s10310_s0 + $0x88] sm:$0xff]  ;;  %v6905_v57 = vld [vmem:[%s10310_s0 + $0x170] sm:$0xff] }
  0x5b   : > { %7672 = vmatmul.mubr.msk.f32.gmra.mxu0 %vm557_vm1, %v525_v24  ;;  %7767 = vmatmul.mubr.msk.f32.gmra.mxu1 %vm557_vm1, %v6889_v25  ;;  %v542_v58 = vld [vmem:[%s10310_s0 + $0x90] sm:$0xff]  ;;  %v6906_v59 = vld [vmem:[%s10310_s0 + $0x178] sm:$0xff]  ;;  %v6907_v61 = vld [vmem:[%s10310_s0 + $0x180] sm:$0xff] }
  0x5c   : > { %7674 = vmatprep.mubr.msk.f32.mxu0 %vm8478_vm2, %v8477_v18  ;;  %7769 = vmatprep.mubr.msk.f32.mxu1 %vm8478_vm2, %v8477_v18  ;;  %v543_v60 = vld [vmem:[%s10310_s0 + $0x98] sm:$0xff]  ;;  %v544_v62 = vld [vmem:[%s10310_s0 + $0xa0] sm:$0xff]  ;;  %v6908_v63 = vld [vmem:[%s10310_s0 + $0x188] sm:$0xff] }
  0x5d   : > { %v545_v0 = vld [vmem:[%s10310_s0 + $0xa8] sm:$0xff]  ;;  %v6909_v1 = vld [vmem:[%s10310_s0 + $0x190] sm:$0xff]  ;;  %v6910_v3 = vld [vmem:[%s10310_s0 + $0x198] sm:$0xff] }
  0x5e   : > { %v546_v2 = vld [vmem:[%s10310_s0 + $0xb0] sm:$0xff]  ;;  %v547_v4 = vld [vmem:[%s10310_s0 + $0xb8] sm:$0xff]  ;;  %v6911_v5 = vld [vmem:[%s10310_s0 + $0x1a0] sm:$0xff] }
  0x5f   : > { %7675 = vmatmul.mubr.msk.f32.gmra.mxu0 %vm557_vm1, %v526_v26  ;;  %7770 = vmatmul.mubr.msk.f32.gmra.mxu1 %vm557_vm1, %v6890_v27  ;;  %v548_v6 = vld [vmem:[%s10310_s0 + $0xc0] sm:$0xff]  ;;  %v6912_v7 = vld [vmem:[%s10310_s0 + $0x1a8] sm:$0xff]  ;;  %v6913_v9 = vld [vmem:[%s10310_s0 + $0x1b0] sm:$0xff] }
  0x60   : > { %7677 = vmatprep.mubr.msk.f32.mxu0 %vm8478_vm2, %v8477_v18  ;;  %7772 = vmatprep.mubr.msk.f32.mxu1 %vm8478_vm2, %v8477_v18  ;;  %v549_v8 = vld [vmem:[%s10310_s0 + $0xc8] sm:$0xff]  ;;  %v550_v10 = vld [vmem:[%s10310_s0 + $0xd0] sm:$0xff]  ;;  %v6914_v11 = vld [vmem:[%s10310_s0 + $0x1b8] sm:$0xff] }
  0x61   : > { %v551_v12 = vld [vmem:[%s10310_s0 + $0xd8] sm:$0xff]  ;;  %v6915_v13 = vld [vmem:[%s10310_s0 + $0x1c0] sm:$0xff]  ;;  %v6916_v15 = vld [vmem:[%s10310_s0 + $0x1c8] sm:$0x1] }
  0x62   : > { %v552_v14 = vld [vmem:[%s10310_s0 + $0xe0] sm:$0x1]  ;;  %vm1078_vm5 = vmand %vm1076_vm3, %vm1077_vm4 }
  0x63   : > { %7678 = vmatmul.mubr.msk.f32.gmra.mxu0 %vm557_vm1, %v527_v28  ;;  %7773 = vmatmul.mubr.msk.f32.gmra.mxu1 %vm557_vm1, %v6891_v29  ;;  %v9120_v16 = vld [vmem:[%s10312_s2] ss:$0 sm:$0xff] }
  0x64   : > { %7680 = vmatprep.mubr.msk.f32.mxu0 %vm8478_vm2, %v8477_v18  ;;  %7775 = vmatprep.mubr.msk.f32.mxu1 %vm8478_vm2, %v8477_v18 }
  0x67   : > { %7681 = vmatmul.mubr.msk.f32.gmra.mxu0 %vm557_vm1, %v528_v30  ;;  %7776 = vmatmul.mubr.msk.f32.gmra.mxu1 %vm557_vm1, %v6892_v31 }
  0x68   : > { %7683 = vmatprep.mubr.msk.f32.mxu0 %vm8478_vm2, %v8477_v18  ;;  %7778 = vmatprep.mubr.msk.f32.mxu1 %vm8478_vm2, %v8477_v18 }
  0x6b   : > { %7684 = vmatmul.mubr.msk.f32.gmra.mxu0 %vm557_vm1, %v529_v32  ;;  %7779 = vmatmul.mubr.msk.f32.gmra.mxu1 %vm557_vm1, %v6893_v33 }
  0x6c   : > { %7686 = vmatprep.mubr.msk.f32.mxu0 %vm8478_vm2, %v8477_v18  ;;  %7781 = vmatprep.mubr.msk.f32.mxu1 %vm8478_vm2, %v8477_v18 }
  0x6f   : > { %7687 = vmatmul.mubr.msk.f32.gmra.mxu0 %vm557_vm1, %v530_v34  ;;  %7782 = vmatmul.mubr.msk.f32.gmra.mxu1 %vm557_vm1, %v6894_v35 }
  0x70   : > { %7689 = vmatprep.mubr.msk.f32.mxu0 %vm8478_vm2, %v8477_v18  ;;  %7784 = vmatprep.mubr.msk.f32.mxu1 %vm8478_vm2, %v8477_v18 }
  0x73   : > { %7690 = vmatmul.mubr.msk.f32.gmra.mxu0 %vm557_vm1, %v531_v36  ;;  %7785 = vmatmul.mubr.msk.f32.gmra.mxu1 %vm557_vm1, %v6895_v37 }
  0x74   : > { %7692 = vmatprep.mubr.msk.f32.mxu0 %vm8478_vm2, %v8477_v18  ;;  %7787 = vmatprep.mubr.msk.f32.mxu1 %vm8478_vm2, %v8477_v18 }
  0x77   : > { %7693 = vmatmul.mubr.msk.f32.gmra.mxu0 %vm557_vm1, %v532_v38  ;;  %7788 = vmatmul.mubr.msk.f32.gmra.mxu1 %vm557_vm1, %v6896_v39 }
  0x78   : > { %7695 = vmatprep.mubr.msk.f32.mxu0 %vm8478_vm2, %v8477_v18  ;;  %7790 = vmatprep.mubr.msk.f32.mxu1 %vm8478_vm2, %v8477_v18 }
  0x7b   : > { %7696 = vmatmul.mubr.msk.f32.gmra.mxu0 %vm557_vm1, %v533_v40  ;;  %7791 = vmatmul.mubr.msk.f32.gmra.mxu1 %vm557_vm1, %v6897_v41 }
  0x7c   : > { %7698 = vmatprep.mubr.msk.f32.mxu0 %vm8478_vm2, %v8477_v18  ;;  %7793 = vmatprep.mubr.msk.f32.mxu1 %vm8478_vm2, %v8477_v18 }
  0x7f   : > { %7699 = vmatmul.mubr.msk.f32.gmra.mxu0 %vm557_vm1, %v534_v42  ;;  %7794 = vmatmul.mubr.msk.f32.gmra.mxu1 %vm557_vm1, %v6898_v43 }
  0x80   : > { %7701 = vmatprep.mubr.msk.f32.mxu0 %vm8478_vm2, %v8477_v18  ;;  %7796 = vmatprep.mubr.msk.f32.mxu1 %vm8478_vm2, %v8477_v18 }
  0x83   : > { %7702 = vmatmul.mubr.msk.f32.gmra.mxu0 %vm557_vm1, %v535_v44  ;;  %7797 = vmatmul.mubr.msk.f32.gmra.mxu1 %vm557_vm1, %v6899_v45 }
  0x84   : > { %7704 = vmatprep.mubr.msk.f32.mxu0 %vm8478_vm2, %v8477_v18  ;;  %7799 = vmatprep.mubr.msk.f32.mxu1 %vm8478_vm2, %v8477_v18 }
  0x87   : > { %7705 = vmatmul.mubr.msk.f32.gmra.mxu0 %vm557_vm1, %v536_v46  ;;  %7800 = vmatmul.mubr.msk.f32.gmra.mxu1 %vm557_vm1, %v6900_v47 }
  0x88   : > { %7707 = vmatprep.mubr.msk.f32.mxu0 %vm8478_vm2, %v8477_v18  ;;  %7802 = vmatprep.mubr.msk.f32.mxu1 %vm8478_vm2, %v8477_v18 }
  0x8b   : > { %7708 = vmatmul.mubr.msk.f32.gmra.mxu0 %vm557_vm1, %v537_v48  ;;  %7803 = vmatmul.mubr.msk.f32.gmra.mxu1 %vm557_vm1, %v6901_v49 }
  0x8c   : > { %7710 = vmatprep.mubr.msk.f32.mxu0 %vm8478_vm2, %v8477_v18  ;;  %7805 = vmatprep.mubr.msk.f32.mxu1 %vm8478_vm2, %v8477_v18 }
  0x8f   : > { %7711 = vmatmul.mubr.msk.f32.gmra.mxu0 %vm557_vm1, %v538_v50  ;;  %7806 = vmatmul.mubr.msk.f32.gmra.mxu1 %vm557_vm1, %v6902_v51 }
  0x90   : > { %7713 = vmatprep.mubr.msk.f32.mxu0 %vm8478_vm2, %v8477_v18  ;;  %7808 = vmatprep.mubr.msk.f32.mxu1 %vm8478_vm2, %v8477_v18 }
  0x93   : > { %7714 = vmatmul.mubr.msk.f32.gmra.mxu0 %vm557_vm1, %v539_v52  ;;  %7809 = vmatmul.mubr.msk.f32.gmra.mxu1 %vm557_vm1, %v6903_v53 }
  0x94   : > { %7716 = vmatprep.mubr.msk.f32.mxu0 %vm8478_vm2, %v8477_v18  ;;  %7811 = vmatprep.mubr.msk.f32.mxu1 %vm8478_vm2, %v8477_v18 }
  0x97   : > { %7717 = vmatmul.mubr.msk.f32.gmra.mxu0 %vm557_vm1, %v540_v54  ;;  %7812 = vmatmul.mubr.msk.f32.gmra.mxu1 %vm557_vm1, %v6904_v55 }
  0x98   : > { %7719 = vmatprep.mubr.msk.f32.mxu0 %vm8478_vm2, %v8477_v18  ;;  %7814 = vmatprep.mubr.msk.f32.mxu1 %vm8478_vm2, %v8477_v18 }
  0x9b   : > { %7720 = vmatmul.mubr.msk.f32.gmra.mxu0 %vm557_vm1, %v541_v56  ;;  %7815 = vmatmul.mubr.msk.f32.gmra.mxu1 %vm557_vm1, %v6905_v57 }
  0x9c   : > { %7722 = vmatprep.mubr.msk.f32.mxu0 %vm8478_vm2, %v8477_v18  ;;  %7817 = vmatprep.mubr.msk.f32.mxu1 %vm8478_vm2, %v8477_v18 }
  0x9f   : > { %7723 = vmatmul.mubr.msk.f32.gmra.mxu0 %vm557_vm1, %v542_v58  ;;  %7818 = vmatmul.mubr.msk.f32.gmra.mxu1 %vm557_vm1, %v6906_v59 }
  0xa0   : > { %7725 = vmatprep.mubr.msk.f32.mxu0 %vm8478_vm2, %v8477_v18  ;;  %7820 = vmatprep.mubr.msk.f32.mxu1 %vm8478_vm2, %v8477_v18 }
  0xa3   : > { %7726 = vmatmul.mubr.msk.f32.gmra.mxu0 %vm557_vm1, %v543_v60  ;;  %7821 = vmatmul.mubr.msk.f32.gmra.mxu1 %vm557_vm1, %v6907_v61 }
  0xa4   : > { %7728 = vmatprep.mubr.msk.f32.mxu0 %vm8478_vm2, %v8477_v18  ;;  %7823 = vmatprep.mubr.msk.f32.mxu1 %vm8478_vm2, %v8477_v18 }
  0xa7   : > { %7729 = vmatmul.mubr.msk.f32.gmra.mxu0 %vm557_vm1, %v544_v62  ;;  %7824 = vmatmul.mubr.msk.f32.gmra.mxu1 %vm557_vm1, %v6908_v63 }
  0xa8   : > { %7731 = vmatprep.mubr.msk.f32.mxu0 %vm8478_vm2, %v8477_v18  ;;  %7826 = vmatprep.mubr.msk.f32.mxu1 %vm8478_vm2, %v8477_v18 }
  0xab   : > { %7732 = vmatmul.mubr.msk.f32.gmra.mxu0 %vm557_vm1, %v545_v0  ;;  %7827 = vmatmul.mubr.msk.f32.gmra.mxu1 %vm557_vm1, %v6909_v1 }
  0xac   : > { %7734 = vmatprep.mubr.msk.f32.mxu0 %vm8478_vm2, %v8477_v18  ;;  %7829 = vmatprep.mubr.msk.f32.mxu1 %vm8478_vm2, %v8477_v18 }
  0xaf   : > { %7735 = vmatmul.mubr.msk.f32.gmra.mxu0 %vm557_vm1, %v546_v2  ;;  %7830 = vmatmul.mubr.msk.f32.gmra.mxu1 %vm557_vm1, %v6910_v3 }
  0xb0   : > { %7737 = vmatprep.mubr.msk.f32.mxu0 %vm8478_vm2, %v8477_v18  ;;  %7832 = vmatprep.mubr.msk.f32.mxu1 %vm8478_vm2, %v8477_v18 }
  0xb3   : > { %7738 = vmatmul.mubr.msk.f32.gmra.mxu0 %vm557_vm1, %v547_v4  ;;  %7833 = vmatmul.mubr.msk.f32.gmra.mxu1 %vm557_vm1, %v6911_v5 }
  0xb4   : > { %7740 = vmatprep.mubr.msk.f32.mxu0 %vm8478_vm2, %v8477_v18  ;;  %7835 = vmatprep.mubr.msk.f32.mxu1 %vm8478_vm2, %v8477_v18 }
  0xb7   : > { %7741 = vmatmul.mubr.msk.f32.gmra.mxu0 %vm557_vm1, %v548_v6  ;;  %7836 = vmatmul.mubr.msk.f32.gmra.mxu1 %vm557_vm1, %v6912_v7 }
  0xb8   : > { %7743 = vmatprep.mubr.msk.f32.mxu0 %vm8478_vm2, %v8477_v18  ;;  %7838 = vmatprep.mubr.msk.f32.mxu1 %vm8478_vm2, %v8477_v18 }
  0xbb   : > { %7744 = vmatmul.mubr.msk.f32.gmra.mxu0 %vm557_vm1, %v549_v8  ;;  %7839 = vmatmul.mubr.msk.f32.gmra.mxu1 %vm557_vm1, %v6913_v9 }
  0xbc   : > { %7746 = vmatprep.mubr.msk.f32.mxu0 %vm8478_vm2, %v8477_v18  ;;  %7841 = vmatprep.mubr.msk.f32.mxu1 %vm8478_vm2, %v8477_v18 }
  0xbf   : > { %7747 = vmatmul.mubr.msk.f32.gmra.mxu0 %vm557_vm1, %v550_v10  ;;  %7842 = vmatmul.mubr.msk.f32.gmra.mxu1 %vm557_vm1, %v6914_v11 }
  0xc0   : > { %7749 = vmatprep.mubr.msk.f32.mxu0 %vm8478_vm2, %v8477_v18  ;;  %7844 = vmatprep.mubr.msk.f32.mxu1 %vm8478_vm2, %v8477_v18 }
  0xc3   : > { %7750 = vmatmul.mubr.msk.f32.gmra.mxu0 %vm557_vm1, %v551_v12  ;;  %7845 = vmatmul.mubr.msk.f32.gmra.mxu1 %vm557_vm1, %v6915_v13 }
  0xc4   : > { %7752 = vmatprep.mubr.msk.f32.mxu0 %vm8478_vm2, %v8477_v18  ;;  %7847 = vmatprep.mubr.msk.f32.mxu1 %vm8478_vm2, %v8477_v18  ;;  %v9125_v18 = vld [vmem:[%s10313_s3] ss:$0 sm:$0xff] }
  0xc7   : > { %7753 = vmatmul.mubr.msk.f32.gmra.mxu0 %vm557_vm1, %v552_v14  ;;  %7848 = vmatmul.mubr.msk.f32.gmra.mxu1 %vm557_vm1, %v6916_v15 }
 0x117   : > { %v715_v17 = vpop.f32.mrf.mxu0  ;;  %v1272_v19 = vpop.f32.mrf.mxu1 }
 0x118   : > { %v1423_v20 = vmul.f32 %v9120_v16, %v1272_v19  ;;  %v866_v23 = vmul.f32 %v9120_v16, %v715_v17 }
 0x119   : > { %v7670_v21 = vpop.f32.mrf.mxu0  ;;  %v7765_v22 = vpop.f32.mrf.mxu1 }
 0x11a   : > { %v1459_v24 = vadd.f32 %v9125_v18, %v1423_v20  ;;  %v902_v31 = vadd.f32 %v9125_v18, %v866_v23 }
 0x11b   : > { %v720_v25 = vpop.f32.mrf.mxu0  ;;  %v1277_v26 = vpop.f32.mrf.mxu1 }
 0x11c   : > { %v7261_v27 = vpack.c.bf16 %v1459_v24, %v1459_v24  ;;  %v867_v28 = vmul.f32 %v9120_v16, %v720_v25  ;;  %v1424_v33 = vmul.f32 %v9120_v16, %v1277_v26 }
 0x11d   : > { %v7673_v29 = vpop.f32.mrf.mxu0  ;;  %v7768_v30 = vpop.f32.mrf.mxu1 }
 0x11e   : > { %1606 = vst [vmem:[#allocation2 + $0x74] sm:$0xf] %v7261_v27  ;;  %v903_v32 = vadd.f32 %v9125_v18, %v867_v28  ;;  %v1460_v40 = vadd.f32 %v9125_v18, %v1424_v33 }
 0x11f   : > { %v725_v34 = vpop.f32.mrf.mxu0  ;;  %v1282_v35 = vpop.f32.mrf.mxu1 }
 0x120   : > { %v7293_v36 = vpack.c.bf16 %v903_v32, %v902_v31  ;;  %v1425_v37 = vmul.f32 %v9120_v16, %v1282_v35  ;;  %v868_v41 = vmul.f32 %v9120_v16, %v725_v34 }
 0x121   : > { %v7676_v38 = vpop.f32.mrf.mxu0  ;;  %v7771_v39 = vpop.f32.mrf.mxu1 }
 0x122   : > { %7294 = vst [vmem:[#allocation2] sm:$0xff] %v7293_v36   ;;  %v1461_v42 = vadd.f32 %v9125_v18, %v1425_v37  ;;  %v904_v49 = vadd.f32 %v9125_v18, %v868_v41 }
 0x123   : > { %v730_v43 = vpop.f32.mrf.mxu0  ;;  %v1287_v44 = vpop.f32.mrf.mxu1 }
 0x124   : > { %v7363_v45 = vpack.c.bf16 %v1461_v42, %v1460_v40  ;;  %v869_v46 = vmul.f32 %v9120_v16, %v730_v43  ;;  %v1426_v51 = vmul.f32 %v9120_v16, %v1287_v44 }
 0x125   : > { %v7679_v47 = vpop.f32.mrf.mxu0  ;;  %v7774_v48 = vpop.f32.mrf.mxu1 }
 0x126   : > { %7438 = vst [vmem:[#allocation2 + $0x78] sm:$0xff] %v7363_v45   ;;  %v905_v50 = vadd.f32 %v9125_v18, %v869_v46  ;;  %v1462_v58 = vadd.f32 %v9125_v18, %v1426_v51 }
 0x127   : > { %v735_v52 = vpop.f32.mrf.mxu0  ;;  %v1292_v53 = vpop.f32.mrf.mxu1 }
 0x128   : > { %v7298_v54 = vpack.c.bf16 %v905_v50, %v904_v49  ;;  %v1427_v55 = vmul.f32 %v9120_v16, %v1292_v53  ;;  %v870_v59 = vmul.f32 %v9120_v16, %v735_v52 }
 0x129   : > { %v7682_v56 = vpop.f32.mrf.mxu0  ;;  %v7777_v57 = vpop.f32.mrf.mxu1 }
 0x12a   : > { %7425 = vst [vmem:[#allocation2 + $0x8] sm:$0xff] %v7298_v54   ;;  %v1463_v60 = vadd.f32 %v9125_v18, %v1427_v55  ;;  %v906_v3 = vadd.f32 %v9125_v18, %v870_v59 }
 0x12b   : > { %v740_v61 = vpop.f32.mrf.mxu0  ;;  %v1297_v62 = vpop.f32.mrf.mxu1 }
 0x12c   : > { %v7368_v63 = vpack.c.bf16 %v1463_v60, %v1462_v58  ;;  %v871_v0 = vmul.f32 %v9120_v16, %v740_v61  ;;  %v1428_v5 = vmul.f32 %v9120_v16, %v1297_v62 }
 0x12d   : > { %v7685_v1 = vpop.f32.mrf.mxu0  ;;  %v7780_v2 = vpop.f32.mrf.mxu1 }
 0x12e   : > { %7439 = vst [vmem:[#allocation2 + $0x80] sm:$0xff] %v7368_v63   ;;  %v907_v4 = vadd.f32 %v9125_v18, %v871_v0  ;;  %v1464_v12 = vadd.f32 %v9125_v18, %v1428_v5 }
 0x12f   : > { %v745_v6 = vpop.f32.mrf.mxu0  ;;  %v1302_v7 = vpop.f32.mrf.mxu1 }
 0x130   : > { %v7303_v8 = vpack.c.bf16 %v907_v4, %v906_v3  ;;  %v1429_v9 = vmul.f32 %v9120_v16, %v1302_v7  ;;  %v872_v13 = vmul.f32 %v9120_v16, %v745_v6 }
 0x131   : > { %v7688_v10 = vpop.f32.mrf.mxu0  ;;  %v7783_v11 = vpop.f32.mrf.mxu1 }
 0x132   : > { %7426 = vst [vmem:[#allocation2 + $0x10] sm:$0xff] %v7303_v8   ;;  %v1465_v14 = vadd.f32 %v9125_v18, %v1429_v9  ;;  %v908_v23 = vadd.f32 %v9125_v18, %v872_v13 }
 0x133   : > { %v750_v15 = vpop.f32.mrf.mxu0  ;;  %v1307_v17 = vpop.f32.mrf.mxu1 }
 0x134   : > { %v7373_v19 = vpack.c.bf16 %v1465_v14, %v1464_v12  ;;  %v873_v20 = vmul.f32 %v9120_v16, %v750_v15  ;;  %v1430_v25 = vmul.f32 %v9120_v16, %v1307_v17 }
 0x135   : > { %v7691_v21 = vpop.f32.mrf.mxu0  ;;  %v7786_v22 = vpop.f32.mrf.mxu1 }
 0x136   : > { %7440 = vst [vmem:[#allocation2 + $0x88] sm:$0xff] %v7373_v19   ;;  %v909_v24 = vadd.f32 %v9125_v18, %v873_v20  ;;  %v1466_v32 = vadd.f32 %v9125_v18, %v1430_v25 }
 0x137   : > { %v755_v26 = vpop.f32.mrf.mxu0  ;;  %v1312_v27 = vpop.f32.mrf.mxu1 }
 0x138   : > { %v7308_v28 = vpack.c.bf16 %v909_v24, %v908_v23  ;;  %v1431_v29 = vmul.f32 %v9120_v16, %v1312_v27  ;;  %v874_v33 = vmul.f32 %v9120_v16, %v755_v26 }
 0x139   : > { %v7694_v30 = vpop.f32.mrf.mxu0  ;;  %v7789_v31 = vpop.f32.mrf.mxu1 }
 0x13a   : > { %7427 = vst [vmem:[#allocation2 + $0x18] sm:$0xff] %v7308_v28   ;;  %v1467_v34 = vadd.f32 %v9125_v18, %v1431_v29  ;;  %v910_v41 = vadd.f32 %v9125_v18, %v874_v33 }
 0x13b   : > { %v760_v35 = vpop.f32.mrf.mxu0  ;;  %v1317_v36 = vpop.f32.mrf.mxu1 }
 0x13c   : > { %v7378_v37 = vpack.c.bf16 %v1467_v34, %v1466_v32  ;;  %v875_v38 = vmul.f32 %v9120_v16, %v760_v35  ;;  %v1432_v43 = vmul.f32 %v9120_v16, %v1317_v36 }
 0x13d   : > { %v7697_v39 = vpop.f32.mrf.mxu0  ;;  %v7792_v40 = vpop.f32.mrf.mxu1 }
 0x13e   : > { %7441 = vst [vmem:[#allocation2 + $0x90] sm:$0xff] %v7378_v37   ;;  %v911_v42 = vadd.f32 %v9125_v18, %v875_v38  ;;  %v1468_v50 = vadd.f32 %v9125_v18, %v1432_v43 }
 0x13f   : > { %v765_v44 = vpop.f32.mrf.mxu0  ;;  %v1322_v45 = vpop.f32.mrf.mxu1 }
 0x140   : > { %v7313_v46 = vpack.c.bf16 %v911_v42, %v910_v41  ;;  %v1433_v47 = vmul.f32 %v9120_v16, %v1322_v45  ;;  %v876_v51 = vmul.f32 %v9120_v16, %v765_v44 }
 0x141   : > { %v7700_v48 = vpop.f32.mrf.mxu0  ;;  %v7795_v49 = vpop.f32.mrf.mxu1 }
 0x142   : > { %7428 = vst [vmem:[#allocation2 + $0x20] sm:$0xff] %v7313_v46   ;;  %v1469_v52 = vadd.f32 %v9125_v18, %v1433_v47  ;;  %v912_v59 = vadd.f32 %v9125_v18, %v876_v51 }
 0x143   : > { %v770_v53 = vpop.f32.mrf.mxu0  ;;  %v1327_v54 = vpop.f32.mrf.mxu1 }
 0x144   : > { %v7383_v55 = vpack.c.bf16 %v1469_v52, %v1468_v50  ;;  %v877_v56 = vmul.f32 %v9120_v16, %v770_v53  ;;  %v1434_v61 = vmul.f32 %v9120_v16, %v1327_v54 }
 0x145   : > { %v7703_v57 = vpop.f32.mrf.mxu0  ;;  %v7798_v58 = vpop.f32.mrf.mxu1 }
 0x146   : > { %7442 = vst [vmem:[#allocation2 + $0x98] sm:$0xff] %v7383_v55   ;;  %v913_v60 = vadd.f32 %v9125_v18, %v877_v56  ;;  %v1470_v4 = vadd.f32 %v9125_v18, %v1434_v61 }
 0x147   : > { %v775_v62 = vpop.f32.mrf.mxu0  ;;  %v1332_v63 = vpop.f32.mrf.mxu1 }
 0x148   : > { %v7318_v0 = vpack.c.bf16 %v913_v60, %v912_v59  ;;  %v1435_v1 = vmul.f32 %v9120_v16, %v1332_v63  ;;  %v878_v5 = vmul.f32 %v9120_v16, %v775_v62 }
 0x149   : > { %v7706_v2 = vpop.f32.mrf.mxu0  ;;  %v7801_v3 = vpop.f32.mrf.mxu1 }
 0x14a   : > { %7429 = vst [vmem:[#allocation2 + $0x28] sm:$0xff] %v7318_v0   ;;  %v1471_v6 = vadd.f32 %v9125_v18, %v1435_v1  ;;  %v914_v13 = vadd.f32 %v9125_v18, %v878_v5 }
 0x14b   : > { %v780_v7 = vpop.f32.mrf.mxu0  ;;  %v1337_v8 = vpop.f32.mrf.mxu1 }
 0x14c   : > { %v7388_v9 = vpack.c.bf16 %v1471_v6, %v1470_v4  ;;  %v879_v10 = vmul.f32 %v9120_v16, %v780_v7  ;;  %v1436_v15 = vmul.f32 %v9120_v16, %v1337_v8 }
 0x14d   : > { %v7709_v11 = vpop.f32.mrf.mxu0  ;;  %v7804_v12 = vpop.f32.mrf.mxu1 }
 0x14e   : > { %7443 = vst [vmem:[#allocation2 + $0xa0] sm:$0xff] %v7388_v9   ;;  %v915_v14 = vadd.f32 %v9125_v18, %v879_v10  ;;  %v1472_v24 = vadd.f32 %v9125_v18, %v1436_v15 }
 0x14f   : > { %v785_v17 = vpop.f32.mrf.mxu0  ;;  %v1342_v19 = vpop.f32.mrf.mxu1 }
 0x150   : > { %v7323_v20 = vpack.c.bf16 %v915_v14, %v914_v13  ;;  %v1437_v21 = vmul.f32 %v9120_v16, %v1342_v19  ;;  %v880_v25 = vmul.f32 %v9120_v16, %v785_v17 }
 0x151   : > { %v7712_v22 = vpop.f32.mrf.mxu0  ;;  %v7807_v23 = vpop.f32.mrf.mxu1 }
 0x152   : > { %7430 = vst [vmem:[#allocation2 + $0x30] sm:$0xff] %v7323_v20   ;;  %v1473_v26 = vadd.f32 %v9125_v18, %v1437_v21  ;;  %v916_v33 = vadd.f32 %v9125_v18, %v880_v25 }
 0x153   : > { %v790_v27 = vpop.f32.mrf.mxu0  ;;  %v1347_v28 = vpop.f32.mrf.mxu1 }
 0x154   : > { %v7393_v29 = vpack.c.bf16 %v1473_v26, %v1472_v24  ;;  %v881_v30 = vmul.f32 %v9120_v16, %v790_v27  ;;  %v1438_v35 = vmul.f32 %v9120_v16, %v1347_v28 }
 0x155   : > { %v7715_v31 = vpop.f32.mrf.mxu0  ;;  %v7810_v32 = vpop.f32.mrf.mxu1 }
 0x156   : > { %7444 = vst [vmem:[#allocation2 + $0xa8] sm:$0xff] %v7393_v29   ;;  %v917_v34 = vadd.f32 %v9125_v18, %v881_v30  ;;  %v1474_v42 = vadd.f32 %v9125_v18, %v1438_v35 }
 0x157   : > { %v795_v36 = vpop.f32.mrf.mxu0  ;;  %v1352_v37 = vpop.f32.mrf.mxu1 }
 0x158   : > { %v7328_v38 = vpack.c.bf16 %v917_v34, %v916_v33  ;;  %v1439_v39 = vmul.f32 %v9120_v16, %v1352_v37  ;;  %v882_v43 = vmul.f32 %v9120_v16, %v795_v36 }
 0x159   : > { %v7718_v40 = vpop.f32.mrf.mxu0  ;;  %v7813_v41 = vpop.f32.mrf.mxu1 }
 0x15a   : > { %7431 = vst [vmem:[#allocation2 + $0x38] sm:$0xff] %v7328_v38   ;;  %v1475_v44 = vadd.f32 %v9125_v18, %v1439_v39  ;;  %v918_v51 = vadd.f32 %v9125_v18, %v882_v43 }
 0x15b   : > { %v800_v45 = vpop.f32.mrf.mxu0  ;;  %v1357_v46 = vpop.f32.mrf.mxu1 }
 0x15c   : > { %v7398_v47 = vpack.c.bf16 %v1475_v44, %v1474_v42  ;;  %v883_v48 = vmul.f32 %v9120_v16, %v800_v45  ;;  %v1440_v53 = vmul.f32 %v9120_v16, %v1357_v46 }
 0x15d   : > { %v7721_v49 = vpop.f32.mrf.mxu0  ;;  %v7816_v50 = vpop.f32.mrf.mxu1 }
 0x15e   : > { %7445 = vst [vmem:[#allocation2 + $0xb0] sm:$0xff] %v7398_v47   ;;  %v919_v52 = vadd.f32 %v9125_v18, %v883_v48  ;;  %v1476_v60 = vadd.f32 %v9125_v18, %v1440_v53 }
 0x15f   : > { %v805_v54 = vpop.f32.mrf.mxu0  ;;  %v1362_v55 = vpop.f32.mrf.mxu1 }
 0x160   : > { %v7333_v56 = vpack.c.bf16 %v919_v52, %v918_v51  ;;  %v1441_v57 = vmul.f32 %v9120_v16, %v1362_v55  ;;  %v884_v61 = vmul.f32 %v9120_v16, %v805_v54 }
 0x161   : > { %v7724_v58 = vpop.f32.mrf.mxu0  ;;  %v7819_v59 = vpop.f32.mrf.mxu1 }
 0x162   : > { %7432 = vst [vmem:[#allocation2 + $0x40] sm:$0xff] %v7333_v56   ;;  %v1477_v62 = vadd.f32 %v9125_v18, %v1441_v57  ;;  %v920_v5 = vadd.f32 %v9125_v18, %v884_v61 }
 0x163   : > { %v810_v63 = vpop.f32.mrf.mxu0  ;;  %v1367_v0 = vpop.f32.mrf.mxu1 }
 0x164   : > { %v7403_v1 = vpack.c.bf16 %v1477_v62, %v1476_v60  ;;  %v885_v2 = vmul.f32 %v9120_v16, %v810_v63  ;;  %v1442_v7 = vmul.f32 %v9120_v16, %v1367_v0 }
 0x165   : > { %v7727_v3 = vpop.f32.mrf.mxu0  ;;  %v7822_v4 = vpop.f32.mrf.mxu1 }
 0x166   : > { %7446 = vst [vmem:[#allocation2 + $0xb8] sm:$0xff] %v7403_v1   ;;  %v921_v6 = vadd.f32 %v9125_v18, %v885_v2  ;;  %v1478_v14 = vadd.f32 %v9125_v18, %v1442_v7 }
 0x167   : > { %v815_v8 = vpop.f32.mrf.mxu0  ;;  %v1372_v9 = vpop.f32.mrf.mxu1 }
 0x168   : > { %v7338_v10 = vpack.c.bf16 %v921_v6, %v920_v5  ;;  %v1443_v11 = vmul.f32 %v9120_v16, %v1372_v9  ;;  %v886_v15 = vmul.f32 %v9120_v16, %v815_v8 }
 0x169   : > { %v7730_v12 = vpop.f32.mrf.mxu0  ;;  %v7825_v13 = vpop.f32.mrf.mxu1 }
 0x16a   : > { %7433 = vst [vmem:[#allocation2 + $0x48] sm:$0xff] %v7338_v10   ;;  %v1479_v17 = vadd.f32 %v9125_v18, %v1443_v11  ;;  %v922_v25 = vadd.f32 %v9125_v18, %v886_v15 }
 0x16b   : > { %v820_v19 = vpop.f32.mrf.mxu0  ;;  %v1377_v20 = vpop.f32.mrf.mxu1 }
 0x16c   : > { %v7408_v21 = vpack.c.bf16 %v1479_v17, %v1478_v14  ;;  %v887_v22 = vmul.f32 %v9120_v16, %v820_v19  ;;  %v1444_v27 = vmul.f32 %v9120_v16, %v1377_v20 }
 0x16d   : > { %v7733_v23 = vpop.f32.mrf.mxu0  ;;  %v7828_v24 = vpop.f32.mrf.mxu1 }
 0x16e   : > { %7447 = vst [vmem:[#allocation2 + $0xc0] sm:$0xff] %v7408_v21   ;;  %v923_v26 = vadd.f32 %v9125_v18, %v887_v22  ;;  %v1480_v34 = vadd.f32 %v9125_v18, %v1444_v27 }
 0x16f   : > { %v825_v28 = vpop.f32.mrf.mxu0  ;;  %v1382_v29 = vpop.f32.mrf.mxu1 }
 0x170   : > { %v7343_v30 = vpack.c.bf16 %v923_v26, %v922_v25  ;;  %v1445_v31 = vmul.f32 %v9120_v16, %v1382_v29  ;;  %v888_v35 = vmul.f32 %v9120_v16, %v825_v28 }
 0x171   : > { %v7736_v32 = vpop.f32.mrf.mxu0  ;;  %v7831_v33 = vpop.f32.mrf.mxu1 }
 0x172   : > { %7434 = vst [vmem:[#allocation2 + $0x50] sm:$0xff] %v7343_v30   ;;  %v1481_v36 = vadd.f32 %v9125_v18, %v1445_v31  ;;  %v924_v43 = vadd.f32 %v9125_v18, %v888_v35  ;;  %v1079_v31 = vld [vmem:[#allocation2 + $0x70] sm:$0x1]  ;;  %v1634_v32 = vld [vmem:[#allocation2 + $0xe4] sm:$0x1] }
 0x173   : > { %v830_v37 = vpop.f32.mrf.mxu0  ;;  %v1387_v38 = vpop.f32.mrf.mxu1 }
 0x174   : > { %v7413_v39 = vpack.c.bf16 %v1481_v36, %v1480_v34  ;;  %v889_v40 = vmul.f32 %v9120_v16, %v830_v37  ;;  %v1446_v45 = vmul.f32 %v9120_v16, %v1387_v38 }
 0x175   : > { %v7739_v41 = vpop.f32.mrf.mxu0  ;;  %v7834_v42 = vpop.f32.mrf.mxu1 }
 0x176   : > { %7448 = vst [vmem:[#allocation2 + $0xc8] sm:$0xff] %v7413_v39   ;;  %v925_v44 = vadd.f32 %v9125_v18, %v889_v40  ;;  %v1482_v52 = vadd.f32 %v9125_v18, %v1446_v45 }
 0x177   : > { %v835_v46 = vpop.f32.mrf.mxu0  ;;  %v1392_v47 = vpop.f32.mrf.mxu1 }
 0x178   : > { %v7348_v48 = vpack.c.bf16 %v925_v44, %v924_v43  ;;  %v1447_v49 = vmul.f32 %v9120_v16, %v1392_v47  ;;  %v890_v53 = vmul.f32 %v9120_v16, %v835_v46 }
 0x179   : > { %v7742_v50 = vpop.f32.mrf.mxu0  ;;  %v7837_v51 = vpop.f32.mrf.mxu1 }
 0x17a   : > { %7435 = vst [vmem:[#allocation2 + $0x58] sm:$0xff] %v7348_v48   ;;  %v1483_v54 = vadd.f32 %v9125_v18, %v1447_v49  ;;  %v926_v61 = vadd.f32 %v9125_v18, %v890_v53 }
 0x17b   : > { %v840_v55 = vpop.f32.mrf.mxu0  ;;  %v1397_v56 = vpop.f32.mrf.mxu1 }
 0x17c   : > { %v7418_v57 = vpack.c.bf16 %v1483_v54, %v1482_v52  ;;  %v891_v58 = vmul.f32 %v9120_v16, %v840_v55  ;;  %v1448_v63 = vmul.f32 %v9120_v16, %v1397_v56 }
 0x17d   : > { %v7745_v59 = vpop.f32.mrf.mxu0  ;;  %v7840_v60 = vpop.f32.mrf.mxu1 }
 0x17e   : > { %7449 = vst [vmem:[#allocation2 + $0xd0] sm:$0xff] %v7418_v57   ;;  %v927_v62 = vadd.f32 %v9125_v18, %v891_v58  ;;  %v1484_v6 = vadd.f32 %v9125_v18, %v1448_v63 }
 0x17f   : > { %v845_v0 = vpop.f32.mrf.mxu0  ;;  %v1402_v1 = vpop.f32.mrf.mxu1 }
 0x180   : > { %v7353_v2 = vpack.c.bf16 %v927_v62, %v926_v61  ;;  %v1449_v3 = vmul.f32 %v9120_v16, %v1402_v1  ;;  %v892_v7 = vmul.f32 %v9120_v16, %v845_v0 }
 0x181   : > { %v7748_v4 = vpop.f32.mrf.mxu0  ;;  %v7843_v5 = vpop.f32.mrf.mxu1 }
 0x182   : > { %7436 = vst [vmem:[#allocation2 + $0x60] sm:$0xff] %v7353_v2   ;;  %v1485_v8 = vadd.f32 %v9125_v18, %v1449_v3  ;;  %v928_v17 = vadd.f32 %v9125_v18, %v892_v7 }
 0x183   : > { %v850_v9 = vpop.f32.mrf.mxu0  ;;  %v1407_v10 = vpop.f32.mrf.mxu1 }
 0x184   : > { %v7423_v11 = vpack.c.bf16 %v1485_v8, %v1484_v6  ;;  %v893_v12 = vmul.f32 %v9120_v16, %v850_v9  ;;  %v1450_v13 = vmul.f32 %v9120_v16, %v1407_v10 }
 0x185   : > { %v7751_v14 = vpop.f32.mrf.mxu0  ;;  %v7846_v15 = vpop.f32.mrf.mxu1 }
 0x186   : > { %7450 = vst [vmem:[#allocation2 + $0xd8] sm:$0xff] %v7423_v11   ;;  %v929_v19 = vadd.f32 %v9125_v18, %v893_v12  ;;  %v1486_v20 = vadd.f32 %v9125_v18, %v1450_v13 }
 0x187   : > { %v855_v21 = vpop.f32.mrf.mxu0  ;;  %v1412_v22 = vpop.f32.mrf.mxu1 }
 0x188   : > { %v7358_v23 = vpack.c.bf16 %v929_v19, %v928_v17  ;;  %v7288_v24 = vpack.c.bf16 %v1486_v20, %v1486_v20  ;;  %v894_v25 = vmul.f32 %v9120_v16, %v855_v21  ;;  %v1451_v26 = vmul.f32 %v9120_v16, %v1412_v22 }
 0x189   : > { %v7754_v27 = vpop.f32.mrf.mxu0  ;;  %v7849_v28 = vpop.f32.mrf.mxu1 }
 0x18a   : > { %7437 = vst [vmem:[#allocation2 + $0x68] sm:$0xff] %v7358_v23   ;;  %1633 = vst [vmem:[#allocation2 + $0xe0] sm:$0xf] %v7288_v24  ;;  %v930_v29 = vadd.f32 %v9125_v18, %v894_v25  ;;  %v1487_v30 = vadd.f32 %v9125_v18, %v1451_v26 }
 0x18c   : > { %v7260_v33 = vpack.c.bf16 %v930_v29, %v930_v29  ;;  %v7289_v34 = vpack.c.bf16 %v1487_v30, %v1487_v30 }
 0x18e   : > { %v1080_v35 = vsel %vm1078_vm5, %v7260_v33, %v1079_v31  ;;  %v1635_v36 = vsel %vm1078_vm5, %v7289_v34, %v1634_v32 }
 0x18f   : > { %1081 = vst [vmem:[#allocation2 + $0x70] sm:$0x1] %v1080_v35  ;;  %1636 = vst [vmem:[#allocation2 + $0xe4] sm:$0x1] %v1635_v36 }
 0x190 PF: > { %v9244_v16 = vld [vmem:[%s8742_s9 + $0x1fc] ss:$36 sps:$4 sm:$0xff]   ;;  %v8080_v18 = vld [vmem:[%s8742_s9 + $0x204] ss:$36 sps:$4 sm:$0xff]   ;;  %v10319_v37 = vmov 0   ;;  %v9297_v10 = vld [vmem:[#allocation2 + $0x8] sm:$0xff]  }
 0x191   : > { %2234 = vmatprep.mubr.bf16.mxu0 %v10319_v37  ;;  %2415 = vmatprep.mubr.bf16.mxu1 %v10319_v37  ;;  %v8082_v38 = vld [vmem:[%s8742_s9 + $0x1f8] ss:$36 sps:$4 sm:$0xff]   ;;  %v8083_v39 = vld [vmem:[%s8742_s9 + $0x200] ss:$36 sps:$4 sm:$0xff]   ;;  %v8088_v42 = vld [vmem:[%s8742_s9 + $0x1b0] ss:$36 sps:$4 sm:$0xff]  }
 0x192   : > { %2202 = vmatprep.subr.bf16.mxu0 %v9244_v16  ;;  %2383 = vmatprep.subr.bf16.mxu1 %v8080_v18  ;;  %v8084_v40 = vld [vmem:[%s8742_s9 + $0x1b4] ss:$36 sps:$4 sm:$0xff]   ;;  %v8086_v41 = vld [vmem:[%s8742_s9 + $0x1bc] ss:$36 sps:$4 sm:$0xff]   ;;  %v8090_v44 = vld [vmem:[%s8742_s9 + $0x16c] ss:$36 sps:$4 sm:$0xff]  }
 0x193   : > { %2203 = vmatpush1.bf16.msra.mxu0 %v8082_v38  ;;  %2384 = vmatpush1.bf16.msra.mxu1 %v8083_v39  ;;  %v8089_v43 = vld [vmem:[%s8742_s9 + $0x1b8] ss:$36 sps:$4 sm:$0xff]   ;;  %v8094_v46 = vld [vmem:[%s8742_s9 + $0x168] ss:$36 sps:$4 sm:$0xff]   ;;  %v8095_v47 = vld [vmem:[%s8742_s9 + $0x170] ss:$36 sps:$4 sm:$0xff]  }
 0x194   : > { %2204 = vmatprep.subr.bf16.mxu0 %v8084_v40  ;;  %2385 = vmatprep.subr.bf16.mxu1 %v8086_v41  ;;  %v8092_v45 = vld [vmem:[%s8742_s9 + $0x174] ss:$36 sps:$4 sm:$0xff]   ;;  %v8096_v48 = vld [vmem:[%s8742_s9 + $0x124] ss:$36 sps:$4 sm:$0xff]   ;;  %v8098_v49 = vld [vmem:[%s8742_s9 + $0x12c] ss:$36 sps:$4 sm:$0xff]  }
 0x195   : > { %v8100_v50 = vld [vmem:[%s8742_s9 + $0x120] ss:$36 sps:$4 sm:$0xff]   ;;  %v8101_v51 = vld [vmem:[%s8742_s9 + $0x128] ss:$36 sps:$4 sm:$0xff]   ;;  %v8106_v54 = vld [vmem:[%s8742_s9 + $0xd8] ss:$36 sps:$4 sm:$0xff]  }
 0x196   : > { %v8102_v52 = vld [vmem:[%s8742_s9 + $0xdc] ss:$36 sps:$4 sm:$0xff]   ;;  %v8104_v53 = vld [vmem:[%s8742_s9 + $0xe4] ss:$36 sps:$4 sm:$0xff]   ;;  %v8108_v56 = vld [vmem:[%s8742_s9 + $0x94] ss:$36 sps:$4 sm:$0xff]  }
 0x197   : > { %2205 = vmatpush1.bf16.msra.mxu0 %v8088_v42  ;;  %2386 = vmatpush1.bf16.msra.mxu1 %v8089_v43  ;;  %v8107_v55 = vld [vmem:[%s8742_s9 + $0xe0] ss:$36 sps:$4 sm:$0xff]   ;;  %v8112_v58 = vld [vmem:[%s8742_s9 + $0x90] ss:$36 sps:$4 sm:$0xff]   ;;  %v8113_v59 = vld [vmem:[%s8742_s9 + $0x98] ss:$36 sps:$4 sm:$0xff]  }
 0x198   : > { %2206 = vmatprep.subr.bf16.mxu0 %v8090_v44  ;;  %2387 = vmatprep.subr.bf16.mxu1 %v8092_v45  ;;  %v8110_v57 = vld [vmem:[%s8742_s9 + $0x9c] ss:$36 sps:$4 sm:$0xff]   ;;  %v8114_v60 = vld [vmem:[%s8742_s9 + $0x4c] ss:$36 sps:$4 sm:$0xff]   ;;  %v8116_v61 = vld [vmem:[%s8742_s9 + $0x54] ss:$36 sps:$4 sm:$0xff]  }
 0x199   : > { %v8118_v62 = vld [vmem:[%s8742_s9 + $0x48] ss:$36 sps:$4 sm:$0xff]   ;;  %v8119_v63 = vld [vmem:[%s8742_s9 + $0x50] ss:$36 sps:$4 sm:$0xff]   ;;  %v9281_v2 = vld [vmem:[%s8742_s9] ss:$36 sps:$4 sm:$0xff]  }
 0x19a   : > { %v9277_v0 = vld [vmem:[%s8742_s9 + $0x4] ss:$36 sps:$4 sm:$0xff]   ;;  %v8122_v1 = vld [vmem:[%s8742_s9 + $0xc] ss:$36 sps:$4 sm:$0xff]   ;;  %v8138_v9 = vld [vmem:[%s8742_s9 + $0x17c] ss:$36 sps:$4 sm:$0xff]  }
 0x19b   : > { %2207 = vmatpush1.bf16.msra.mxu0 %v8094_v46  ;;  %2388 = vmatpush1.bf16.msra.mxu1 %v8095_v47  ;;  %v8125_v3 = vld [vmem:[%s8742_s9 + $0x8] ss:$36 sps:$4 sm:$0xff]   ;;  %v8131_v8 = vld [vmem:[%s8742_s9 + $0x1c0] ss:$36 sps:$4 sm:$0xff]   ;;  %v8136_v11 = vld [vmem:[%s8742_s9 + $0x178] ss:$36 sps:$4 sm:$0xff]  }
 0x19c   : > { %2208 = vmatprep.subr.bf16.mxu0 %v8096_v48  ;;  %2389 = vmatprep.subr.bf16.mxu1 %v8098_v49  ;;  %v8129_v4 = vld [vmem:[%s8742_s9 + $0x20c] ss:$36 sps:$4 sm:$0xff]   ;;  %v9286_v5 = vld [vmem:[#allocation2] sm:$0xff]   ;;  %v8156_v12 = vld [vmem:[%s8742_s9 + $0x214] ss:$36 sps:$4 sm:$0xff]   ;;  %v10321_v42 = vmov 0.0  }
 0x19d   : > { %v8127_v6 = vld [vmem:[%s8742_s9 + $0x208] ss:$36 sps:$4 sm:$0xff]   ;;  %v8154_v13 = vld [vmem:[%s8742_s9 + $0x210] ss:$36 sps:$4 sm:$0xff]   ;;  %v8166_v25 = vld [vmem:[%s8742_s9 + $0x180] ss:$36 sps:$4 sm:$0xff]  }
 0x19e   : > { %v8133_v7 = vld [vmem:[%s8742_s9 + $0x1c4] ss:$36 sps:$4 sm:$0xff]   ;;  %v8143_v14 = vld [vmem:[%s8742_s9 + $0x134] ss:$36 sps:$4 sm:$0xff]   ;;  %v8164_v19 = vld [vmem:[%s8742_s9 + $0x1cc] ss:$36 sps:$4 sm:$0xff]  }
 0x19f   : > { %2209 = vmatpush1.bf16.msra.mxu0 %v8100_v50  ;;  %2390 = vmatpush1.bf16.msra.mxu1 %v8101_v51  ;;  %v8141_v15 = vld [vmem:[%s8742_s9 + $0x130] ss:$36 sps:$4 sm:$0xff]   ;;  %v8162_v17 = vld [vmem:[%s8742_s9 + $0x1c8] ss:$36 sps:$4 sm:$0xff]   ;;  %v8171_v26 = vld [vmem:[%s8742_s9 + $0x13c] ss:$36 sps:$4 sm:$0xff]  }
 0x1a0   : > { %2210 = vmatprep.subr.bf16.mxu0 %v8102_v52  ;;  %2391 = vmatprep.subr.bf16.mxu1 %v8104_v53  ;;  %v8148_v20 = vld [vmem:[%s8742_s9 + $0xec] ss:$36 sps:$4 sm:$0xff]   ;;  %v9311_v21 = vld [vmem:[#allocation2 + $0x10] sm:$0xff]   ;;  %v8168_v22 = vld [vmem:[%s8742_s9 + $0x184] ss:$36 sps:$4 sm:$0xff]   ;;  %vm8481_vm6 = vmmov 0  }
 0x1a1   : > { %v8146_v23 = vld [vmem:[%s8742_s9 + $0xe8] ss:$36 sps:$4 sm:$0xff]   ;;  %v8151_v27 = vld [vmem:[%s8742_s9 + $0xa0] ss:$36 sps:$4 sm:$0xff]   ;;  %v8169_v29 = vld [vmem:[%s8742_s9 + $0x138] ss:$36 sps:$4 sm:$0xff]  }
 0x1a2   : > { %v8153_v24 = vld [vmem:[%s8742_s9 + $0xa4] ss:$36 sps:$4 sm:$0xff]   ;;  %v8161_v28 = vld [vmem:[%s8742_s9 + $0x5c] ss:$36 sps:$4 sm:$0xff]   ;;  %v8175_v30 = vld [vmem:[%s8742_s9 + $0xf4] ss:$36 sps:$4 sm:$0xff]  }
 0x1a3   : > { %2211 = vmatpush1.bf16.msra.mxu0 %v8106_v54  ;;  %2392 = vmatpush1.bf16.msra.mxu1 %v8107_v55  ;;  %v9326_v31 = vld [vmem:[#allocation2 + $0x18] sm:$0xff]   ;;  %v8173_v33 = vld [vmem:[%s8742_s9 + $0xf0] ss:$36 sps:$4 sm:$0xff]   ;;  %v8179_v18 = vld [vmem:[%s8742_s9 + $0xa8] ss:$36 sps:$4 sm:$0xff]   ;;  %vm3366_vm7 = vcmask 1040384  }
 0x1a4   : > { %2212 = vmatprep.subr.bf16.mxu0 %v8108_v56  ;;  %2393 = vmatprep.subr.bf16.mxu1 %v8110_v57  ;;  %v8159_v32 = vld [vmem:[%s8742_s9 + $0x58] ss:$36 sps:$4 sm:$0xff]   ;;  %v8181_v35 = vld [vmem:[%s8742_s9 + $0xac] ss:$36 sps:$4 sm:$0xff]   ;;  %v8185_v38 = vld [vmem:[%s8742_s9 + $0x64] ss:$36 sps:$4 sm:$0xff]  }
 0x1a5   : > { %v8178_v34 = vld [vmem:[%s8742_s9 + $0x14] ss:$36 sps:$4 sm:$0xff]   ;;  %v9339_v39 = vld [vmem:[#allocation2 + $0x20] sm:$0xff]   ;;  %v8188_v41 = vld [vmem:[%s8742_s9 + $0x1c] ss:$36 sps:$4 sm:$0xff]   ;;  %p7225_p11 = scmp.ne.s32.totalorder %s8467_s26, 3 }
 0x1a6   : > { %v8176_v36 = vld [vmem:[%s8742_s9 + $0x10] ss:$36 sps:$4 sm:$0xff]   ;;  %v8183_v40 = vld [vmem:[%s8742_s9 + $0x60] ss:$36 sps:$4 sm:$0xff]   ;;  %v8186_v43 = vld [vmem:[%s8742_s9 + $0x18] ss:$36 sps:$4 sm:$0xff]  }
 0x1a7   : > { %2213 = vmatpush1.bf16.msra.mxu0 %v8112_v58  ;;  %2394 = vmatpush1.bf16.msra.mxu1 %v8113_v59  ;;  %v9349_v44 = vld [vmem:[#allocation2 + $0x28] sm:$0xff]   ;;  %v9356_v45 = vld [vmem:[#allocation2 + $0x30] sm:$0xff]   ;;  %v9362_v46 = vld [vmem:[#allocation2 + $0x38] sm:$0xff]  }
 0x1a8   : > { %2214 = vmatprep.subr.bf16.mxu0 %v8114_v60  ;;  %2395 = vmatprep.subr.bf16.mxu1 %v8116_v61  ;;  %v9374_v47 = vld [vmem:[#allocation2 + $0x48] sm:$0xff]   ;;  %v9380_v48 = vld [vmem:[#allocation2 + $0x50] sm:$0xff]   ;;  %v9386_v49 = vld [vmem:[#allocation2 + $0x58] sm:$0xff]  }
 0x1a9   : > { %v9392_v50 = vld [vmem:[#allocation2 + $0x60] sm:$0xff]   ;;  %v9398_v51 = vld [vmem:[#allocation2 + $0x68] sm:$0xff]   ;;  %v9404_v52 = vld [vmem:[#allocation2 + $0x70] ss:$0 sps:$4 sm:$0x11]  }
 0x1aa   : > { %v8189_v53 = vld [vmem:[%s8742_s9 + $0x218] ss:$36 sps:$4 sm:$0xff]   ;;  %v8190_v54 = vld [vmem:[%s8742_s9 + $0x1d0] ss:$36 sps:$4 sm:$0xff]   ;;  %v8191_v57 = vld [vmem:[%s8742_s9 + $0x188] ss:$36 sps:$4 sm:$0xff]  }
 0x1ab   : > { %2215 = vmatpush1.bf16.msra.mxu0 %v8118_v62  ;;  %2396 = vmatpush1.bf16.msra.mxu1 %v8119_v63  ;;  %v8366_v55 = vld [vmem:[%s8742_s9 + $0x1f8] ss:$36 sps:$4 sm:$0xff]   ;;  %v8368_v58 = vld [vmem:[%s8742_s9 + $0x1b0] ss:$36 sps:$4 sm:$0xff]   ;;  %v8192_v59 = vld [vmem:[%s8742_s9 + $0x140] ss:$36 sps:$4 sm:$0xff]  }
 0x1ac   : > { %2216 = vmatprep.subr.bf16.mxu0 %v9277_v0  ;;  %2397 = vmatprep.subr.bf16.mxu1 %v8122_v1  ;;  %v8367_v56 = vld [vmem:[%s8742_s9 + $0x1b4] ss:$36 sps:$4 sm:$0xff]   ;;  %v8369_v60 = vld [vmem:[%s8742_s9 + $0x16c] ss:$36 sps:$4 sm:$0xff]   ;;  %v8371_v62 = vld [vmem:[%s8742_s9 + $0x124] ss:$36 sps:$4 sm:$0xff]  }
 0x1ad   : > { %v8370_v61 = vld [vmem:[%s8742_s9 + $0x168] ss:$36 sps:$4 sm:$0xff]   ;;  %v8193_v63 = vld [vmem:[%s8742_s9 + $0xf8] ss:$36 sps:$4 sm:$0xff]   ;;  %v8372_v1 = vld [vmem:[%s8742_s9 + $0x120] ss:$36 sps:$4 sm:$0xff]  }
 0x1af   : > { %2217 = vmatpush1.bf16.msra.mxu0 %v9281_v2  ;;  %2398 = vmatpush1.bf16.msra.mxu1 %v8125_v3  ;;  %v8194_v3 = vld [vmem:[%s8742_s9 + $0xb0] ss:$36 sps:$4 sm:$0xff]  }
 0x1b0   : > { %2564 = vmatprep.subr.bf16.mxu0 %v8129_v4  ;;  %2745 = vmatprep.subr.bf16.mxu1 %v8156_v12  ;;  %v8373_v4 = vld [vmem:[%s8742_s9 + $0xdc] ss:$36 sps:$4 sm:$0xff]   ;;  %v8200_v12 = vld [vmem:[%s8742_s9 + $0x204] ss:$36 sps:$4 sm:$0xff]  }
 0x1b2   : > { %2235 = vmatmul.mubr.bf16.vlgmr.msra.gmra.mxu0 %v9286_v5  ;;  %2416 = vmatmul.mubr.bf16.vlgmr.msra.gmra.mxu1 %v9286_v5 }
 0x1b3   : > { %2565 = vmatpush1.bf16.msra.mxu0 %v8127_v6  ;;  %2244 = vmatprep.mubr.bf16.mxu0 %v10319_v37  ;;  %v8375_v6 = vld [vmem:[%s8742_s9 + $0x94] ss:$36 sps:$4 sm:$0xff]  }
 0x1b4   : > { %2425 = vmatprep.mubr.bf16.mxu1 %v10319_v37  ;;  %2566 = vmatprep.subr.bf16.mxu0 %v8133_v7  ;;  %v8195_v7 = vld [vmem:[%s8742_s9 + $0x68] ss:$36 sps:$4 sm:$0xff]  }
 0x1b5   : > { %2746 = vmatpush1.bf16.msra.mxu1 %v8154_v13 }
 0x1b6   : > { %2747 = vmatprep.subr.bf16.mxu1 %v8164_v19 }
 0x1b7   : > { %2567 = vmatpush1.bf16.msra.mxu0 %v8131_v8  ;;  %v8376_v8 = vld [vmem:[%s8742_s9 + $0x90] ss:$36 sps:$4 sm:$0xff]  }
 0x1b8   : > { %2568 = vmatprep.subr.bf16.mxu0 %v8138_v9  ;;  %v8196_v9 = vld [vmem:[%s8742_s9 + $0x20] ss:$36 sps:$4 sm:$0xff]  }
 0x1b9   : > { %2748 = vmatpush1.bf16.msra.mxu1 %v8162_v17 }
 0x1ba   : > { %2245 = vmatmul.mubr.bf16.gmra.mxu0 %v9297_v10  ;;  %2426 = vmatmul.mubr.bf16.gmra.mxu1 %v9297_v10 }
 0x1bb   : > { %2254 = vmatprep.mubr.bf16.mxu0 %v10319_v37  ;;  %2435 = vmatprep.mubr.bf16.mxu1 %v10319_v37 }
 0x1bc   : > { %2569 = vmatpush1.bf16.msra.mxu0 %v8136_v11  ;;  %2749 = vmatprep.subr.bf16.mxu1 %v8168_v22  ;;  %v8378_v11 = vld [vmem:[%s8742_s9 + $0x48] ss:$36 sps:$4 sm:$0xff]  }
 0x1bd   : > { %2570 = vmatprep.subr.bf16.mxu0 %v8143_v14  ;;  %2750 = vmatpush1.bf16.msra.mxu1 %v8166_v25 }
 0x1be   : > { %2751 = vmatprep.subr.bf16.mxu1 %v8171_v26 }
 0x1c0   : > { %2571 = vmatpush1.bf16.msra.mxu0 %v8141_v15 }
 0x1c1   : > { %2572 = vmatprep.subr.bf16.mxu0 %v8148_v20  ;;  %2752 = vmatpush1.bf16.msra.mxu1 %v8169_v29 }
 0x1c2   : > { %2255 = vmatmul.mubr.bf16.gmra.mxu0 %v9311_v21  ;;  %2436 = vmatmul.mubr.bf16.gmra.mxu1 %v9311_v21 }
 0x1c3   : > { %2264 = vmatprep.mubr.bf16.mxu0 %v10319_v37  ;;  %2445 = vmatprep.mubr.bf16.mxu1 %v10319_v37 }
 0x1c4   : > { %2573 = vmatpush1.bf16.msra.mxu0 %v8146_v23  ;;  %2753 = vmatprep.subr.bf16.mxu1 %v8175_v30 }
 0x1c5   : > { %2574 = vmatprep.subr.bf16.mxu0 %v8153_v24  ;;  %2754 = vmatpush1.bf16.msra.mxu1 %v8173_v33 }
 0x1c6   : > { %2755 = vmatprep.subr.bf16.mxu1 %v8181_v35 }
 0x1c8   : > { %2575 = vmatpush1.bf16.msra.mxu0 %v8151_v27  ;;  %v8227_v27 = vld [vmem:[%s8742_s9 + $0x20c] ss:$36 sps:$4 sm:$0xff]  }
 0x1c9   : > { %2576 = vmatprep.subr.bf16.mxu0 %v8161_v28  ;;  %2756 = vmatpush1.bf16.msra.mxu1 %v8179_v18 }
 0x1ca   : > { %2265 = vmatmul.mubr.bf16.gmra.mxu0 %v9326_v31  ;;  %2446 = vmatmul.mubr.bf16.gmra.mxu1 %v9326_v31 }
 0x1cb   : > { %2274 = vmatprep.mubr.bf16.mxu0 %v10319_v37  ;;  %2455 = vmatprep.mubr.bf16.mxu1 %v10319_v37 }
 0x1cc   : > { %2577 = vmatpush1.bf16.msra.mxu0 %v8159_v32  ;;  %2757 = vmatprep.subr.bf16.mxu1 %v8185_v38 }
 0x1cd   : > { %2578 = vmatprep.subr.bf16.mxu0 %v8178_v34  ;;  %2758 = vmatpush1.bf16.msra.mxu1 %v8183_v40 }
 0x1ce   : > { %2759 = vmatprep.subr.bf16.mxu1 %v8188_v41 }
 0x1d0   : > { %2579 = vmatpush1.bf16.msra.mxu0 %v8176_v36 }
 0x1d1   : > { %7850 = vmatprep.subr.bf16.mxu0 %v10321_v42  ;;  %2760 = vmatpush1.bf16.msra.mxu1 %v8186_v43 }
 0x1d2   : > { %2275 = vmatmul.mubr.bf16.gmra.mxu0 %v9339_v39  ;;  %2456 = vmatmul.mubr.bf16.gmra.mxu1 %v9339_v39 }
 0x1d3   : > { %2284 = vmatprep.mubr.bf16.mxu0 %v10319_v37  ;;  %2465 = vmatprep.mubr.bf16.mxu1 %v10319_v37 }
 0x1d4   : > { %4302 = vmatprep.subr.bf16.mxu1 %v9244_v16  ;;  %v9368_v16 = vld [vmem:[#allocation2 + $0x40] sm:$0xff]  }
 0x1da   : > { %2285 = vmatmul.mubr.bf16.gmra.mxu0 %v9349_v44  ;;  %2466 = vmatmul.mubr.bf16.gmra.mxu1 %v9349_v44 }
 0x1db   : > { %2294 = vmatprep.mubr.bf16.mxu0 %v10319_v37  ;;  %2475 = vmatprep.mubr.bf16.mxu1 %v10319_v37 }
 0x1e2   : > { %2295 = vmatmul.mubr.bf16.gmra.mxu0 %v9356_v45  ;;  %2476 = vmatmul.mubr.bf16.gmra.mxu1 %v9356_v45 }
 0x1e3   : > { %2304 = vmatprep.mubr.bf16.mxu0 %v10319_v37  ;;  %2485 = vmatprep.mubr.bf16.mxu1 %v10319_v37 }
 0x1ea   : > { %2305 = vmatmul.mubr.bf16.gmra.mxu0 %v9362_v46  ;;  %2486 = vmatmul.mubr.bf16.gmra.mxu1 %v9362_v46 }
 0x1eb   : > { %2314 = vmatprep.mubr.bf16.mxu0 %v10319_v37  ;;  %2495 = vmatprep.mubr.bf16.mxu1 %v10319_v37 }
 0x1f2   : > { %2315 = vmatmul.mubr.bf16.gmra.mxu0 %v9368_v16  ;;  %2496 = vmatmul.mubr.bf16.gmra.mxu1 %v9368_v16 }
 0x1f3   : > { %2324 = vmatprep.mubr.bf16.mxu0 %v10319_v37  ;;  %2505 = vmatprep.mubr.bf16.mxu1 %v10319_v37 }
 0x1fa   : > { %2325 = vmatmul.mubr.bf16.gmra.mxu0 %v9374_v47  ;;  %2506 = vmatmul.mubr.bf16.gmra.mxu1 %v9374_v47 }
 0x1fb   : > { %2334 = vmatprep.mubr.bf16.mxu0 %v10319_v37  ;;  %2515 = vmatprep.mubr.bf16.mxu1 %v10319_v37 }
 0x202   : > { %2335 = vmatmul.mubr.bf16.gmra.mxu0 %v9380_v48  ;;  %2516 = vmatmul.mubr.bf16.gmra.mxu1 %v9380_v48 }
 0x203   : > { %2344 = vmatprep.mubr.bf16.mxu0 %v10319_v37  ;;  %2525 = vmatprep.mubr.bf16.mxu1 %v10319_v37 }
 0x20a   : > { %2345 = vmatmul.mubr.bf16.gmra.mxu0 %v9386_v49  ;;  %2526 = vmatmul.mubr.bf16.gmra.mxu1 %v9386_v49 }
 0x20b   : > { %2354 = vmatprep.mubr.bf16.mxu0 %v10319_v37  ;;  %2535 = vmatprep.mubr.bf16.mxu1 %v10319_v37 }
 0x212   : > { %2355 = vmatmul.mubr.bf16.gmra.mxu0 %v9392_v50  ;;  %2536 = vmatmul.mubr.bf16.gmra.mxu1 %v9392_v50 }
 0x213   : > { %2364 = vmatprep.mubr.bf16.mxu0 %v10319_v37  ;;  %2545 = vmatprep.mubr.bf16.mxu1 %v10319_v37 }
 0x21a   : > { %2365 = vmatmul.mubr.bf16.gmra.mxu0 %v9398_v51  ;;  %2546 = vmatmul.mubr.bf16.gmra.mxu1 %v9398_v51 }
 0x21b   : > { %2374 = vmatprep.mubr.bf16.mxu0 %v10319_v37  ;;  %2555 = vmatprep.mubr.bf16.mxu1 %v10319_v37 }
 0x222   : > { %2375 = vmatmul.mubr.bf16.gmra.mxu0 %v9404_v52  ;;  %2556 = vmatmul.mubr.bf16.gmra.mxu1 %v9404_v52 }
 0x223   : > { %2596 = vmatprep.mubr.bf16.mxu0 %v10319_v37  ;;  %2777 = vmatprep.mubr.bf16.mxu1 %v10319_v37 }
 0x22a   : > { %2597 = vmatmul.mubr.bf16.vlgmr.msra.gmra.mxu0 %v9286_v5  ;;  %2778 = vmatmul.mubr.bf16.vlgmr.msra.gmra.mxu1 %v9286_v5  ;;  %v8374_v5 = vld [vmem:[%s8742_s9 + $0xd8] ss:$36 sps:$4 sm:$0xff]  }
 0x22b   : > { %7851 = vmatpush3.bf16.msra.mxu0 %v8189_v53  ;;  %2606 = vmatprep.mubr.bf16.mxu0 %v10319_v37 }
 0x22c   : > { %2787 = vmatprep.mubr.bf16.mxu1 %v10319_v37  ;;  %7852 = vmatprep.subr.bf16.mxu0 %v10321_v42 }
 0x22d   : > { %4303 = vmatpush1.bf16.msra.mxu1 %v8366_v55 }
 0x22e   : > { %4304 = vmatprep.subr.bf16.mxu1 %v8367_v56 }
 0x22f   : > { %7853 = vmatpush3.bf16.msra.mxu0 %v8190_v54 }
 0x230   : > { %7854 = vmatprep.subr.bf16.mxu0 %v10321_v42 }
 0x231   : > { %4305 = vmatpush1.bf16.msra.mxu1 %v8368_v58 }
 0x232   : > { %2607 = vmatmul.mubr.bf16.gmra.mxu0 %v9297_v10  ;;  %2788 = vmatmul.mubr.bf16.gmra.mxu1 %v9297_v10  ;;  %v8377_v10 = vld [vmem:[%s8742_s9 + $0x4c] ss:$36 sps:$4 sm:$0xff]  }
 0x233   : > { %2616 = vmatprep.mubr.bf16.mxu0 %v10319_v37  ;;  %2797 = vmatprep.mubr.bf16.mxu1 %v10319_v37 }
 0x234   : > { %7855 = vmatpush3.bf16.msra.mxu0 %v8191_v57  ;;  %4306 = vmatprep.subr.bf16.mxu1 %v8369_v60 }
 0x235   : > { %7856 = vmatprep.subr.bf16.mxu0 %v10321_v42  ;;  %4307 = vmatpush1.bf16.msra.mxu1 %v8370_v61 }
 0x236   : > { %4308 = vmatprep.subr.bf16.mxu1 %v8371_v62 }
 0x238   : > { %7857 = vmatpush3.bf16.msra.mxu0 %v8192_v59 }
 0x239   : > { %7858 = vmatprep.subr.bf16.mxu0 %v10321_v42  ;;  %4309 = vmatpush1.bf16.msra.mxu1 %v8372_v1 }
 0x23a   : > { %2617 = vmatmul.mubr.bf16.gmra.mxu0 %v9311_v21  ;;  %2798 = vmatmul.mubr.bf16.gmra.mxu1 %v9311_v21 }
 0x23b   : > { %2626 = vmatprep.mubr.bf16.mxu0 %v10319_v37  ;;  %2807 = vmatprep.mubr.bf16.mxu1 %v10319_v37 }
 0x23c   : > { %7859 = vmatpush3.bf16.msra.mxu0 %v8193_v63  ;;  %4310 = vmatprep.subr.bf16.mxu1 %v8373_v4 }
 0x23d   : > { %7860 = vmatprep.subr.bf16.mxu0 %v10321_v42  ;;  %4311 = vmatpush1.bf16.msra.mxu1 %v8374_v5 }
 0x23e   : > { %4312 = vmatprep.subr.bf16.mxu1 %v8375_v6 }
 0x240   : > { %7861 = vmatpush3.bf16.msra.mxu0 %v8194_v3 }
 0x241   : > { %7862 = vmatprep.subr.bf16.mxu0 %v10321_v42  ;;  %4313 = vmatpush1.bf16.msra.mxu1 %v8376_v8 }
 0x242   : > { %2627 = vmatmul.mubr.bf16.gmra.mxu0 %v9326_v31  ;;  %2808 = vmatmul.mubr.bf16.gmra.mxu1 %v9326_v31 }
 0x243   : > { %2636 = vmatprep.mubr.bf16.mxu0 %v10319_v37  ;;  %2817 = vmatprep.mubr.bf16.mxu1 %v10319_v37 }
 0x244   : > { %7863 = vmatpush3.bf16.msra.mxu0 %v8195_v7  ;;  %4314 = vmatprep.subr.bf16.mxu1 %v8377_v10 }
 0x245   : > { %7864 = vmatprep.subr.bf16.mxu0 %v10321_v42  ;;  %4315 = vmatpush1.bf16.msra.mxu1 %v8378_v11 }
 0x246   : > { %4316 = vmatprep.subr.bf16.mxu1 %v9277_v0 }
 0x248   : > { %7865 = vmatpush3.bf16.msra.mxu0 %v8196_v9 }
 0x249   : > { %4317 = vmatpush1.bf16.msra.mxu1 %v9281_v2  ;;  %4483 = vmatprep.subr.bf16.mxu0 %v8200_v12 }
 0x24a   : > { %2637 = vmatmul.mubr.bf16.gmra.mxu0 %v9339_v39  ;;  %2818 = vmatmul.mubr.bf16.gmra.mxu1 %v9339_v39 }
 0x24b   : > { %2646 = vmatprep.mubr.bf16.mxu0 %v10319_v37  ;;  %2827 = vmatprep.mubr.bf16.mxu1 %v10319_v37 }
 0x24c   : > { %4664 = vmatprep.subr.bf16.mxu1 %v8227_v27 }
 0x252   : > { %2647 = vmatmul.mubr.bf16.gmra.mxu0 %v9349_v44  ;;  %2828 = vmatmul.mubr.bf16.gmra.mxu1 %v9349_v44 }
 0x253   : > { %2656 = vmatprep.mubr.bf16.mxu0 %v10319_v37  ;;  %2837 = vmatprep.mubr.bf16.mxu1 %v10319_v37 }
 0x25a   : > { %2657 = vmatmul.mubr.bf16.gmra.mxu0 %v9356_v45  ;;  %2838 = vmatmul.mubr.bf16.gmra.mxu1 %v9356_v45 }
 0x25b   : > { %2666 = vmatprep.mubr.bf16.mxu0 %v10319_v37  ;;  %2847 = vmatprep.mubr.bf16.mxu1 %v10319_v37 }
 0x262   : > { %2667 = vmatmul.mubr.bf16.gmra.mxu0 %v9362_v46  ;;  %2848 = vmatmul.mubr.bf16.gmra.mxu1 %v9362_v46 }
 0x263   : > { %2676 = vmatprep.mubr.bf16.mxu0 %v10319_v37  ;;  %2857 = vmatprep.mubr.bf16.mxu1 %v10319_v37 }
 0x26a   : > { %2677 = vmatmul.mubr.bf16.gmra.mxu0 %v9368_v16  ;;  %2858 = vmatmul.mubr.bf16.gmra.mxu1 %v9368_v16 }
 0x26b   : > { %2686 = vmatprep.mubr.bf16.mxu0 %v10319_v37  ;;  %2867 = vmatprep.mubr.bf16.mxu1 %v10319_v37 }
 0x272   : > { %v2236_v0 = vpop.f32.mrf.mxu0  ;;  %v2417_v2 = vpop.f32.mrf.mxu1  ;;  %2687 = vmatmul.mubr.bf16.gmra.mxu0 %v9374_v47  ;;  %2868 = vmatmul.mubr.bf16.gmra.mxu1 %v9374_v47 }
 0x273   : > { %2696 = vmatprep.mubr.bf16.mxu0 %v10319_v37  ;;  %2877 = vmatprep.mubr.bf16.mxu1 %v10319_v37  ;;  %v3080_v15 = vmax.f32 %v2417_v2, 0.0  ;;  %v3078_v20 = vmax.f32 %v2236_v0, 0.0 }
 0x274   : > { %v2238_v13 = vpop.f32.mrf.mxu0  ;;  %v2419_v14 = vpop.f32.mrf.mxu1 }
 0x275   : > { %v3081_v21 = vmax.f32 %v2419_v14, 0.0  ;;  %v3079_v24 = vmax.f32 %v2238_v13, 0.0 }
 0x276   : > { %v2240_v17 = vpop.f32.mrf.mxu0  ;;  %v2421_v19 = vpop.f32.mrf.mxu1 }
 0x277   : > { %v3087_v22 = vmax.f32 %v2240_v17, 0.0  ;;  %v3089_v23 = vmax.f32 %v2421_v19, 0.0 }
 0x278   : > { %v2242_v25 = vpop.f32.mrf.mxu0  ;;  %v2423_v26 = vpop.f32.mrf.mxu1 }
 0x279   : > { %v3339_v28 = vadd.f32 %v3087_v22, %v3078_v20  ;;  %v3410_v29 = vadd.f32 %v3089_v23, %v3080_v15  ;;  %v3088_v30 = vmax.f32 %v2242_v25, 0.0  ;;  %v3090_v31 = vmax.f32 %v2423_v26, 0.0 }
 0x27a   : > { %v2246_v32 = vpop.f32.mrf.mxu0  ;;  %v2427_v33 = vpop.f32.mrf.mxu1  ;;  %2697 = vmatmul.mubr.bf16.gmra.mxu0 %v9380_v48  ;;  %2878 = vmatmul.mubr.bf16.gmra.mxu1 %v9380_v48 }
 0x27b   : > { %v3375_v34 = vadd.f32 %v3088_v30, %v3079_v24  ;;  %v3445_v35 = vadd.f32 %v3090_v31, %v3081_v21  ;;  %v3096_v36 = vmax.f32 %v2246_v32, 0.0  ;;  %v3098_v18 = vmax.f32 %v2427_v33, 0.0  ;;  %2706 = vmatprep.mubr.bf16.mxu0 %v10319_v37  ;;  %2887 = vmatprep.mubr.bf16.mxu1 %v10319_v37 }
 0x27c   : > { %v2248_v38 = vpop.f32.mrf.mxu0  ;;  %v2429_v39 = vpop.f32.mrf.mxu1 }
 0x27d   : > { %v3340_v40 = vadd.f32 %v3339_v28, %v3096_v36  ;;  %v3411_v41 = vadd.f32 %v3410_v29, %v3098_v18  ;;  %v3097_v43 = vmax.f32 %v2248_v38, 0.0  ;;  %v3099_v44 = vmax.f32 %v2429_v39, 0.0 }
 0x27e   : > { %v2250_v45 = vpop.f32.mrf.mxu0  ;;  %v2431_v46 = vpop.f32.mrf.mxu1 }
 0x27f   : > { %v3376_v16 = vadd.f32 %v3375_v34, %v3097_v43  ;;  %v3446_v47 = vadd.f32 %v3445_v35, %v3099_v44  ;;  %v3105_v48 = vmax.f32 %v2250_v45, 0.0  ;;  %v3107_v53 = vmax.f32 %v2431_v46, 0.0 }
 0x280   : > { %v2252_v54 = vpop.f32.mrf.mxu0  ;;  %v2433_v55 = vpop.f32.mrf.mxu1 }
 0x281   : > { %v3341_v56 = vadd.f32 %v3340_v40, %v3105_v48  ;;  %v3412_v57 = vadd.f32 %v3411_v41, %v3107_v53  ;;  %v3106_v58 = vmax.f32 %v2252_v54, 0.0  ;;  %v3108_v59 = vmax.f32 %v2433_v55, 0.0 }
 0x282   : > { %v2256_v60 = vpop.f32.mrf.mxu0  ;;  %v2437_v61 = vpop.f32.mrf.mxu1  ;;  %2707 = vmatmul.mubr.bf16.gmra.mxu0 %v9386_v49  ;;  %2888 = vmatmul.mubr.bf16.gmra.mxu1 %v9386_v49 }
 0x283   : > { %v3377_v62 = vadd.f32 %v3376_v16, %v3106_v58  ;;  %v3447_v63 = vadd.f32 %v3446_v47, %v3108_v59  ;;  %v3114_v1 = vmax.f32 %v2256_v60, 0.0  ;;  %v3116_v3 = vmax.f32 %v2437_v61, 0.0  ;;  %2716 = vmatprep.mubr.bf16.mxu0 %v10319_v37  ;;  %2897 = vmatprep.mubr.bf16.mxu1 %v10319_v37 }
 0x284   : > { %v2258_v4 = vpop.f32.mrf.mxu0  ;;  %v2439_v5 = vpop.f32.mrf.mxu1 }
 0x285   : > { %v3342_v6 = vadd.f32 %v3341_v56, %v3114_v1  ;;  %v3413_v7 = vadd.f32 %v3412_v57, %v3116_v3  ;;  %v3115_v8 = vmax.f32 %v2258_v4, 0.0  ;;  %v3117_v9 = vmax.f32 %v2439_v5, 0.0 }
 0x286   : > { %v2260_v10 = vpop.f32.mrf.mxu0  ;;  %v2441_v11 = vpop.f32.mrf.mxu1 }
 0x287   : > { %v3378_v12 = vadd.f32 %v3377_v62, %v3115_v8  ;;  %v3448_v0 = vadd.f32 %v3447_v63, %v3117_v9  ;;  %v3123_v2 = vmax.f32 %v2260_v10, 0.0  ;;  %v3125_v49 = vmax.f32 %v2441_v11, 0.0 }
 0x288   : > { %v2262_v13 = vpop.f32.mrf.mxu0  ;;  %v2443_v14 = vpop.f32.mrf.mxu1 }
 0x289   : > { %v3343_v15 = vadd.f32 %v3342_v6, %v3123_v2  ;;  %v3414_v17 = vadd.f32 %v3413_v7, %v3125_v49  ;;  %v3124_v19 = vmax.f32 %v2262_v13, 0.0  ;;  %v3126_v20 = vmax.f32 %v2443_v14, 0.0 }
 0x28a   : > { %v2266_v21 = vpop.f32.mrf.mxu0  ;;  %v2447_v22 = vpop.f32.mrf.mxu1  ;;  %2717 = vmatmul.mubr.bf16.gmra.mxu0 %v9392_v50  ;;  %2898 = vmatmul.mubr.bf16.gmra.mxu1 %v9392_v50 }
 0x28b   : > { %v3379_v23 = vadd.f32 %v3378_v12, %v3124_v19  ;;  %v3449_v24 = vadd.f32 %v3448_v0, %v3126_v20  ;;  %v3132_v25 = vmax.f32 %v2266_v21, 0.0  ;;  %v3134_v26 = vmax.f32 %v2447_v22, 0.0  ;;  %2726 = vmatprep.mubr.bf16.mxu0 %v10319_v37  ;;  %2907 = vmatprep.mubr.bf16.mxu1 %v10319_v37  ;;  %v9503_v21 = vld [vmem:[#allocation2 + $0x74] sm:$0xff]  }
 0x28c   : > { %v2268_v27 = vpop.f32.mrf.mxu0  ;;  %v2449_v28 = vpop.f32.mrf.mxu1 }
 0x28d   : > { %v3344_v29 = vadd.f32 %v3343_v15, %v3132_v25  ;;  %v3415_v30 = vadd.f32 %v3414_v17, %v3134_v26  ;;  %v3133_v31 = vmax.f32 %v2268_v27, 0.0  ;;  %v3135_v32 = vmax.f32 %v2449_v28, 0.0  ;;  %v8198_v26 = vld [vmem:[%s8742_s9 + $0x200] ss:$36 sps:$4 sm:$0xff]  }
 0x28e   : > { %v2270_v33 = vpop.f32.mrf.mxu0  ;;  %v2451_v34 = vpop.f32.mrf.mxu1 }
 0x28f   : > { %v3380_v35 = vadd.f32 %v3379_v23, %v3133_v31  ;;  %v3450_v36 = vadd.f32 %v3449_v24, %v3135_v32  ;;  %v3141_v18 = vmax.f32 %v2270_v33, 0.0  ;;  %v3143_v50 = vmax.f32 %v2451_v34, 0.0  ;;  %v8225_v34 = vld [vmem:[%s8742_s9 + $0x208] ss:$36 sps:$4 sm:$0xff]  }
 0x290   : > { %v2272_v38 = vpop.f32.mrf.mxu0  ;;  %v2453_v39 = vpop.f32.mrf.mxu1 }
 0x291   : > { %v3345_v40 = vadd.f32 %v3344_v29, %v3141_v18  ;;  %v3416_v41 = vadd.f32 %v3415_v30, %v3143_v50  ;;  %v3142_v43 = vmax.f32 %v2272_v38, 0.0  ;;  %v3144_v44 = vmax.f32 %v2453_v39, 0.0  ;;  %v8204_v29 = vld [vmem:[%s8742_s9 + $0x1bc] ss:$36 sps:$4 sm:$0xff]   ;;  %v8379_v18 = vld [vmem:[#allocation2] sm:$0xff]  }
 0x292   : > { %v2276_v45 = vpop.f32.mrf.mxu0  ;;  %v2457_v46 = vpop.f32.mrf.mxu1  ;;  %2727 = vmatmul.mubr.bf16.gmra.mxu0 %v9398_v51  ;;  %2908 = vmatmul.mubr.bf16.gmra.mxu1 %v9398_v51  ;;  %v8235_v50 = vld [vmem:[%s8742_s9 + $0x1c4] ss:$36 sps:$4 sm:$0xff]  }
 0x293   : > { %v3381_v16 = vadd.f32 %v3380_v35, %v3142_v43  ;;  %v3451_v47 = vadd.f32 %v3450_v36, %v3144_v44  ;;  %v3150_v48 = vmax.f32 %v2276_v45, 0.0  ;;  %v3152_v53 = vmax.f32 %v2457_v46, 0.0  ;;  %2736 = vmatprep.mubr.bf16.mxu0 %v10319_v37  ;;  %2917 = vmatprep.mubr.bf16.mxu1 %v10319_v37  ;;  %v8202_v43 = vld [vmem:[%s8742_s9 + $0x1b8] ss:$36 sps:$4 sm:$0xff]  }
 0x294   : > { %v2278_v54 = vpop.f32.mrf.mxu0  ;;  %v2459_v55 = vpop.f32.mrf.mxu1  ;;  %v8209_v46 = vld [vmem:[%s8742_s9 + $0x174] ss:$36 sps:$4 sm:$0xff]  }
 0x295   : > { %v3346_v56 = vadd.f32 %v3345_v40, %v3150_v48  ;;  %v3417_v57 = vadd.f32 %v3416_v41, %v3152_v53  ;;  %v3151_v58 = vmax.f32 %v2278_v54, 0.0  ;;  %v3153_v59 = vmax.f32 %v2459_v55, 0.0  ;;  %v8233_v54 = vld [vmem:[%s8742_s9 + $0x1c0] ss:$36 sps:$4 sm:$0xff]  }
 0x296   : > { %v2280_v60 = vpop.f32.mrf.mxu0  ;;  %v2461_v61 = vpop.f32.mrf.mxu1 }
 0x297   : > { %v3382_v62 = vadd.f32 %v3381_v16, %v3151_v58  ;;  %v3452_v63 = vadd.f32 %v3451_v47, %v3153_v59  ;;  %v3159_v1 = vmax.f32 %v2280_v60, 0.0  ;;  %v3161_v51 = vmax.f32 %v2461_v61, 0.0 }
 0x298   : > { %v2282_v3 = vpop.f32.mrf.mxu0  ;;  %v2463_v4 = vpop.f32.mrf.mxu1 }
 0x299   : > { %v3347_v5 = vadd.f32 %v3346_v56, %v3159_v1  ;;  %v3418_v6 = vadd.f32 %v3417_v57, %v3161_v51  ;;  %v3160_v7 = vmax.f32 %v2282_v3, 0.0  ;;  %v3162_v8 = vmax.f32 %v2463_v4, 0.0  ;;  %v9516_v57 = vld [vmem:[#allocation2 + $0x7c] sm:$0xff]   ;;  %v8207_v1 = vld [vmem:[%s8742_s9 + $0x170] ss:$36 sps:$4 sm:$0xff]  }
 0x29a   : > { %v2286_v9 = vpop.f32.mrf.mxu0  ;;  %v2467_v10 = vpop.f32.mrf.mxu1  ;;  %2737 = vmatmul.mubr.bf16.gmra.mxu0 %v9404_v52  ;;  %2918 = vmatmul.mubr.bf16.gmra.mxu1 %v9404_v52  ;;  %v8239_v51 = vld [vmem:[%s8742_s9 + $0x17c] ss:$36 sps:$4 sm:$0xff]  }
 0x29b   : > { %v3383_v11 = vadd.f32 %v3382_v62, %v3160_v7  ;;  %v3453_v12 = vadd.f32 %v3452_v63, %v3162_v8  ;;  %v3168_v0 = vmax.f32 %v2286_v9, 0.0  ;;  %v3170_v2 = vmax.f32 %v2467_v10, 0.0  ;;  %7866 = vmatprep.mubr.msk.bf16.mxu0 %vm8481_vm6, %v10321_v42  ;;  %4334 = vmatprep.mubr.bf16.mxu1 %v10319_v37  ;;  %v8214_v7 = vld [vmem:[%s8742_s9 + $0x12c] ss:$36 sps:$4 sm:$0xff]   ;;  %v8237_v8 = vld [vmem:[%s8742_s9 + $0x178] ss:$36 sps:$4 sm:$0xff]  }
 0x29c   : > { %v2288_v49 = vpop.f32.mrf.mxu0  ;;  %v2469_v13 = vpop.f32.mrf.mxu1 }
 0x29d   : > { %v3348_v14 = vadd.f32 %v3347_v5, %v3168_v0  ;;  %v3419_v15 = vadd.f32 %v3418_v6, %v3170_v2  ;;  %v3169_v17 = vmax.f32 %v2288_v49, 0.0  ;;  %v3171_v19 = vmax.f32 %v2469_v13, 0.0 }
 0x29e   : > { %v2290_v52 = vpop.f32.mrf.mxu0  ;;  %v2471_v20 = vpop.f32.mrf.mxu1 }
 0x29f   : > { %v3384_v22 = vadd.f32 %v3383_v11, %v3169_v17  ;;  %v3454_v23 = vadd.f32 %v3453_v12, %v3171_v19  ;;  %v3177_v24 = vmax.f32 %v2290_v52, 0.0  ;;  %v3179_v25 = vmax.f32 %v2471_v20, 0.0  ;;  %v8380_v11 = vld [vmem:[#allocation2 + $0x8] sm:$0xff]   ;;  %v8242_v12 = vld [vmem:[%s8742_s9 + $0x134] ss:$36 sps:$4 sm:$0xff]  }
 0x2a0   : > { %v2292_v27 = vpop.f32.mrf.mxu0  ;;  %v2473_v28 = vpop.f32.mrf.mxu1  ;;  %v8212_v17 = vld [vmem:[%s8742_s9 + $0x128] ss:$36 sps:$4 sm:$0xff]  }
 0x2a1   : > { %v3349_v30 = vadd.f32 %v3348_v14, %v3177_v24  ;;  %v3420_v31 = vadd.f32 %v3419_v15, %v3179_v25  ;;  %v3178_v32 = vmax.f32 %v2292_v27, 0.0  ;;  %v3180_v33 = vmax.f32 %v2473_v28, 0.0  ;;  %v8240_v24 = vld [vmem:[%s8742_s9 + $0x130] ss:$36 sps:$4 sm:$0xff]   ;;  %v9530_v27 = vld [vmem:[#allocation2 + $0x84] sm:$0xff]  }
 0x2a2   : > { %v2296_v35 = vpop.f32.mrf.mxu0  ;;  %v2477_v36 = vpop.f32.mrf.mxu1  ;;  %7867 = vmatmul.mubr.bf16.vlgmr.msra.gmra.mxu0 %v8379_v18  ;;  %4335 = vmatmul.mubr.bf16.vlgmr.msra.gmra.mxu1 %v9503_v21 }
 0x2a3   : > { %v3385_v38 = vadd.f32 %v3384_v22, %v3178_v32  ;;  %v3455_v39 = vadd.f32 %v3454_v23, %v3180_v33  ;;  %v3186_v40 = vmax.f32 %v2296_v35, 0.0  ;;  %v3188_v41 = vmax.f32 %v2477_v36, 0.0  ;;  %4484 = vmatpush1.bf16.msra.mxu0 %v8198_v26  ;;  %7870 = vmatprep.mubr.msk.bf16.mxu0 %vm8481_vm6, %v10321_v42  ;;  %v8219_v23 = vld [vmem:[%s8742_s9 + $0xe4] ss:$36 sps:$4 sm:$0xff]   ;;  %v8246_v35 = vld [vmem:[%s8742_s9 + $0xec] ss:$36 sps:$4 sm:$0xff]  }
 0x2a4   : > { %v2298_v44 = vpop.f32.mrf.mxu0  ;;  %v2479_v45 = vpop.f32.mrf.mxu1  ;;  %4344 = vmatprep.mubr.bf16.mxu1 %v10319_v37  ;;  %4485 = vmatprep.subr.bf16.mxu0 %v8204_v29 }
 0x2a5   : > { %v3350_v16 = vadd.f32 %v3349_v30, %v3186_v40  ;;  %v3421_v47 = vadd.f32 %v3420_v31, %v3188_v41  ;;  %v3187_v48 = vmax.f32 %v2298_v44, 0.0  ;;  %v3189_v53 = vmax.f32 %v2479_v45, 0.0  ;;  %4665 = vmatpush1.bf16.msra.mxu1 %v8225_v34  ;;  %v8217_v34 = vld [vmem:[%s8742_s9 + $0xe0] ss:$36 sps:$4 sm:$0xff]   ;;  %v8244_v40 = vld [vmem:[%s8742_s9 + $0xe8] ss:$36 sps:$4 sm:$0xff]  }
 0x2a6   : > { %v2300_v55 = vpop.f32.mrf.mxu0  ;;  %v2481_v56 = vpop.f32.mrf.mxu1  ;;  %4666 = vmatprep.subr.bf16.mxu1 %v8235_v50  ;;  %v8381_v44 = vld [vmem:[#allocation2 + $0x10] sm:$0xff]   ;;  %v8252_v45 = vld [vmem:[%s8742_s9 + $0xa4] ss:$36 sps:$4 sm:$0xff]  }
 0x2a7   : > { %v3386_v58 = vadd.f32 %v3385_v38, %v3187_v48  ;;  %v3456_v59 = vadd.f32 %v3455_v39, %v3189_v53  ;;  %v3195_v60 = vmax.f32 %v2300_v55, 0.0  ;;  %v3197_v61 = vmax.f32 %v2481_v56, 0.0  ;;  %4486 = vmatpush1.bf16.msra.mxu0 %v8202_v43  ;;  %v8224_v39 = vld [vmem:[%s8742_s9 + $0x9c] ss:$36 sps:$4 sm:$0xff]  }
 0x2a8   : > { %v2302_v62 = vpop.f32.mrf.mxu0  ;;  %v2483_v63 = vpop.f32.mrf.mxu1  ;;  %4487 = vmatprep.subr.bf16.mxu0 %v8209_v46  ;;  %v8222_v55 = vld [vmem:[%s8742_s9 + $0x98] ss:$36 sps:$4 sm:$0xff]  }
 0x2a9   : > { %v3351_v3 = vadd.f32 %v3350_v16, %v3195_v60  ;;  %v3422_v4 = vadd.f32 %v3421_v47, %v3197_v61  ;;  %v3196_v5 = vmax.f32 %v2302_v62, 0.0  ;;  %v3198_v6 = vmax.f32 %v2483_v63, 0.0  ;;  %4667 = vmatpush1.bf16.msra.mxu1 %v8233_v54  ;;  %v8232_v61 = vld [vmem:[%s8742_s9 + $0x54] ss:$36 sps:$4 sm:$0xff]   ;;  %v8250_v62 = vld [vmem:[%s8742_s9 + $0xa0] ss:$36 sps:$4 sm:$0xff]  }
 0x2aa   : > { %v2306_v9 = vpop.f32.mrf.mxu0  ;;  %v2487_v10 = vpop.f32.mrf.mxu1  ;;  %7871 = vmatmul.mubr.bf16.gmra.mxu0 %v8380_v11  ;;  %4345 = vmatmul.mubr.bf16.gmra.mxu1 %v9516_v57 }
 0x2ab   : > { %v3387_v0 = vadd.f32 %v3386_v58, %v3196_v5  ;;  %v3457_v2 = vadd.f32 %v3456_v59, %v3198_v6  ;;  %v3204_v49 = vmax.f32 %v2306_v9, 0.0  ;;  %v3206_v13 = vmax.f32 %v2487_v10, 0.0  ;;  %7874 = vmatprep.mubr.msk.bf16.mxu0 %vm8481_vm6, %v10321_v42  ;;  %4354 = vmatprep.mubr.bf16.mxu1 %v10319_v37  ;;  %v8230_v9 = vld [vmem:[%s8742_s9 + $0x50] ss:$36 sps:$4 sm:$0xff]   ;;  %v8256_v10 = vld [vmem:[%s8742_s9 + $0x5c] ss:$36 sps:$4 sm:$0xff]  }
 0x2ac   : > { %v2308_v14 = vpop.f32.mrf.mxu0  ;;  %v2489_v15 = vpop.f32.mrf.mxu1  ;;  %4488 = vmatpush1.bf16.msra.mxu0 %v8207_v1  ;;  %4668 = vmatprep.subr.bf16.mxu1 %v8239_v51  ;;  %v9544_v51 = vld [vmem:[#allocation2 + $0x8c] sm:$0xff]  }
 0x2ad   : > { %v3352_v19 = vadd.f32 %v3351_v3, %v3204_v49  ;;  %v3423_v52 = vadd.f32 %v3422_v4, %v3206_v13  ;;  %v3205_v20 = vmax.f32 %v2308_v14, 0.0  ;;  %v3207_v22 = vmax.f32 %v2489_v15, 0.0  ;;  %4489 = vmatprep.subr.bf16.mxu0 %v8214_v7  ;;  %4669 = vmatpush1.bf16.msra.mxu1 %v8237_v8  ;;  %v8249_v49 = vld [vmem:[%s8742_s9 + $0xc] ss:$36 sps:$4 sm:$0xff]   ;;  %v8254_v13 = vld [vmem:[%s8742_s9 + $0x58] ss:$36 sps:$4 sm:$0xff]  }
 0x2ae   : > { %v2310_v25 = vpop.f32.mrf.mxu0  ;;  %v2491_v26 = vpop.f32.mrf.mxu1  ;;  %4670 = vmatprep.subr.bf16.mxu1 %v8242_v12 }
 0x2af   : > { %v3388_v28 = vadd.f32 %v3387_v0, %v3205_v20  ;;  %v3458_v29 = vadd.f32 %v3457_v2, %v3207_v22  ;;  %v3213_v30 = vmax.f32 %v2310_v25, 0.0  ;;  %v3215_v31 = vmax.f32 %v2491_v26, 0.0  ;;  %v8247_v26 = vld [vmem:[%s8742_s9 + $0x8] ss:$36 sps:$4 sm:$0xff]  }
 0x2b0   : > { %v2312_v32 = vpop.f32.mrf.mxu0  ;;  %v2493_v33 = vpop.f32.mrf.mxu1  ;;  %4490 = vmatpush1.bf16.msra.mxu0 %v8212_v17  ;;  %v8382_v17 = vld [vmem:[#allocation2 + $0x18] sm:$0xff]  }
 0x2b1   : > { %v3353_v36 = vadd.f32 %v3352_v19, %v3213_v30  ;;  %v3424_v18 = vadd.f32 %v3423_v52, %v3215_v31  ;;  %v3214_v50 = vmax.f32 %v2312_v32, 0.0  ;;  %v3216_v38 = vmax.f32 %v2493_v33, 0.0  ;;  %4491 = vmatprep.subr.bf16.mxu0 %v8219_v23  ;;  %4671 = vmatpush1.bf16.msra.mxu1 %v8240_v24  ;;  %v8259_v19 = vld [vmem:[%s8742_s9 + $0x14] ss:$36 sps:$4 sm:$0xff]  }
 0x2b2   : > { %v2316_v41 = vpop.f32.mrf.mxu0  ;;  %v2497_v43 = vpop.f32.mrf.mxu1  ;;  %7875 = vmatmul.mubr.bf16.gmra.mxu0 %v8381_v44  ;;  %4355 = vmatmul.mubr.bf16.gmra.mxu1 %v9530_v27  ;;  %v8257_v32 = vld [vmem:[%s8742_s9 + $0x10] ss:$36 sps:$4 sm:$0xff]  }
 0x2b3   : > { %v3389_v46 = vadd.f32 %v3388_v28, %v3214_v50  ;;  %v3459_v16 = vadd.f32 %v3458_v29, %v3216_v38  ;;  %v3222_v47 = vmax.f32 %v2316_v41, 0.0  ;;  %v3224_v48 = vmax.f32 %v2497_v43, 0.0  ;;  %7878 = vmatprep.mubr.msk.bf16.mxu0 %vm8481_vm6, %v10321_v42  ;;  %4364 = vmatprep.mubr.bf16.mxu1 %v10319_v37  ;;  %v8262_v33 = vld [vmem:[%s8742_s9 + $0x214] ss:$36 sps:$4 sm:$0xff]  }
 0x2b4   : > { %v2318_v53 = vpop.f32.mrf.mxu0  ;;  %v2499_v54 = vpop.f32.mrf.mxu1  ;;  %4492 = vmatpush1.bf16.msra.mxu0 %v8217_v34  ;;  %4672 = vmatprep.subr.bf16.mxu1 %v8246_v35 }
 0x2b5   : > { %v3354_v56 = vadd.f32 %v3353_v36, %v3222_v47  ;;  %v3425_v58 = vadd.f32 %v3424_v18, %v3224_v48  ;;  %v3223_v59 = vmax.f32 %v2318_v53, 0.0  ;;  %v3225_v60 = vmax.f32 %v2499_v54, 0.0  ;;  %4493 = vmatprep.subr.bf16.mxu0 %v8224_v39  ;;  %4673 = vmatpush1.bf16.msra.mxu1 %v8244_v40  ;;  %v9558_v36 = vld [vmem:[#allocation2 + $0x94] sm:$0xff]   ;;  %v8383_v48 = vld [vmem:[#allocation2 + $0x20] sm:$0xff]  }
 0x2b6   : > { %v2320_v63 = vpop.f32.mrf.mxu0  ;;  %v2501_v1 = vpop.f32.mrf.mxu1  ;;  %4674 = vmatprep.subr.bf16.mxu1 %v8252_v45 }
 0x2b7   : > { %v3390_v3 = vadd.f32 %v3389_v46, %v3223_v59  ;;  %v3460_v4 = vadd.f32 %v3459_v16, %v3225_v60  ;;  %v3231_v5 = vmax.f32 %v2320_v63, 0.0  ;;  %v3233_v6 = vmax.f32 %v2501_v1, 0.0 }
 0x2b8   : > { %v2322_v7 = vpop.f32.mrf.mxu0  ;;  %v2503_v8 = vpop.f32.mrf.mxu1  ;;  %4494 = vmatpush1.bf16.msra.mxu0 %v8222_v55 }
 0x2b9   : > { %v3355_v11 = vadd.f32 %v3354_v56, %v3231_v5  ;;  %v3426_v12 = vadd.f32 %v3425_v58, %v3233_v6  ;;  %v3232_v0 = vmax.f32 %v2322_v7, 0.0  ;;  %v3234_v2 = vmax.f32 %v2503_v8, 0.0  ;;  %4495 = vmatprep.subr.bf16.mxu0 %v8232_v61  ;;  %4675 = vmatpush1.bf16.msra.mxu1 %v8250_v62 }
 0x2ba   : > { %v2326_v14 = vpop.f32.mrf.mxu0  ;;  %v2507_v15 = vpop.f32.mrf.mxu1  ;;  %7879 = vmatmul.mubr.bf16.gmra.mxu0 %v8382_v17  ;;  %4365 = vmatmul.mubr.bf16.gmra.mxu1 %v9544_v51 }
 0x2bb   : > { %v3391_v52 = vadd.f32 %v3390_v3, %v3232_v0  ;;  %v3461_v20 = vadd.f32 %v3460_v4, %v3234_v2  ;;  %v3240_v22 = vmax.f32 %v2326_v14, 0.0  ;;  %v3242_v23 = vmax.f32 %v2507_v15, 0.0  ;;  %7882 = vmatprep.mubr.msk.bf16.mxu0 %vm8481_vm6, %v10321_v42  ;;  %4374 = vmatprep.mubr.bf16.mxu1 %v10319_v37  ;;  %v9565_v4 = vld [vmem:[#allocation2 + $0x9c] sm:$0xff]   ;;  %v8384_v14 = vld [vmem:[#allocation2 + $0x28] sm:$0xff]  }
 0x2bc   : > { %v2328_v24 = vpop.f32.mrf.mxu0  ;;  %v2509_v25 = vpop.f32.mrf.mxu1  ;;  %4496 = vmatpush1.bf16.msra.mxu0 %v8230_v9  ;;  %4676 = vmatprep.subr.bf16.mxu1 %v8256_v10 }
 0x2bd   : > { %v3356_v28 = vadd.f32 %v3355_v11, %v3240_v22  ;;  %v3427_v29 = vadd.f32 %v3426_v12, %v3242_v23  ;;  %v3241_v30 = vmax.f32 %v2328_v24, 0.0  ;;  %v3243_v31 = vmax.f32 %v2509_v25, 0.0  ;;  %4497 = vmatprep.subr.bf16.mxu0 %v8249_v49  ;;  %4677 = vmatpush1.bf16.msra.mxu1 %v8254_v13 }
 0x2be   : > { %v2330_v34 = vpop.f32.mrf.mxu0  ;;  %v2511_v35 = vpop.f32.mrf.mxu1  ;;  %4678 = vmatprep.subr.bf16.mxu1 %v8259_v19 }
 0x2bf   : > { %v3392_v18 = vadd.f32 %v3391_v52, %v3241_v30  ;;  %v3462_v50 = vadd.f32 %v3461_v20, %v3243_v31  ;;  %v3249_v38 = vmax.f32 %v2330_v34, 0.0  ;;  %v3251_v39 = vmax.f32 %v2511_v35, 0.0  ;;  %v9571_v30 = vld [vmem:[#allocation2 + $0xa4] sm:$0xff]  }
 0x2c0   : > { %v2332_v40 = vpop.f32.mrf.mxu0  ;;  %v2513_v41 = vpop.f32.mrf.mxu1  ;;  %4498 = vmatpush1.bf16.msra.mxu0 %v8247_v26 }
 0x2c1   : > { %v3357_v43 = vadd.f32 %v3356_v28, %v3249_v38  ;;  %v3428_v44 = vadd.f32 %v3427_v29, %v3251_v39  ;;  %v3250_v45 = vmax.f32 %v2332_v40, 0.0  ;;  %v3252_v46 = vmax.f32 %v2513_v41, 0.0  ;;  %4679 = vmatpush1.bf16.msra.mxu1 %v8257_v32  ;;  %4845 = vmatprep.subr.bf16.mxu0 %v8262_v33 }
 0x2c2   : > { %v2336_v16 = vpop.f32.mrf.mxu0  ;;  %v2517_v47 = vpop.f32.mrf.mxu1  ;;  %7883 = vmatmul.mubr.bf16.gmra.mxu0 %v8383_v48  ;;  %4375 = vmatmul.mubr.bf16.gmra.mxu1 %v9558_v36 }
 0x2c3   : > { %v3393_v53 = vadd.f32 %v3392_v18, %v3250_v45  ;;  %v3463_v54 = vadd.f32 %v3462_v50, %v3252_v46  ;;  %v3258_v55 = vmax.f32 %v2336_v16, 0.0  ;;  %v3260_v56 = vmax.f32 %v2517_v47, 0.0  ;;  %7886 = vmatprep.mubr.msk.bf16.mxu0 %vm8481_vm6, %v10321_v42  ;;  %4384 = vmatprep.mubr.bf16.mxu1 %v10319_v37 }
 0x2c4   : > { %v2338_v58 = vpop.f32.mrf.mxu0  ;;  %v2519_v59 = vpop.f32.mrf.mxu1  ;;  %7926 = vmatprep.subr.bf16.mxu1 %v10321_v42 }
 0x2c5   : > { %v3358_v60 = vadd.f32 %v3357_v43, %v3258_v55  ;;  %v3429_v61 = vadd.f32 %v3428_v44, %v3260_v56  ;;  %v3259_v62 = vmax.f32 %v2338_v58, 0.0  ;;  %v3261_v63 = vmax.f32 %v2519_v59, 0.0  ;;  %v8385_v44 = vld [vmem:[#allocation2 + $0x30] sm:$0xff]  }
 0x2c6   : > { %v2340_v1 = vpop.f32.mrf.mxu0  ;;  %v2521_v3 = vpop.f32.mrf.mxu1 }
 0x2c7   : > { %v3394_v5 = vadd.f32 %v3393_v53, %v3259_v62  ;;  %v3464_v6 = vadd.f32 %v3463_v54, %v3261_v63  ;;  %v3267_v7 = vmax.f32 %v2340_v1, 0.0  ;;  %v3269_v8 = vmax.f32 %v2521_v3, 0.0 }
 0x2c8   : > { %v2342_v9 = vpop.f32.mrf.mxu0  ;;  %v2523_v10 = vpop.f32.mrf.mxu1 }
 0x2c9   : > { %v3359_v11 = vadd.f32 %v3358_v60, %v3267_v7  ;;  %v3430_v12 = vadd.f32 %v3429_v61, %v3269_v8  ;;  %v3268_v0 = vmax.f32 %v2342_v9, 0.0  ;;  %v3270_v2 = vmax.f32 %v2523_v10, 0.0  ;;  %v8216_v61 = vld [vmem:[#allocation2 + $0xac] sm:$0xff]  }
 0x2ca   : > { %v2346_v49 = vpop.f32.mrf.mxu0  ;;  %v2527_v13 = vpop.f32.mrf.mxu1  ;;  %7887 = vmatmul.mubr.bf16.gmra.mxu0 %v8384_v14  ;;  %4385 = vmatmul.mubr.bf16.gmra.mxu1 %v9565_v4 }
 0x2cb   : > { %v3395_v15 = vadd.f32 %v3394_v5, %v3268_v0  ;;  %v3465_v17 = vadd.f32 %v3464_v6, %v3270_v2  ;;  %v3276_v19 = vmax.f32 %v2346_v49, 0.0  ;;  %v3278_v52 = vmax.f32 %v2527_v13, 0.0  ;;  %7890 = vmatprep.mubr.msk.bf16.mxu0 %vm8481_vm6, %v10321_v42  ;;  %4394 = vmatprep.mubr.bf16.mxu1 %v10319_v37  ;;  %v8386_v0 = vld [vmem:[#allocation2 + $0x38] sm:$0xff]  }
 0x2cc   : > { %v2348_v20 = vpop.f32.mrf.mxu0  ;;  %v2529_v22 = vpop.f32.mrf.mxu1 }
 0x2cd   : > { %v3360_v23 = vadd.f32 %v3359_v11, %v3276_v19  ;;  %v3431_v24 = vadd.f32 %v3430_v12, %v3278_v52  ;;  %v3277_v25 = vmax.f32 %v2348_v20, 0.0  ;;  %v3279_v26 = vmax.f32 %v2529_v22, 0.0 }
 0x2ce   : > { %v2350_v28 = vpop.f32.mrf.mxu0  ;;  %v2531_v29 = vpop.f32.mrf.mxu1 }
 0x2cf   : > { %v3396_v31 = vadd.f32 %v3395_v15, %v3277_v25  ;;  %v3466_v32 = vadd.f32 %v3465_v17, %v3279_v26  ;;  %v3285_v33 = vmax.f32 %v2350_v28, 0.0  ;;  %v3287_v34 = vmax.f32 %v2531_v29, 0.0  ;;  %v8220_v25 = vld [vmem:[#allocation2 + $0xb4] sm:$0xff]  }
 0x2d0   : > { %v2352_v35 = vpop.f32.mrf.mxu0  ;;  %v2533_v18 = vpop.f32.mrf.mxu1 }
 0x2d1   : > { %v3361_v50 = vadd.f32 %v3360_v23, %v3285_v33  ;;  %v3432_v38 = vadd.f32 %v3431_v24, %v3287_v34  ;;  %v3286_v39 = vmax.f32 %v2352_v35, 0.0  ;;  %v3288_v40 = vmax.f32 %v2533_v18, 0.0 }
 0x2d2   : > { %v2356_v41 = vpop.f32.mrf.mxu0  ;;  %v2537_v43 = vpop.f32.mrf.mxu1  ;;  %7891 = vmatmul.mubr.bf16.gmra.mxu0 %v8385_v44  ;;  %4395 = vmatmul.mubr.bf16.gmra.mxu1 %v9571_v30 }
 0x2d3   : > { %v3397_v45 = vadd.f32 %v3396_v31, %v3286_v39  ;;  %v3467_v46 = vadd.f32 %v3466_v32, %v3288_v40  ;;  %v3294_v16 = vmax.f32 %v2356_v41, 0.0  ;;  %v3296_v47 = vmax.f32 %v2537_v43, 0.0  ;;  %7894 = vmatprep.mubr.msk.bf16.mxu0 %vm8481_vm6, %v10321_v42  ;;  %4404 = vmatprep.mubr.bf16.mxu1 %v10319_v37  ;;  %v8387_v40 = vld [vmem:[#allocation2 + $0x40] sm:$0xff]  }
 0x2d4   : > { %v2358_v48 = vpop.f32.mrf.mxu0  ;;  %v2539_v53 = vpop.f32.mrf.mxu1 }
 0x2d5   : > { %v3362_v54 = vadd.f32 %v3361_v50, %v3294_v16  ;;  %v3433_v55 = vadd.f32 %v3432_v38, %v3296_v47  ;;  %v3295_v56 = vmax.f32 %v2358_v48, 0.0  ;;  %v3297_v58 = vmax.f32 %v2539_v53, 0.0 }
 0x2d6   : > { %v2360_v59 = vpop.f32.mrf.mxu0  ;;  %v2541_v60 = vpop.f32.mrf.mxu1 }
 0x2d7   : > { %v3398_v62 = vadd.f32 %v3397_v45, %v3295_v56  ;;  %v3468_v63 = vadd.f32 %v3467_v46, %v3297_v58  ;;  %v3303_v1 = vmax.f32 %v2360_v59, 0.0  ;;  %v3305_v3 = vmax.f32 %v2541_v60, 0.0  ;;  %v8221_v60 = vld [vmem:[#allocation2 + $0xbc] sm:$0xff]  }
 0x2d8   : > { %v2362_v5 = vpop.f32.mrf.mxu0  ;;  %v2543_v6 = vpop.f32.mrf.mxu1 }
 0x2d9   : > { %v3363_v7 = vadd.f32 %v3362_v54, %v3303_v1  ;;  %v3434_v8 = vadd.f32 %v3433_v55, %v3305_v3  ;;  %v3304_v9 = vmax.f32 %v2362_v5, 0.0  ;;  %v3306_v10 = vmax.f32 %v2543_v6, 0.0 }
 0x2da   : > { %v2366_v11 = vpop.f32.mrf.mxu0  ;;  %v2547_v12 = vpop.f32.mrf.mxu1  ;;  %7895 = vmatmul.mubr.bf16.gmra.mxu0 %v8386_v0  ;;  %4405 = vmatmul.mubr.bf16.gmra.mxu1 %v8216_v61 }
 0x2db   : > { %v3399_v2 = vadd.f32 %v3398_v62, %v3304_v9  ;;  %v3469_v49 = vadd.f32 %v3468_v63, %v3306_v10  ;;  %v3312_v13 = vmax.f32 %v2366_v11, 0.0  ;;  %v3314_v14 = vmax.f32 %v2547_v12, 0.0  ;;  %7898 = vmatprep.mubr.msk.bf16.mxu0 %vm8481_vm6, %v10321_v42  ;;  %4414 = vmatprep.mubr.bf16.mxu1 %v10319_v37 }
 0x2dc   : > { %v2368_v15 = vpop.f32.mrf.mxu0  ;;  %v2549_v17 = vpop.f32.mrf.mxu1 }
 0x2dd   : > { %v3364_v19 = vadd.f32 %v3363_v7, %v3312_v13  ;;  %v3435_v52 = vadd.f32 %v3434_v8, %v3314_v14  ;;  %v3313_v20 = vmax.f32 %v2368_v15, 0.0  ;;  %v3315_v22 = vmax.f32 %v2549_v17, 0.0 }
 0x2de   : > { %v2370_v23 = vpop.f32.mrf.mxu0  ;;  %v2551_v24 = vpop.f32.mrf.mxu1  ;;  %v10318_v14 = vlaneseq }
 0x2df   : > { %v3400_v26 = vadd.f32 %v3399_v2, %v3313_v20  ;;  %v3470_v28 = vadd.f32 %v3469_v49, %v3315_v22  ;;  %v3321_v29 = vmax.f32 %v2370_v23, 0.0  ;;  %v3323_v31 = vmax.f32 %v2551_v24, 0.0  ;;  %v8388_v2 = vld [vmem:[#allocation2 + $0x48] sm:$0xff]  }
 0x2e0   : > { %v2372_v32 = vpop.f32.mrf.mxu0  ;;  %v2553_v33 = vpop.f32.mrf.mxu1  ;;  %v8482_v49 = vmov 1966171168  }
 0x2e1   : > { %v3365_v34 = vadd.f32 %v3364_v19, %v3321_v29  ;;  %v3436_v35 = vadd.f32 %v3435_v52, %v3323_v31  ;;  %v3322_v18 = vmax.f32 %v2372_v32, 0.0  ;;  %v3324_v50 = vmax.f32 %v2553_v33, 0.0  ;;  %v8228_v32 = vld [vmem:[#allocation2 + $0xc4] sm:$0xff]  }
 0x2e2   : > { %v2376_v38 = vpop.f32.mrf.mxu0  ;;  %v2557_v39 = vpop.f32.mrf.mxu1  ;;  %7899 = vmatmul.mubr.bf16.gmra.mxu0 %v8387_v40  ;;  %4415 = vmatmul.mubr.bf16.gmra.mxu1 %v8220_v25  ;;  %v3669_v13 = vunpack.c.l.s4 %v8482_v49 }
 0x2e3   : > { %v3401_v41 = vadd.f32 %v3400_v26, %v3322_v18  ;;  %v3471_v43 = vadd.f32 %v3470_v28, %v3324_v50  ;;  %v3330_v44 = vmax.f32 %v2376_v38, 0.0  ;;  %v3332_v45 = vmax.f32 %v2557_v39, 0.0  ;;  %7902 = vmatprep.mubr.msk.bf16.mxu0 %vm8481_vm6, %v10321_v42  ;;  %4424 = vmatprep.mubr.bf16.mxu1 %v10319_v37 }
 0x2e4   : > { %v2378_v46 = vpop.f32.mrf.mxu0  ;;  %v2559_v16 = vpop.f32.mrf.mxu1  ;;  %v3670_v33 = vunpack.c.0.s8 %v3669_v13 }
 0x2e5   : > { %v3367_v47 = vsel %vm3366_vm7, %v3330_v44, 0.0  ;;  %v3437_v48 = vsel %vm3366_vm7, %v3332_v45, 0.0  ;;  %v3331_v53 = vmax.f32 %v2378_v46, 0.0  ;;  %v3333_v54 = vmax.f32 %v2559_v16, 0.0 }
 0x2e6   : > { %v3368_v55 = vadd.f32 %v3367_v47, %v3365_v34  ;;  %v3438_v56 = vadd.f32 %v3437_v48, %v3436_v35  ;;  %v2380_v58 = vpop.f32.mrf.mxu0  ;;  %v2561_v59 = vpop.f32.mrf.mxu1  ;;  %v9597_v34 = vshrl.u32 %v10318_v14, 7 }
 0x2e7   : > { %v3402_v61 = vsel %vm3366_vm7, %v3331_v53, 0.0  ;;  %v3472_v62 = vsel %vm3366_vm7, %v3333_v54, 0.0  ;;  %v8389_v54 = vld [vmem:[#allocation2 + $0x50] sm:$0xff]  }
 0x2e8   : > { %v3369_v63 = vrot.slane %v3368_v55, 4  ;;  %v3439_v1 = vrot.slane %v3438_v56, 4  ;;  %v3403_v3 = vadd.f32 %v3402_v61, %v3401_v41  ;;  %v3473_v5 = vadd.f32 %v3472_v62, %v3471_v43  ;;  %v2381_v6 = vpop.f32.mrf.mxu0  ;;  %v2562_v7 = vpop.f32.mrf.mxu1  ;;  %10324 = vst [vmem:[#allocation9_spill] sm:$0xff] %v9597_v34 }
 0x2ea   : > { %v3370_v8 = vadd.f32 %v3369_v63, %v3368_v55  ;;  %v3440_v9 = vadd.f32 %v3439_v1, %v3438_v56  ;;  %v3404_v10 = vrot.slane %v3403_v3, 4  ;;  %v3474_v11 = vrot.slane %v3473_v5, 4  ;;  %v9587_v12 = vpop.f32.mrf.mxu0  ;;  %v2779_v0 = vpop.f32.mrf.mxu1  ;;  %7903 = vmatmul.mubr.bf16.gmra.mxu0 %v8388_v2  ;;  %4425 = vmatmul.mubr.bf16.gmra.mxu1 %v8221_v60 }
 0x2eb   : > { %7906 = vmatprep.mubr.msk.bf16.mxu0 %vm8481_vm6, %v10321_v42  ;;  %4434 = vmatprep.mubr.bf16.mxu1 %v10319_v37  ;;  %v3084_v23 = vmax.f32 %v2779_v0, 0.0  ;;  %v9604_v55 = vsub.s32 %v3670_v33, %v9597_v34 }
 0x2ec   : > { %v3371_v15 = vrot.slane %v3370_v8, 2  ;;  %v3441_v17 = vrot.slane %v3440_v9, 2  ;;  %v3405_v19 = vadd.f32 %v3404_v10, %v3403_v3  ;;  %v3475_v52 = vadd.f32 %v3474_v11, %v3473_v5  ;;  %v9592_v20 = vpop.f32.mrf.mxu0  ;;  %v2781_v22 = vpop.f32.mrf.mxu1 }
 0x2ed   : > { %v3085_v35 = vmax.f32 %v2781_v22, 0.0 }
 0x2ee   : > { %v3372_v24 = vadd.f32 %v3371_v15, %v3370_v8  ;;  %v3442_v25 = vadd.f32 %v3441_v17, %v3440_v9  ;;  %v3406_v26 = vrot.slane %v3405_v19, 2  ;;  %v3476_v28 = vrot.slane %v3475_v52, 2  ;;  %v9594_v29 = vpop.f32.mrf.mxu0  ;;  %v2783_v31 = vpop.f32.mrf.mxu1  ;;  %v9613_v9 = vld [vmem:[#allocation2 + $0xcc] sm:$0xff]  }
 0x2ef   : > { %v3093_v18 = vmax.f32 %v2783_v31, 0.0 }
 0x2f0   : > { %v3373_v50 = vrot.slane %v3372_v24, 1  ;;  %v3443_v38 = vrot.slane %v3442_v25, 1  ;;  %v3407_v39 = vadd.f32 %v3406_v26, %v3405_v19  ;;  %v3477_v40 = vadd.f32 %v3476_v28, %v3475_v52  ;;  %v9599_v41 = vpop.f32.mrf.mxu0  ;;  %v2785_v43 = vpop.f32.mrf.mxu1 }
 0x2f1   : > { %v3094_v44 = vmax.f32 %v2785_v43, 0.0  ;;  %v3550_v47 = vadd.f32 %v3093_v18, %v3084_v23  ;;  %v8390_v23 = vld [vmem:[#allocation2 + $0x58] sm:$0xff]  }
 0x2f2   : > { %v3444_v45 = vadd.f32 %v3443_v38, %v3442_v25  ;;  %v3408_v46 = vrot.slane %v3407_v39, 1  ;;  %v3478_v16 = vrot.slane %v3477_v40, 1  ;;  %v9601_v48 = vpop.f32.mrf.mxu0  ;;  %v2789_v53 = vpop.f32.mrf.mxu1  ;;  %7907 = vmatmul.mubr.bf16.gmra.mxu0 %v8389_v54  ;;  %4435 = vmatmul.mubr.bf16.gmra.mxu1 %v8228_v32  ;;  %v3374_v58 = vadd.f32 %v3373_v50, %v3372_v24  ;;  %v9635_v18 = vld [vmem:[#allocation2 + $0xd4] sm:$0xff]  }
 0x2f3   : > { %v3102_v56 = vmax.f32 %v2789_v53, 0.0  ;;  %7910 = vmatprep.mubr.msk.bf16.mxu0 %vm8481_vm6, %v10321_v42  ;;  %4444 = vmatprep.mubr.bf16.mxu1 %v10319_v37  ;;  %v3585_v61 = vadd.f32 %v3094_v44, %v3085_v35 }
 0x2f4   : > { %v3409_v59 = vadd.f32 %v3408_v46, %v3407_v39  ;;  %v3479_v60 = vadd.f32 %v3478_v16, %v3477_v40  ;;  %v9609_v62 = vpop.f32.mrf.mxu0  ;;  %v2791_v63 = vpop.f32.mrf.mxu1  ;;  %v8391_v16 = vld [vmem:[#allocation2 + $0x60] sm:$0xff]  }
 0x2f5   : > { %v3103_v1 = vmax.f32 %v2791_v63, 0.0  ;;  %v3551_v6 = vadd.f32 %v3550_v47, %v3102_v56  ;;  %v9649_v63 = vld [vmem:[#allocation2 + $0xdc] sm:$0xff]  }
 0x2f6   : > { %v3664_v3 = vcombine.low %v3374_v58, %v3409_v59  ;;  %v3665_v5 = vcombine.low %v3444_v45, %v3479_v60  ;;  %v9611_v7 = vpop.f32.mrf.mxu0  ;;  %v2793_v8 = vpop.f32.mrf.mxu1 }
 0x2f7   : > { %v3111_v10 = vmax.f32 %v2793_v8, 0.0  ;;  %v3586_v2 = vadd.f32 %v3585_v61, %v3103_v1 }
 0x2f8   : > { %v9616_v11 = vrot.slane %v3664_v3, %v9604_v55  ;;  %v9619_v0 = vrot.slane %v3665_v5, %v9604_v55  ;;  %v9621_v49 = vpop.f32.mrf.mxu0  ;;  %v2795_v13 = vpop.f32.mrf.mxu1 }
 0x2f9   : > { %v3112_v15 = vmax.f32 %v2795_v13, 0.0  ;;  %v3552_v19 = vadd.f32 %v3551_v6, %v3111_v10  ;;  %v3110_v17 = vmax.f32 %v9621_v49, 0.0 }
 0x2fa   : > { %v9625_v52 = vpop.f32.mrf.mxu0  ;;  %v2799_v22 = vpop.f32.mrf.mxu1  ;;  %7911 = vmatmul.mubr.bf16.gmra.mxu0 %v8390_v23  ;;  %4445 = vmatmul.mubr.bf16.gmra.mxu1 %v9613_v9 }
 0x2fb   : > { %v3120_v24 = vmax.f32 %v2799_v22, 0.0  ;;  %7914 = vmatprep.mubr.msk.bf16.mxu0 %vm8481_vm6, %v10321_v42  ;;  %4454 = vmatprep.mubr.bf16.mxu1 %v10319_v37  ;;  %v3587_v25 = vadd.f32 %v3586_v2, %v3112_v15  ;;  %v8392_v15 = vld [vmem:[#allocation2 + $0x68] sm:$0xff]  }
 0x2fc   : > { %v9631_v26 = vpop.f32.mrf.mxu0  ;;  %v2801_v28 = vpop.f32.mrf.mxu1 }
 0x2fd   : > { %v3121_v31 = vmax.f32 %v2801_v28, 0.0  ;;  %v3553_v32 = vadd.f32 %v3552_v19, %v3120_v24  ;;  %v3119_v49 = vmax.f32 %v9631_v26, 0.0 }
 0x2fe   : > { %v9633_v33 = vpop.f32.mrf.mxu0  ;;  %v2803_v35 = vpop.f32.mrf.mxu1 }
 0x2ff   : > { %v3129_v50 = vmax.f32 %v2803_v35, 0.0  ;;  %v3588_v38 = vadd.f32 %v3587_v25, %v3121_v31  ;;  %v9663_v35 = vld [vmem:[#allocation2 + $0xe4] ss:$0 sps:$4 sm:$0x11]  }
 0x300   : > { %v9637_v39 = vpop.f32.mrf.mxu0  ;;  %v2805_v40 = vpop.f32.mrf.mxu1 }
 0x301   : > { %v3130_v43 = vmax.f32 %v2805_v40, 0.0  ;;  %v3554_v44 = vadd.f32 %v3553_v32, %v3129_v50  ;;  %v3128_v26 = vmax.f32 %v9637_v39, 0.0 }
 0x302   : > { %v9639_v45 = vpop.f32.mrf.mxu0  ;;  %v2809_v46 = vpop.f32.mrf.mxu1  ;;  %7915 = vmatmul.mubr.bf16.gmra.mxu0 %v8391_v16  ;;  %4455 = vmatmul.mubr.bf16.gmra.mxu1 %v9635_v18 }
 0x303   : > { %v3138_v47 = vmax.f32 %v2809_v46, 0.0  ;;  %7918 = vmatprep.mubr.msk.bf16.mxu0 %vm8481_vm6, %v10321_v42  ;;  %4464 = vmatprep.mubr.bf16.mxu1 %v10319_v37  ;;  %v3589_v53 = vadd.f32 %v3588_v38, %v3130_v43 }
 0x304   : > { %v9645_v54 = vpop.f32.mrf.mxu0  ;;  %v2811_v56 = vpop.f32.mrf.mxu1 }
 0x305   : > { %v3139_v58 = vmax.f32 %v2811_v56, 0.0  ;;  %v3555_v59 = vadd.f32 %v3554_v44, %v3138_v47 }
 0x306   : > { %v9647_v60 = vpop.f32.mrf.mxu0  ;;  %v2813_v61 = vpop.f32.mrf.mxu1 }
 0x307   : > { %v3147_v1 = vmax.f32 %v2813_v61, 0.0  ;;  %v3590_v3 = vadd.f32 %v3589_v53, %v3139_v58  ;;  %v8393_v53 = vld [vmem:[#allocation2 + $0x70] ss:$0 sps:$4 sm:$0x11]  }
 0x308   : > { %v9651_v5 = vpop.f32.mrf.mxu0  ;;  %v2815_v6 = vpop.f32.mrf.mxu1 }
 0x309   : > { %v3148_v8 = vmax.f32 %v2815_v6, 0.0  ;;  %v3556_v10 = vadd.f32 %v3555_v59, %v3147_v1 }
 0x30a   : > { %v9653_v2 = vpop.f32.mrf.mxu0  ;;  %v2819_v13 = vpop.f32.mrf.mxu1  ;;  %7919 = vmatmul.mubr.bf16.gmra.mxu0 %v8392_v15  ;;  %4465 = vmatmul.mubr.bf16.gmra.mxu1 %v9649_v63 }
 0x30b   : > { %v3156_v19 = vmax.f32 %v2819_v13, 0.0  ;;  %7922 = vmatprep.mubr.msk.bf16.mxu0 %vm8481_vm6, %v10321_v42  ;;  %4474 = vmatprep.mubr.bf16.mxu1 %v10319_v37  ;;  %v3591_v22 = vadd.f32 %v3590_v3, %v3148_v8  ;;  %v8260_v13 = vld [vmem:[%s8742_s9 + $0x210] ss:$36 sps:$4 sm:$0xff]  }
 0x30c   : > { %v9659_v23 = vpop.f32.mrf.mxu0  ;;  %v2821_v24 = vpop.f32.mrf.mxu1 }
 0x30d   : > { %v3157_v25 = vmax.f32 %v2821_v24, 0.0  ;;  %v3557_v28 = vadd.f32 %v3556_v10, %v3156_v19  ;;  %v8265_v24 = vld [vmem:[%s8742_s9 + $0x1cc] ss:$36 sps:$4 sm:$0xff]  }
 0x30e   : > { %v9661_v31 = vpop.f32.mrf.mxu0  ;;  %v2823_v32 = vpop.f32.mrf.mxu1 }
 0x30f   : > { %v3165_v50 = vmax.f32 %v2823_v32, 0.0  ;;  %v3592_v38 = vadd.f32 %v3591_v22, %v3157_v25 }
 0x310   : > { %v9665_v40 = vpop.f32.mrf.mxu0  ;;  %v2825_v43 = vpop.f32.mrf.mxu1 }
 0x311   : > { %v3166_v44 = vmax.f32 %v2825_v43, 0.0  ;;  %v3558_v46 = vadd.f32 %v3557_v28, %v3165_v50  ;;  %v8278_v28 = vld [vmem:[%s8742_s9 + $0x218] ss:$36 sps:$4 sm:$0xff]  }
 0x312   : > { %v9667_v16 = vpop.f32.mrf.mxu0  ;;  %v2829_v47 = vpop.f32.mrf.mxu1  ;;  %7923 = vmatmul.mubr.bf16.gmra.mxu0 %v8393_v53  ;;  %4475 = vmatmul.mubr.bf16.gmra.mxu1 %v9663_v35 }
 0x313   : > { %v3174_v56 = vmax.f32 %v2829_v47, 0.0  ;;  %4515 = vmatprep.mubr.bf16.mxu0 %v10319_v37  ;;  %4696 = vmatprep.mubr.bf16.mxu1 %v10319_v37  ;;  %v3593_v58 = vadd.f32 %v3592_v38, %v3166_v44  ;;  %v8263_v44 = vld [vmem:[%s8742_s9 + $0x1c8] ss:$36 sps:$4 sm:$0xff]  }
 0x314   : > { %v9672_v59 = vpop.f32.mrf.mxu0  ;;  %v2831_v61 = vpop.f32.mrf.mxu1 }
 0x315   : > { %v3175_v1 = vmax.f32 %v2831_v61, 0.0  ;;  %v3559_v3 = vadd.f32 %v3558_v46, %v3174_v56  ;;  %v8268_v56 = vld [vmem:[%s8742_s9 + $0x184] ss:$36 sps:$4 sm:$0xff]   ;;  %v8282_v61 = vld [vmem:[%s8742_s9 + $0x1d0] ss:$36 sps:$4 sm:$0xff]  }
 0x316   : > { %v9674_v6 = vpop.f32.mrf.mxu0  ;;  %v2833_v8 = vpop.f32.mrf.mxu1 }
 0x317   : > { %v3183_v10 = vmax.f32 %v2833_v8, 0.0  ;;  %v3594_v15 = vadd.f32 %v3593_v58, %v3175_v1 }
 0x318   : > { %v9677_v19 = vpop.f32.mrf.mxu0  ;;  %v2835_v22 = vpop.f32.mrf.mxu1 }
 0x319   : > { %v3184_v25 = vmax.f32 %v2835_v22, 0.0  ;;  %v3560_v32 = vadd.f32 %v3559_v3, %v3183_v10  ;;  %v8266_v22 = vld [vmem:[%s8742_s9 + $0x180] ss:$36 sps:$4 sm:$0xff]  }
 0x31a   : > { %v9681_v50 = vpop.f32.mrf.mxu0  ;;  %v2839_v38 = vpop.f32.mrf.mxu1  ;;  %4516 = vmatmul.mubr.bf16.vlgmr.msra.gmra.mxu0 %v9503_v21  ;;  %4697 = vmatmul.mubr.bf16.vlgmr.msra.gmra.mxu1 %v9503_v21 }
 0x31b   : > { %v3192_v43 = vmax.f32 %v2839_v38, 0.0  ;;  %4846 = vmatpush1.bf16.msra.mxu0 %v8260_v13  ;;  %4525 = vmatprep.mubr.bf16.mxu0 %v10319_v37  ;;  %v3595_v46 = vadd.f32 %v3594_v15, %v3184_v25  ;;  %v8271_v25 = vld [vmem:[%s8742_s9 + $0x13c] ss:$36 sps:$4 sm:$0xff]  }
 0x31c   : > { %v9687_v47 = vpop.f32.mrf.mxu0  ;;  %v2841_v53 = vpop.f32.mrf.mxu1  ;;  %4706 = vmatprep.mubr.bf16.mxu1 %v10319_v37  ;;  %4847 = vmatprep.subr.bf16.mxu0 %v8265_v24 }
 0x31d   : > { %v3193_v58 = vmax.f32 %v2841_v53, 0.0  ;;  %7927 = vmatpush3.bf16.msra.mxu1 %v8278_v28  ;;  %v3561_v21 = vadd.f32 %v3560_v32, %v3192_v43  ;;  %v8283_v28 = vld [vmem:[%s8742_s9 + $0x188] ss:$36 sps:$4 sm:$0xff]  }
 0x31e   : > { %v9692_v1 = vpop.f32.mrf.mxu0  ;;  %v2843_v3 = vpop.f32.mrf.mxu1  ;;  %7928 = vmatprep.subr.bf16.mxu1 %v10321_v42 }
 0x31f   : > { %v3201_v8 = vmax.f32 %v2843_v3, 0.0  ;;  %4848 = vmatpush1.bf16.msra.mxu0 %v8263_v44  ;;  %v3596_v10 = vadd.f32 %v3595_v46, %v3193_v58  ;;  %v3091_v46 = vmax.f32 %v9594_v29, 0.0  ;;  %v3100_v29 = vmax.f32 %v9601_v48, 0.0 }
 0x320   : > { %v9695_v13 = vpop.f32.mrf.mxu0  ;;  %v2845_v15 = vpop.f32.mrf.mxu1  ;;  %4849 = vmatprep.subr.bf16.mxu0 %v8268_v56 }
 0x321   : > { %v3202_v24 = vmax.f32 %v2845_v15, 0.0  ;;  %7929 = vmatpush3.bf16.msra.mxu1 %v8282_v61  ;;  %v3562_v38 = vadd.f32 %v3561_v21, %v3201_v8  ;;  %v8269_v61 = vld [vmem:[%s8742_s9 + $0x138] ss:$36 sps:$4 sm:$0xff]   ;;  %v3092_v21 = vmax.f32 %v9599_v41, 0.0  ;;  %v8284_v8 = vld [vmem:[%s8742_s9 + $0x140] ss:$36 sps:$4 sm:$0xff]  }
 0x322   : > { %v9700_v32 = vpop.f32.mrf.mxu0  ;;  %v2849_v43 = vpop.f32.mrf.mxu1  ;;  %4526 = vmatmul.mubr.bf16.gmra.mxu0 %v9516_v57  ;;  %4707 = vmatmul.mubr.bf16.gmra.mxu1 %v9516_v57  ;;  %v8274_v57 = vld [vmem:[%s8742_s9 + $0xf4] ss:$36 sps:$4 sm:$0xff]   ;;  %v3082_v15 = vmax.f32 %v9587_v12, 0.0  ;;  %v3101_v41 = vmax.f32 %v9609_v62, 0.0  ;;  %v3118_v62 = vmax.f32 %v9625_v52, 0.0 }
 0x323   : > { %v3210_v44 = vmax.f32 %v2849_v43, 0.0  ;;  %4535 = vmatprep.mubr.bf16.mxu0 %v10319_v37  ;;  %4716 = vmatprep.mubr.bf16.mxu1 %v10319_v37  ;;  %v3597_v53 = vadd.f32 %v3596_v10, %v3202_v24 }
 0x324   : > { %v9707_v56 = vpop.f32.mrf.mxu0  ;;  %v2851_v58 = vpop.f32.mrf.mxu1  ;;  %4850 = vmatpush1.bf16.msra.mxu0 %v8266_v22  ;;  %7930 = vmatprep.subr.bf16.mxu1 %v10321_v42  ;;  %v3083_v22 = vmax.f32 %v9592_v20, 0.0  ;;  %v8288_v20 = vld [vmem:[%s8742_s9 + $0xf8] ss:$36 sps:$4 sm:$0xff]  }
 0x325   : > { %v3211_v3 = vmax.f32 %v2851_v58, 0.0  ;;  %4851 = vmatprep.subr.bf16.mxu0 %v8271_v25  ;;  %7931 = vmatpush3.bf16.msra.mxu1 %v8283_v28  ;;  %v3563_v10 = vadd.f32 %v3562_v38, %v3210_v44  ;;  %v3480_v28 = vadd.f32 %v3091_v46, %v3082_v15  ;;  %v3109_v58 = vmax.f32 %v9611_v7, 0.0  ;;  %v8272_v38 = vld [vmem:[%s8742_s9 + $0xf0] ss:$36 sps:$4 sm:$0xff]  }
 0x326   : > { %v9716_v24 = vpop.f32.mrf.mxu0  ;;  %v2853_v43 = vpop.f32.mrf.mxu1  ;;  %7932 = vmatprep.subr.bf16.mxu1 %v10321_v42  ;;  %v3515_v44 = vadd.f32 %v3092_v21, %v3083_v22  ;;  %v8277_v42 = vld [vmem:[%s8742_s9 + $0xac] ss:$36 sps:$4 sm:$0xff]  }
 0x327   : > { %v3219_v25 = vmax.f32 %v2853_v43, 0.0  ;;  %v3598_v14 = vadd.f32 %v3597_v53, %v3211_v3  ;;  %v3481_v34 = vadd.f32 %v3480_v28, %v3100_v29  ;;  %v10325_v3 = vmov 0  }
 0x328   : > { %v9722_v12 = vpop.f32.mrf.mxu0  ;;  %v2855_v48 = vpop.f32.mrf.mxu1  ;;  %4852 = vmatpush1.bf16.msra.mxu0 %v8269_v61  ;;  %v3516_v61 = vadd.f32 %v3515_v44, %v3101_v41  ;;  %v8281_v41 = vld [vmem:[%s8742_s9 + $0x64] ss:$36 sps:$4 sm:$0xff]  }
 0x329   : > { %v3220_v37 = vmax.f32 %v2855_v48, 0.0  ;;  %4853 = vmatprep.subr.bf16.mxu0 %v8274_v57  ;;  %7933 = vmatpush3.bf16.msra.mxu1 %v8284_v8  ;;  %v3564_v46 = vadd.f32 %v3563_v10, %v3219_v25  ;;  %v3482_v52 = vadd.f32 %v3481_v34, %v3109_v58  ;;  %v3127_v57 = vmax.f32 %v9633_v33, 0.0  ;;  %v8275_v10 = vld [vmem:[%s8742_s9 + $0xa8] ss:$36 sps:$4 sm:$0xff]   ;;  %v8289_v25 = vld [vmem:[%s8742_s9 + $0xb0] ss:$36 sps:$4 sm:$0xff]  }
 0x32a   : > { %v9729_v7 = vpop.f32.mrf.mxu0  ;;  %v2859_v53 = vpop.f32.mrf.mxu1  ;;  %4536 = vmatmul.mubr.bf16.gmra.mxu0 %v9530_v27  ;;  %4717 = vmatmul.mubr.bf16.gmra.mxu1 %v9530_v27  ;;  %v10326_v27 = vmov 0.0   ;;  %v3517_v43 = vadd.f32 %v3516_v61, %v3110_v17  ;;  %v3136_v33 = vmax.f32 %v9639_v45, 0.0  ;;  %v3137_v17 = vmax.f32 %v9645_v54, 0.0  ;;  %v8279_v45 = vld [vmem:[%s8742_s9 + $0x60] ss:$36 sps:$4 sm:$0xff]  }
 0x32b   : > { %v3228_v21 = vmax.f32 %v2859_v53, 0.0  ;;  %4545 = vmatprep.mubr.bf16.mxu0 %v10325_v3  ;;  %4726 = vmatprep.mubr.bf16.mxu1 %v10325_v3  ;;  %v3599_v8 = vadd.f32 %v3598_v14, %v3220_v37  ;;  %v3483_v34 = vadd.f32 %v3482_v52, %v3118_v62  ;;  %v3145_v48 = vmax.f32 %v9647_v60, 0.0  ;;  %v8287_v61 = vld [vmem:[%s8742_s9 + $0x1c] ss:$36 sps:$4 sm:$0xff]  }
 0x32c   : > { %v9737_v15 = vpop.f32.mrf.mxu0  ;;  %v2861_v29 = vpop.f32.mrf.mxu1  ;;  %4854 = vmatpush1.bf16.msra.mxu0 %v8272_v38  ;;  %7934 = vmatprep.subr.bf16.mxu1 %v10326_v27  ;;  %v3518_v58 = vadd.f32 %v3517_v43, %v3119_v49  ;;  %v8290_v49 = vld [vmem:[%s8742_s9 + $0x68] ss:$36 sps:$4 sm:$0xff]   ;;  %v3154_v54 = vmax.f32 %v9653_v2, 0.0  ;;  %v3163_v2 = vmax.f32 %v9661_v31, 0.0 }
 0x32d   : > { %v3229_v22 = vmax.f32 %v2861_v29, 0.0  ;;  %4855 = vmatprep.subr.bf16.mxu0 %v8277_v42  ;;  %7935 = vmatpush3.bf16.msra.mxu1 %v8288_v20  ;;  %v3565_v37 = vadd.f32 %v3564_v46, %v3228_v21  ;;  %v3484_v42 = vadd.f32 %v3483_v34, %v3127_v57  ;;  %v3146_v46 = vmax.f32 %v9651_v5, 0.0  ;;  %v8291_v34 = vld [vmem:[%s8742_s9 + $0x20] ss:$36 sps:$4 sm:$0xff]  }
 0x32e   : > { %v9745_v14 = vpop.f32.mrf.mxu0  ;;  %v2863_v28 = vpop.f32.mrf.mxu1  ;;  %7936 = vmatprep.subr.bf16.mxu1 %v10326_v27  ;;  %v3519_v62 = vadd.f32 %v3518_v58, %v3128_v26  ;;  %v3155_v5 = vmax.f32 %v9659_v23, 0.0  ;;  %v3164_v23 = vmax.f32 %v9665_v40, 0.0  ;;  %v3181_v40 = vmax.f32 %v9674_v6, 0.0 }
 0x32f   : > { %v3237_v39 = vmax.f32 %v2863_v28, 0.0  ;;  %v3600_v38 = vadd.f32 %v3599_v8, %v3229_v22  ;;  %v3485_v21 = vadd.f32 %v3484_v42, %v3136_v33 }
 0x330   : > { %v9750_v44 = vpop.f32.mrf.mxu0  ;;  %v2865_v20 = vpop.f32.mrf.mxu1  ;;  %4856 = vmatpush1.bf16.msra.mxu0 %v8275_v10  ;;  %v3520_v8 = vadd.f32 %v3519_v62, %v3137_v17 }
 0x331   : > { %v3238_v53 = vmax.f32 %v2865_v20, 0.0  ;;  %4857 = vmatprep.subr.bf16.mxu0 %v8281_v41  ;;  %7937 = vmatpush3.bf16.msra.mxu1 %v8289_v25  ;;  %v3566_v52 = vadd.f32 %v3565_v37, %v3237_v39  ;;  %v3486_v10 = vadd.f32 %v3485_v21, %v3145_v48  ;;  %v8285_v41 = vld [vmem:[%s8742_s9 + $0x18] ss:$36 sps:$4 sm:$0xff]   ;;  %v3172_v37 = vmax.f32 %v9667_v16, 0.0 }
 0x332   : > { %v9757_v60 = vpop.f32.mrf.mxu0  ;;  %v2869_v57 = vpop.f32.mrf.mxu1  ;;  %4546 = vmatmul.mubr.bf16.gmra.mxu0 %v9544_v51  ;;  %4727 = vmatmul.mubr.bf16.gmra.mxu1 %v9544_v51  ;;  %v3521_v51 = vadd.f32 %v3520_v8, %v3146_v46  ;;  %v3173_v39 = vmax.f32 %v9672_v59, 0.0  ;;  %v3182_v16 = vmax.f32 %v9677_v19, 0.0 }
 0x333   : > { %v3246_v29 = vmax.f32 %v2869_v57, 0.0  ;;  %4555 = vmatprep.mubr.bf16.mxu0 %v10325_v3  ;;  %4736 = vmatprep.mubr.bf16.mxu1 %v10325_v3  ;;  %v3601_v43 = vadd.f32 %v3600_v38, %v3238_v53  ;;  %v3487_v33 = vadd.f32 %v3486_v10, %v3154_v54  ;;  %v3191_v54 = vmax.f32 %v9687_v47, 0.0 }
 0x334   : > { %v9765_v26 = vpop.f32.mrf.mxu0  ;;  %v2871_v22 = vpop.f32.mrf.mxu1  ;;  %4858 = vmatpush1.bf16.msra.mxu0 %v8279_v45  ;;  %7938 = vmatprep.subr.bf16.mxu1 %v10326_v27  ;;  %v3522_v17 = vadd.f32 %v3521_v51, %v3155_v5  ;;  %v3199_v57 = vmax.f32 %v9692_v1, 0.0  ;;  %v3200_v10 = vmax.f32 %v9695_v13, 0.0 }
 0x335   : > { %v3247_v25 = vmax.f32 %v2871_v22, 0.0  ;;  %4859 = vmatprep.subr.bf16.mxu0 %v8287_v61  ;;  %7939 = vmatpush3.bf16.msra.mxu1 %v8290_v49  ;;  %v3567_v28 = vadd.f32 %v3566_v52, %v3246_v29  ;;  %v3488_v48 = vadd.f32 %v3487_v33, %v3163_v2  ;;  %v3190_v61 = vmax.f32 %v9681_v50, 0.0 }
 0x336   : > { %v9772_v31 = vpop.f32.mrf.mxu0  ;;  %v2873_v58 = vpop.f32.mrf.mxu1  ;;  %7940 = vmatprep.subr.bf16.mxu1 %v10326_v27  ;;  %v3523_v62 = vadd.f32 %v3522_v17, %v3164_v23  ;;  %v3209_v23 = vmax.f32 %v9707_v56, 0.0 }
 0x337   : > { %v3255_v42 = vmax.f32 %v2873_v58, 0.0  ;;  %v3602_v38 = vadd.f32 %v3601_v43, %v3247_v25  ;;  %v3489_v53 = vadd.f32 %v3488_v48, %v3172_v37  ;;  %v3208_v43 = vmax.f32 %v9700_v32, 0.0 }
 0x338   : > { %v9777_v20 = vpop.f32.mrf.mxu0  ;;  %v2875_v45 = vpop.f32.mrf.mxu1  ;;  %4860 = vmatpush1.bf16.msra.mxu0 %v8285_v41  ;;  %v3524_v6 = vadd.f32 %v3523_v62, %v3173_v39  ;;  %v3218_v58 = vmax.f32 %v9722_v12, 0.0  ;;  %v3226_v39 = vmax.f32 %v9729_v7, 0.0 }
 0x339   : > { %v3256_v46 = vmax.f32 %v2875_v45, 0.0  ;;  %7941 = vmatpush3.bf16.msra.mxu1 %v8291_v34  ;;  %v3568_v49 = vadd.f32 %v3567_v28, %v3255_v42  ;;  %v3490_v19 = vadd.f32 %v3489_v53, %v3181_v40  ;;  %v3217_v34 = vmax.f32 %v9716_v24, 0.0 }
 0x33a   : > { %v9781_v21 = vpop.f32.mrf.mxu0  ;;  %v2879_v59 = vpop.f32.mrf.mxu1  ;;  %4556 = vmatmul.mubr.bf16.gmra.mxu0 %v9558_v36  ;;  %4737 = vmatmul.mubr.bf16.gmra.mxu1 %v9558_v36  ;;  %v3525_v29 = vadd.f32 %v3524_v6, %v3182_v16  ;;  %v3227_v24 = vmax.f32 %v9737_v15, 0.0  ;;  %v3235_v45 = vmax.f32 %v9745_v14, 0.0  ;;  %v3236_v53 = vmax.f32 %v9750_v44, 0.0 }
 0x33b   : > { %v3264_v52 = vmax.f32 %v2879_v59, 0.0  ;;  %4565 = vmatprep.mubr.bf16.mxu0 %v10325_v3  ;;  %4746 = vmatprep.mubr.bf16.mxu1 %v10325_v3  ;;  %v3603_v50 = vadd.f32 %v3602_v38, %v3256_v46  ;;  %v3491_v36 = vadd.f32 %v3490_v19, %v3190_v61  ;;  %v3254_v44 = vmax.f32 %v9777_v20, 0.0 }
 0x33c   : > { %v9789_v8 = vpop.f32.mrf.mxu0  ;;  %v2881_v5 = vpop.f32.mrf.mxu1  ;;  %v3526_v51 = vadd.f32 %v3525_v29, %v3191_v54 }
 0x33d   : > { %v3265_v2 = vmax.f32 %v2881_v5, 0.0  ;;  %v3569_v47 = vadd.f32 %v3568_v49, %v3264_v52  ;;  %v3492_v1 = vadd.f32 %v3491_v36, %v3199_v57  ;;  %v3244_v49 = vmax.f32 %v9757_v60, 0.0 }
 0x33e   : > { %v9793_v22 = vpop.f32.mrf.mxu0  ;;  %v2883_v41 = vpop.f32.mrf.mxu1  ;;  %v3527_v13 = vadd.f32 %v3526_v51, %v3200_v10  ;;  %v3245_v52 = vmax.f32 %v9765_v26, 0.0  ;;  %v3253_v57 = vmax.f32 %v9772_v31, 0.0  ;;  %v3262_v60 = vmax.f32 %v9781_v21, 0.0 }
 0x33f   : > { %v3273_v25 = vmax.f32 %v2883_v41, 0.0  ;;  %v3604_v33 = vadd.f32 %v3603_v50, %v3265_v2  ;;  %v3493_v32 = vadd.f32 %v3492_v1, %v3208_v43  ;;  %v3263_v31 = vmax.f32 %v9789_v8, 0.0 }
 0x340   : > { %v9797_v37 = vpop.f32.mrf.mxu0  ;;  %v2885_v28 = vpop.f32.mrf.mxu1  ;;  %v3528_v56 = vadd.f32 %v3527_v13, %v3209_v23  ;;  %v3271_v23 = vmax.f32 %v9793_v22, 0.0 }
 0x341   : > { %v3274_v17 = vmax.f32 %v2885_v28, 0.0  ;;  %v3570_v42 = vadd.f32 %v3569_v47, %v3273_v25  ;;  %v3494_v12 = vadd.f32 %v3493_v32, %v3217_v34 }
 0x342   : > { %v9801_v48 = vpop.f32.mrf.mxu0  ;;  %v2889_v40 = vpop.f32.mrf.mxu1  ;;  %4566 = vmatmul.mubr.bf16.gmra.mxu0 %v9565_v4  ;;  %4747 = vmatmul.mubr.bf16.gmra.mxu1 %v9565_v4  ;;  %v3529_v46 = vadd.f32 %v3528_v56, %v3218_v58 }
 0x343   : > { %v3282_v38 = vmax.f32 %v2889_v40, 0.0  ;;  %4575 = vmatprep.mubr.bf16.mxu0 %v10325_v3  ;;  %4756 = vmatprep.mubr.bf16.mxu1 %v10325_v3  ;;  %v3605_v7 = vadd.f32 %v3604_v33, %v3274_v17  ;;  %v3495_v4 = vadd.f32 %v3494_v12, %v3226_v39  ;;  %v3272_v33 = vmax.f32 %v9797_v37, 0.0 }
 0x344   : > { %v9809_v62 = vpop.f32.mrf.mxu0  ;;  %v2891_v16 = vpop.f32.mrf.mxu1  ;;  %v3530_v54 = vadd.f32 %v3529_v46, %v3227_v24 }
 0x345   : > { %v3283_v61 = vmax.f32 %v2891_v16, 0.0  ;;  %v3571_v15 = vadd.f32 %v3570_v42, %v3282_v38  ;;  %v3496_v14 = vadd.f32 %v3495_v4, %v3235_v45  ;;  %v3281_v39 = vmax.f32 %v9809_v62, 0.0 }
 0x346   : > { %v9813_v59 = vpop.f32.mrf.mxu0  ;;  %v2893_v6 = vpop.f32.mrf.mxu1  ;;  %v3531_v10 = vadd.f32 %v3530_v54, %v3236_v53 }
 0x347   : > { %v3291_v19 = vmax.f32 %v2893_v6, 0.0  ;;  %v3606_v50 = vadd.f32 %v3605_v7, %v3283_v61  ;;  %v3497_v36 = vadd.f32 %v3496_v14, %v3244_v49  ;;  %v3289_v22 = vmax.f32 %v9813_v59, 0.0  ;;  %v9829_v61 = vld [vmem:[#allocation2 + $0xac] sm:$0xff]  }
 0x348   : > { %v2714_v5 = vpop.f32.mrf.mxu0  ;;  %v2895_v29 = vpop.f32.mrf.mxu1  ;;  %v3532_v26 = vadd.f32 %v3531_v10, %v3245_v52 }
 0x349   : > { %v3292_v2 = vmax.f32 %v2895_v29, 0.0  ;;  %v3572_v43 = vadd.f32 %v3571_v15, %v3291_v19  ;;  %v3498_v20 = vadd.f32 %v3497_v36, %v3253_v57  ;;  %v3290_v45 = vmax.f32 %v2714_v5, 0.0 }
 0x34a   : > { %v2718_v47 = vpop.f32.mrf.mxu0  ;;  %v2899_v41 = vpop.f32.mrf.mxu1  ;;  %4576 = vmatmul.mubr.bf16.gmra.mxu0 %v9571_v30  ;;  %4757 = vmatmul.mubr.bf16.gmra.mxu1 %v9571_v30  ;;  %v3533_v34 = vadd.f32 %v3532_v26, %v3254_v44  ;;  %v3280_v30 = vmax.f32 %v9801_v48, 0.0 }
 0x34b   : > { %v3300_v51 = vmax.f32 %v2899_v41, 0.0  ;;  %4585 = vmatprep.mubr.bf16.mxu0 %v10325_v3  ;;  %4766 = vmatprep.mubr.bf16.mxu1 %v10325_v3  ;;  %v3607_v25 = vadd.f32 %v3606_v50, %v3292_v2  ;;  %v3499_v13 = vadd.f32 %v3498_v20, %v3262_v60  ;;  %v3298_v16 = vmax.f32 %v2718_v47, 0.0 }
 0x34c   : > { %v2720_v21 = vpop.f32.mrf.mxu0  ;;  %v2901_v1 = vpop.f32.mrf.mxu1  ;;  %v3534_v32 = vadd.f32 %v3533_v34, %v3263_v31 }
 0x34d   : > { %v3301_v28 = vmax.f32 %v2901_v1, 0.0  ;;  %v3573_v58 = vadd.f32 %v3572_v43, %v3300_v51  ;;  %v3500_v40 = vadd.f32 %v3499_v13, %v3271_v23  ;;  %v3299_v4 = vmax.f32 %v2720_v21, 0.0 }
 0x34e   : > { %v2722_v8 = vpop.f32.mrf.mxu0  ;;  %v2903_v17 = vpop.f32.mrf.mxu1  ;;  %v3535_v12 = vadd.f32 %v3534_v32, %v3272_v33  ;;  %v9835_v33 = vld [vmem:[#allocation2 + $0xb4] sm:$0xff]  }
 0x34f   : > { %v3309_v42 = vmax.f32 %v2903_v17, 0.0  ;;  %v3608_v56 = vadd.f32 %v3607_v25, %v3301_v28  ;;  %v3501_v7 = vadd.f32 %v3500_v40, %v3280_v30  ;;  %v3307_v59 = vmax.f32 %v2722_v8, 0.0 }
 0x350   : > { %v2724_v24 = vpop.f32.mrf.mxu0  ;;  %v2905_v38 = vpop.f32.mrf.mxu1  ;;  %v3536_v62 = vadd.f32 %v3535_v12, %v3281_v39 }
 0x351   : > { %v3310_v37 = vmax.f32 %v2905_v38, 0.0  ;;  %v3574_v46 = vadd.f32 %v3573_v58, %v3309_v42  ;;  %v3502_v15 = vadd.f32 %v3501_v7, %v3289_v22  ;;  %v3308_v50 = vmax.f32 %v2724_v24, 0.0 }
 0x352   : > { %v2728_v48 = vpop.f32.mrf.mxu0  ;;  %v2909_v53 = vpop.f32.mrf.mxu1  ;;  %4586 = vmatmul.mubr.bf16.gmra.mxu0 %v9829_v61  ;;  %4767 = vmatmul.mubr.bf16.gmra.mxu1 %v9829_v61  ;;  %v3537_v19 = vadd.f32 %v3536_v62, %v3290_v45 }
 0x353   : > { %v3318_v49 = vmax.f32 %v2909_v53, 0.0  ;;  %4595 = vmatprep.mubr.bf16.mxu0 %v10325_v3  ;;  %4776 = vmatprep.mubr.bf16.mxu1 %v10325_v3  ;;  %v3609_v6 = vadd.f32 %v3608_v56, %v3310_v37  ;;  %v3503_v57 = vadd.f32 %v3502_v15, %v3298_v16  ;;  %v3316_v5 = vmax.f32 %v2728_v48, 0.0 }
 0x354   : > { %v2730_v54 = vpop.f32.mrf.mxu0  ;;  %v2911_v52 = vpop.f32.mrf.mxu1  ;;  %v3538_v2 = vadd.f32 %v3537_v19, %v3299_v4  ;;  %v9847_v19 = vld [vmem:[#allocation2 + $0xbc] sm:$0xff]  }
 0x355   : > { %v3319_v14 = vmax.f32 %v2911_v52, 0.0  ;;  %v3575_v29 = vadd.f32 %v3574_v46, %v3318_v49  ;;  %v3504_v60 = vadd.f32 %v3503_v57, %v3307_v59  ;;  %v3317_v43 = vmax.f32 %v2730_v54, 0.0 }
 0x356   : > { %v2732_v10 = vpop.f32.mrf.mxu0  ;;  %v2913_v44 = vpop.f32.mrf.mxu1  ;;  %v3539_v20 = vadd.f32 %v3538_v2, %v3308_v50 }
 0x357   : > { %v3327_v36 = vmax.f32 %v2913_v44, 0.0  ;;  %v3610_v47 = vadd.f32 %v3609_v6, %v3319_v14  ;;  %v3325_v41 = vmax.f32 %v2732_v10, 0.0  ;;  %v3505_v23 = vadd.f32 %v3504_v60, %v3316_v5 }
 0x358   : > { %v2734_v26 = vpop.f32.mrf.mxu0  ;;  %v2915_v31 = vpop.f32.mrf.mxu1  ;;  %v3540_v30 = vadd.f32 %v3539_v20, %v3317_v43 }
 0x359   : > { %v3328_v51 = vmax.f32 %v2915_v31, 0.0  ;;  %v3576_v25 = vadd.f32 %v3575_v29, %v3327_v36  ;;  %v3326_v21 = vmax.f32 %v2734_v26, 0.0  ;;  %v3506_v58 = vadd.f32 %v3505_v23, %v3325_v41 }
 0x35a   : > { %v2738_v1 = vpop.f32.mrf.mxu0  ;;  %v2919_v34 = vpop.f32.mrf.mxu1  ;;  %4596 = vmatmul.mubr.bf16.gmra.mxu0 %v9835_v33  ;;  %4777 = vmatmul.mubr.bf16.gmra.mxu1 %v9835_v33 }
 0x35b   : > { %v3334_v28 = vmax.f32 %v2738_v1, 0.0  ;;  %v3336_v13 = vmax.f32 %v2919_v34, 0.0  ;;  %4605 = vmatprep.mubr.bf16.mxu0 %v10325_v3  ;;  %4786 = vmatprep.mubr.bf16.mxu1 %v10325_v3  ;;  %v3611_v8 = vadd.f32 %v3610_v47, %v3328_v51  ;;  %v3541_v56 = vadd.f32 %v3540_v30, %v3326_v21 }
 0x35c   : > { %v2740_v17 = vpop.f32.mrf.mxu0  ;;  %v2921_v32 = vpop.f32.mrf.mxu1 }
 0x35d   : > { %v3507_v39 = vsel %vm3366_vm7, %v3334_v28, 0.0  ;;  %v3577_v42 = vsel %vm3366_vm7, %v3336_v13, 0.0  ;;  %v3335_v40 = vmax.f32 %v2740_v17, 0.0  ;;  %v3337_v22 = vmax.f32 %v2921_v32, 0.0  ;;  %v9857_v32 = vld [vmem:[#allocation2 + $0xc4] sm:$0xff]  }
 0x35e   : > { %v3508_v24 = vadd.f32 %v3507_v39, %v3506_v58  ;;  %v3578_v38 = vadd.f32 %v3577_v42, %v3576_v25  ;;  %v2742_v12 = vpop.f32.mrf.mxu0  ;;  %v2923_v45 = vpop.f32.mrf.mxu1 }
 0x35f   : > { %v3542_v37 = vsel %vm3366_vm7, %v3335_v40, 0.0  ;;  %v3612_v7 = vsel %vm3366_vm7, %v3337_v22, 0.0 }
 0x360   : > { %v3509_v16 = vrot.slane %v3508_v24, 4  ;;  %v3579_v46 = vrot.slane %v3578_v38, 4  ;;  %v3543_v48 = vadd.f32 %v3542_v37, %v3541_v56  ;;  %v3613_v53 = vadd.f32 %v3612_v7, %v3611_v8  ;;  %v2743_v62 = vpop.f32.mrf.mxu0  ;;  %v2924_v4 = vpop.f32.mrf.mxu1 }
 0x362   : > { %v3510_v49 = vadd.f32 %v3509_v16, %v3508_v24  ;;  %v3580_v15 = vadd.f32 %v3579_v46, %v3578_v38  ;;  %v3544_v59 = vrot.slane %v3543_v48, 4  ;;  %v3614_v6 = vrot.slane %v3613_v53, 4  ;;  %v9845_v54 = vpop.f32.mrf.mxu0  ;;  %v4336_v52 = vpop.f32.mrf.mxu1  ;;  %4606 = vmatmul.mubr.bf16.gmra.mxu0 %v9847_v19  ;;  %4787 = vmatmul.mubr.bf16.gmra.mxu1 %v9847_v19 }
 0x363   : > { %4615 = vmatprep.mubr.bf16.mxu0 %v10325_v3  ;;  %4796 = vmatprep.mubr.bf16.mxu1 %v10325_v3  ;;  %v5178_v44 = vmax.f32 %v4336_v52, 0.0 }
 0x364   : > { %v3511_v14 = vrot.slane %v3510_v49, 2  ;;  %v3581_v57 = vrot.slane %v3580_v15, 2  ;;  %v3545_v50 = vadd.f32 %v3544_v59, %v3543_v48  ;;  %v3615_v5 = vadd.f32 %v3614_v6, %v3613_v53  ;;  %v7868_v29 = vpop.f32.mrf.mxu0  ;;  %v4338_v10 = vpop.f32.mrf.mxu1 }
 0x365   : > { %v5179_v26 = vmax.f32 %v4338_v10, 0.0  ;;  %v10327_v29 = vcombine.low %v9616_v11, %v9619_v0 }
 0x366   : > { %v3512_v2 = vadd.f32 %v3511_v14, %v3510_v49  ;;  %v3582_v36 = vadd.f32 %v3581_v57, %v3580_v15  ;;  %v3546_v60 = vrot.slane %v3545_v50, 2  ;;  %v3616_v43 = vrot.slane %v3615_v5, 2  ;;  %v9853_v47 = vpop.f32.mrf.mxu0  ;;  %v4340_v41 = vpop.f32.mrf.mxu1 }
 0x367   : > { %v5187_v31 = vmax.f32 %v4340_v41, 0.0  ;;  %v3704_v10 = vrot.slane %v10327_v29, %v9604_v55 }
 0x368   : > { %v3513_v51 = vrot.slane %v3512_v2, 1  ;;  %v3583_v20 = vrot.slane %v3582_v36, 1  ;;  %v3547_v23 = vadd.f32 %v3546_v60, %v3545_v50  ;;  %v3617_v25 = vadd.f32 %v3616_v43, %v3615_v5  ;;  %v7869_v21 = vpop.f32.mrf.mxu0  ;;  %v4342_v1 = vpop.f32.mrf.mxu1 }
 0x369   : > { %v5439_v34 = vadd.f32 %v5187_v31, %v5178_v44  ;;  %v5188_v28 = vmax.f32 %v4342_v1, 0.0 }
 0x36a   : > { %v3584_v13 = vadd.f32 %v3583_v20, %v3582_v36  ;;  %v3548_v30 = vrot.slane %v3547_v23, 1  ;;  %v3618_v58 = vrot.slane %v3617_v25, 1  ;;  %v9855_v8 = vpop.f32.mrf.mxu0  ;;  %v4346_v17 = vpop.f32.mrf.mxu1  ;;  %4616 = vmatmul.mubr.bf16.gmra.mxu0 %v9857_v32  ;;  %4797 = vmatmul.mubr.bf16.gmra.mxu1 %v9857_v32  ;;  %v3514_v40 = vadd.f32 %v3513_v51, %v3512_v2 }
 0x36b   : > { %v5474_v39 = vadd.f32 %v5188_v28, %v5179_v26  ;;  %v5196_v42 = vmax.f32 %v4346_v17, 0.0  ;;  %4625 = vmatprep.mubr.bf16.mxu0 %v10325_v3  ;;  %4806 = vmatprep.mubr.bf16.mxu1 %v10325_v3 }
 0x36c   : > { %v3549_v22 = vadd.f32 %v3548_v30, %v3547_v23  ;;  %v3619_v56 = vadd.f32 %v3618_v58, %v3617_v25  ;;  %v7872_v24 = vpop.f32.mrf.mxu0  ;;  %v4348_v38 = vpop.f32.mrf.mxu1 }
 0x36d   : > { %v5440_v12 = vadd.f32 %v5439_v34, %v5196_v42  ;;  %v5197_v45 = vmax.f32 %v4348_v38, 0.0 }
 0x36e   : > { %v3666_v37 = vcombine.low %v3514_v40, %v3549_v22  ;;  %v3667_v7 = vcombine.low %v3584_v13, %v3619_v56  ;;  %v9863_v16 = vpop.f32.mrf.mxu0  ;;  %v4350_v46 = vpop.f32.mrf.mxu1 }
 0x36f   : > { %v5475_v48 = vadd.f32 %v5474_v39, %v5197_v45  ;;  %v5205_v53 = vmax.f32 %v4350_v46, 0.0 }
 0x370   : > { %v3688_v62 = vrot.slane %v3666_v37, %v9604_v55  ;;  %v3695_v4 = vrot.slane %v3667_v7, %v9604_v55  ;;  %v7873_v49 = vpop.f32.mrf.mxu0  ;;  %v4352_v15 = vpop.f32.mrf.mxu1 }
 0x371   : > { %v5441_v59 = vadd.f32 %v5440_v12, %v5205_v53  ;;  %v5206_v6 = vmax.f32 %v4352_v15, 0.0 }
 0x372   : > { %v3697_v52 = vcombine.low %v3688_v62, %v3695_v4  ;;  %v9867_v14 = vpop.f32.mrf.mxu0  ;;  %v4356_v57 = vpop.f32.mrf.mxu1  ;;  %4626 = vmatmul.mubr.bf16.gmra.mxu0 %v9613_v9  ;;  %4807 = vmatmul.mubr.bf16.gmra.mxu1 %v9613_v9 }
 0x373   : > { %v5476_v50 = vadd.f32 %v5475_v48, %v5206_v6  ;;  %v5214_v5 = vmax.f32 %v4356_v57, 0.0  ;;  %4635 = vmatprep.mubr.bf16.mxu0 %v10325_v3  ;;  %4816 = vmatprep.mubr.bf16.mxu1 %v10325_v3 }
 0x374   : > { %v3711_v44 = vrot.slane %v3697_v52, %v9604_v55  ;;  %v7876_v2 = vpop.f32.mrf.mxu0  ;;  %v4358_v36 = vpop.f32.mrf.mxu1 }
 0x375   : > { %v5442_v60 = vadd.f32 %v5441_v59, %v5214_v5  ;;  %v5215_v43 = vmax.f32 %v4358_v36, 0.0 }
 0x376   : > { %v3712_v41 = vcombine.low %v3704_v10, %v3711_v44  ;;  %v9878_v26 = vpop.f32.mrf.mxu0  ;;  %v4360_v9 = vpop.f32.mrf.mxu1 }
 0x377   : > { %v5477_v31 = vadd.f32 %v5476_v50, %v5215_v43  ;;  %v5223_v51 = vmax.f32 %v4360_v9, 0.0 }
 0x378   : > { %3729 = vst [vmem:[#allocation3] ss:$2 sm:$0xff] %v3712_v41  ;;  %v7877_v20 = vpop.f32.mrf.mxu0  ;;  %v4362_v23 = vpop.f32.mrf.mxu1 }
 0x379   : > { %v5443_v25 = vadd.f32 %v5442_v60, %v5223_v51  ;;  %v5224_v21 = vmax.f32 %v4362_v23, 0.0 }
 0x37a   : > { %v9880_v1 = vpop.f32.mrf.mxu0  ;;  %v4366_v11 = vpop.f32.mrf.mxu1  ;;  %4636 = vmatmul.mubr.bf16.gmra.mxu0 %v9635_v18  ;;  %4817 = vmatmul.mubr.bf16.gmra.mxu1 %v9635_v18 }
 0x37b   : > { %v5478_v0 = vadd.f32 %v5477_v31, %v5224_v21  ;;  %v5232_v34 = vmax.f32 %v4366_v11, 0.0  ;;  %4645 = vmatprep.mubr.bf16.mxu0 %v10325_v3  ;;  %4826 = vmatprep.mubr.bf16.mxu1 %v10325_v3  ;;  %v8398_v21 = vld [vmem:[#allocation2 + $0x74] sm:$0xff]  }
 0x37c   : > { %v7880_v28 = vpop.f32.mrf.mxu0  ;;  %v4368_v13 = vpop.f32.mrf.mxu1 }
 0x37d   : > { %v5444_v30 = vadd.f32 %v5443_v25, %v5232_v34  ;;  %v5233_v58 = vmax.f32 %v4368_v13, 0.0 }
 0x37e   : > { %v9886_v17 = vpop.f32.mrf.mxu0  ;;  %v4370_v39 = vpop.f32.mrf.mxu1 }
 0x37f   : > { %v5479_v42 = vadd.f32 %v5478_v0, %v5233_v58  ;;  %v5241_v40 = vmax.f32 %v4370_v39, 0.0 }
 0x380   : > { %v7881_v22 = vpop.f32.mrf.mxu0  ;;  %v4372_v56 = vpop.f32.mrf.mxu1 }
 0x381   : > { %v5445_v24 = vadd.f32 %v5444_v30, %v5241_v40  ;;  %v5242_v38 = vmax.f32 %v4372_v56, 0.0 }
 0x382   : > { %v9888_v18 = vpop.f32.mrf.mxu0  ;;  %v4376_v12 = vpop.f32.mrf.mxu1  ;;  %4646 = vmatmul.mubr.bf16.gmra.mxu0 %v9649_v63  ;;  %4827 = vmatmul.mubr.bf16.gmra.mxu1 %v9649_v63 }
 0x383   : > { %v5480_v45 = vadd.f32 %v5479_v42, %v5242_v38  ;;  %v5250_v37 = vmax.f32 %v4376_v12, 0.0  ;;  %4655 = vmatprep.mubr.bf16.mxu0 %v10325_v3  ;;  %4836 = vmatprep.mubr.bf16.mxu1 %v10325_v3 }
 0x384   : > { %v7884_v7 = vpop.f32.mrf.mxu0  ;;  %v4378_v46 = vpop.f32.mrf.mxu1 }
 0x385   : > { %v5446_v48 = vadd.f32 %v5445_v24, %v5250_v37  ;;  %v5251_v53 = vmax.f32 %v4378_v46, 0.0  ;;  %v8399_v37 = vld [vmem:[#allocation2 + $0x7c] sm:$0xff]  }
 0x386   : > { %v9894_v62 = vpop.f32.mrf.mxu0  ;;  %v4380_v4 = vpop.f32.mrf.mxu1 }
 0x387   : > { %v5481_v49 = vadd.f32 %v5480_v45, %v5251_v53  ;;  %v5259_v15 = vmax.f32 %v4380_v4, 0.0 }
 0x388   : > { %v7885_v59 = vpop.f32.mrf.mxu0  ;;  %v4382_v6 = vpop.f32.mrf.mxu1 }
 0x389   : > { %v5447_v52 = vadd.f32 %v5446_v48, %v5259_v15  ;;  %v5260_v57 = vmax.f32 %v4382_v6, 0.0  ;;  %v3095_v48 = vmax.f32 %v9853_v47, 0.0  ;;  %v3086_v59 = vmax.f32 %v9845_v54, 0.0 }
 0x38a   : > { %v9896_v63 = vpop.f32.mrf.mxu0  ;;  %v4386_v50 = vpop.f32.mrf.mxu1  ;;  %4656 = vmatmul.mubr.bf16.gmra.mxu0 %v9663_v35  ;;  %4837 = vmatmul.mubr.bf16.gmra.mxu1 %v9663_v35  ;;  %v3104_v6 = vmax.f32 %v9855_v8, 0.0 }
 0x38b   : > { %v5482_v5 = vadd.f32 %v5481_v49, %v5260_v57  ;;  %v5268_v29 = vmax.f32 %v4386_v50, 0.0  ;;  %4877 = vmatprep.mubr.bf16.mxu0 %v10325_v3  ;;  %7942 = vmatprep.mubr.msk.bf16.mxu1 %vm8481_vm6, %v10326_v27 }
 0x38c   : > { %v7888_v10 = vpop.f32.mrf.mxu0  ;;  %v4388_v44 = vpop.f32.mrf.mxu1 }
 0x38d   : > { %v5448_v2 = vadd.f32 %v5447_v52, %v5268_v29  ;;  %v5269_v36 = vmax.f32 %v4388_v44, 0.0  ;;  %v3620_v29 = vadd.f32 %v3095_v48, %v3086_v59  ;;  %v3113_v10 = vmax.f32 %v9863_v16, 0.0 }
 0x38e   : > { %v9903_v60 = vpop.f32.mrf.mxu0  ;;  %v4390_v43 = vpop.f32.mrf.mxu1  ;;  %v3167_v48 = vmax.f32 %v9894_v62, 0.0  ;;  %v3176_v59 = vmax.f32 %v9896_v63, 0.0 }
 0x38f   : > { %v5483_v41 = vadd.f32 %v5482_v5, %v5269_v36  ;;  %v5277_v9 = vmax.f32 %v4390_v43, 0.0  ;;  %v3621_v43 = vadd.f32 %v3620_v29, %v3104_v6 }
 0x390   : > { %v7889_v31 = vpop.f32.mrf.mxu0  ;;  %v4392_v51 = vpop.f32.mrf.mxu1 }
 0x391   : > { %v5449_v20 = vadd.f32 %v5448_v2, %v5277_v9  ;;  %v5278_v35 = vmax.f32 %v4392_v51, 0.0  ;;  %v8400_v31 = vld [vmem:[#allocation2 + $0x84] sm:$0xff]   ;;  %v3622_v16 = vadd.f32 %v3621_v43, %v3113_v10  ;;  %v3185_v10 = vmax.f32 %v9903_v60, 0.0 }
 0x392   : > { %v9905_v23 = vpop.f32.mrf.mxu0  ;;  %v4396_v25 = vpop.f32.mrf.mxu1  ;;  %4878 = vmatmul.mubr.bf16.vlgmr.msra.gmra.mxu0 %v8398_v21  ;;  %7943 = vmatmul.mubr.bf16.vlgmr.msra.gmra.mxu1 %v8398_v21 }
 0x393   : > { %v5484_v11 = vadd.f32 %v5483_v41, %v5278_v35  ;;  %v5286_v0 = vmax.f32 %v4396_v25, 0.0  ;;  %4887 = vmatprep.mubr.bf16.mxu0 %v10325_v3  ;;  %7946 = vmatprep.mubr.msk.bf16.mxu1 %vm8481_vm6, %v10326_v27  ;;  %v3122_v41 = vmax.f32 %v9867_v14, 0.0  ;;  %v3194_v43 = vmax.f32 %v9905_v23, 0.0 }
 0x394   : > { %v7892_v34 = vpop.f32.mrf.mxu0  ;;  %v4398_v28 = vpop.f32.mrf.mxu1 }
 0x395   : > { %v5450_v13 = vadd.f32 %v5449_v20, %v5286_v0  ;;  %v5287_v30 = vmax.f32 %v4398_v28, 0.0  ;;  %v3131_v20 = vmax.f32 %v9878_v26, 0.0  ;;  %v3140_v0 = vmax.f32 %v9880_v1, 0.0 }
 0x396   : > { %v9910_v58 = vpop.f32.mrf.mxu0  ;;  %v4400_v39 = vpop.f32.mrf.mxu1 }
 0x397   : > { %v5485_v42 = vadd.f32 %v5484_v11, %v5287_v30  ;;  %v5295_v40 = vmax.f32 %v4400_v39, 0.0  ;;  %v3623_v11 = vadd.f32 %v3622_v16, %v3122_v41 }
 0x398   : > { %v7893_v22 = vpop.f32.mrf.mxu0  ;;  %v4402_v56 = vpop.f32.mrf.mxu1 }
 0x399   : > { %v5451_v24 = vadd.f32 %v5450_v13, %v5295_v40  ;;  %v5296_v38 = vmax.f32 %v4402_v56, 0.0  ;;  %v3624_v39 = vadd.f32 %v3623_v11, %v3131_v20 }
 0x39a   : > { %v9912_v12 = vpop.f32.mrf.mxu0  ;;  %v4406_v45 = vpop.f32.mrf.mxu1  ;;  %4888 = vmatmul.mubr.bf16.gmra.mxu0 %v8399_v37  ;;  %7947 = vmatmul.mubr.bf16.gmra.mxu1 %v8399_v37 }
 0x39b   : > { %v5486_v7 = vadd.f32 %v5485_v42, %v5296_v38  ;;  %v5304_v46 = vmax.f32 %v4406_v45, 0.0  ;;  %4897 = vmatprep.mubr.bf16.mxu0 %v10325_v3  ;;  %7950 = vmatprep.mubr.msk.bf16.mxu1 %vm8481_vm6, %v10326_v27  ;;  %v3149_v42 = vmax.f32 %v9886_v17, 0.0  ;;  %v3625_v26 = vadd.f32 %v3624_v39, %v3140_v0 }
 0x39c   : > { %v7896_v53 = vpop.f32.mrf.mxu0  ;;  %v4408_v4 = vpop.f32.mrf.mxu1  ;;  %v3158_v38 = vmax.f32 %v9888_v18, 0.0 }
 0x39d   : > { %v5452_v49 = vadd.f32 %v5451_v24, %v5304_v46  ;;  %v5305_v15 = vmax.f32 %v4408_v4, 0.0  ;;  %v3626_v17 = vadd.f32 %v3625_v26, %v3149_v42 }
 0x39e   : > { %v9920_v52 = vpop.f32.mrf.mxu0  ;;  %v4410_v57 = vpop.f32.mrf.mxu1 }
 0x39f   : > { %v5487_v50 = vadd.f32 %v5486_v7, %v5305_v15  ;;  %v5313_v5 = vmax.f32 %v4410_v57, 0.0  ;;  %v8401_v7 = vld [vmem:[#allocation2 + $0x8c] sm:$0xff]   ;;  %v3627_v15 = vadd.f32 %v3626_v17, %v3158_v38  ;;  %v8403_v38 = vld [vmem:[#allocation2 + $0x9c] sm:$0xff]  }
 0x3a0   : > { %v7897_v44 = vpop.f32.mrf.mxu0  ;;  %v4412_v2 = vpop.f32.mrf.mxu1 }
 0x3a1   : > { %v5453_v36 = vadd.f32 %v5452_v49, %v5313_v5  ;;  %v5314_v47 = vmax.f32 %v4412_v2, 0.0  ;;  %v3628_v29 = vadd.f32 %v3627_v15, %v3167_v48 }
 0x3a2   : > { %v9924_v9 = vpop.f32.mrf.mxu0  ;;  %v4416_v54 = vpop.f32.mrf.mxu1  ;;  %4898 = vmatmul.mubr.bf16.gmra.mxu0 %v8400_v31  ;;  %7951 = vmatmul.mubr.bf16.gmra.mxu1 %v8400_v31  ;;  %v8402_v31 = vld [vmem:[#allocation2 + $0x94] sm:$0xff]  }
 0x3a3   : > { %v5488_v8 = vadd.f32 %v5487_v50, %v5314_v47  ;;  %v5322_v51 = vmax.f32 %v4416_v54, 0.0  ;;  %4907 = vmatprep.mubr.bf16.mxu0 %v10325_v3  ;;  %7954 = vmatprep.mubr.msk.bf16.mxu1 %vm8481_vm6, %v10326_v27  ;;  %v3629_v62 = vadd.f32 %v3628_v29, %v3176_v59 }
 0x3a4   : > { %v7900_v35 = vpop.f32.mrf.mxu0  ;;  %v4418_v25 = vpop.f32.mrf.mxu1 }
 0x3a5   : > { %v5454_v21 = vadd.f32 %v5453_v36, %v5322_v51  ;;  %v5323_v14 = vmax.f32 %v4418_v25, 0.0  ;;  %v3630_v60 = vadd.f32 %v3629_v62, %v3185_v10  ;;  %v3203_v51 = vmax.f32 %v9910_v58, 0.0 }
 0x3a6   : > { %v9931_v34 = vpop.f32.mrf.mxu0  ;;  %v4420_v28 = vpop.f32.mrf.mxu1 }
 0x3a7   : > { %v5489_v13 = vadd.f32 %v5488_v8, %v5323_v14  ;;  %v5331_v30 = vmax.f32 %v4420_v28, 0.0  ;;  %v3631_v25 = vadd.f32 %v3630_v60, %v3194_v43 }
 0x3a8   : > { %v7901_v40 = vpop.f32.mrf.mxu0  ;;  %v4422_v22 = vpop.f32.mrf.mxu1 }
 0x3a9   : > { %v5455_v56 = vadd.f32 %v5454_v21, %v5331_v30  ;;  %v5332_v24 = vmax.f32 %v4422_v22, 0.0  ;;  %v3212_v21 = vmax.f32 %v9912_v12, 0.0  ;;  %v3221_v30 = vmax.f32 %v9920_v52, 0.0 }
 0x3aa   : > { %v9935_v45 = vpop.f32.mrf.mxu0  ;;  %v4426_v37 = vpop.f32.mrf.mxu1  ;;  %4908 = vmatmul.mubr.bf16.gmra.mxu0 %v8401_v7  ;;  %7955 = vmatmul.mubr.bf16.gmra.mxu1 %v8401_v7  ;;  %v3239_v7 = vmax.f32 %v9931_v34, 0.0 }
 0x3ab   : > { %v5490_v1 = vadd.f32 %v5489_v13, %v5332_v24  ;;  %v5340_v46 = vmax.f32 %v4426_v37, 0.0  ;;  %4917 = vmatprep.mubr.bf16.mxu0 %v10325_v3  ;;  %7958 = vmatprep.mubr.msk.bf16.mxu1 %vm8481_vm6, %v10326_v27  ;;  %v3632_v13 = vadd.f32 %v3631_v25, %v3203_v51 }
 0x3ac   : > { %v7904_v53 = vpop.f32.mrf.mxu0  ;;  %v4428_v4 = vpop.f32.mrf.mxu1 }
 0x3ad   : > { %v5456_v49 = vadd.f32 %v5455_v56, %v5340_v46  ;;  %v5341_v18 = vmax.f32 %v4428_v4, 0.0  ;;  %v3633_v58 = vadd.f32 %v3632_v13, %v3212_v21  ;;  %v3230_v56 = vmax.f32 %v9924_v9, 0.0 }
 0x3ae   : > { %v9942_v6 = vpop.f32.mrf.mxu0  ;;  %v4430_v57 = vpop.f32.mrf.mxu1  ;;  %v3248_v53 = vmax.f32 %v9935_v45, 0.0 }
 0x3af   : > { %v5491_v50 = vadd.f32 %v5490_v1, %v5341_v18  ;;  %v5349_v5 = vmax.f32 %v4430_v57, 0.0  ;;  %v3634_v52 = vadd.f32 %v3633_v58, %v3221_v30  ;;  %v3257_v57 = vmax.f32 %v9942_v6, 0.0 }
 0x3b0   : > { %v7905_v44 = vpop.f32.mrf.mxu0  ;;  %v4432_v2 = vpop.f32.mrf.mxu1 }
 0x3b1   : > { %v5457_v36 = vadd.f32 %v5456_v49, %v5349_v5  ;;  %v5350_v47 = vmax.f32 %v4432_v2, 0.0  ;;  %v3635_v9 = vadd.f32 %v3634_v52, %v3230_v56 }
 0x3b2   : > { %v9946_v41 = vpop.f32.mrf.mxu0  ;;  %v4436_v54 = vpop.f32.mrf.mxu1  ;;  %4918 = vmatmul.mubr.bf16.gmra.mxu0 %v8402_v31  ;;  %7959 = vmatmul.mubr.bf16.gmra.mxu1 %v8402_v31 }
 0x3b3   : > { %v5492_v63 = vadd.f32 %v5491_v50, %v5350_v47  ;;  %v5358_v8 = vmax.f32 %v4436_v54, 0.0  ;;  %4927 = vmatprep.mubr.bf16.mxu0 %v10325_v3  ;;  %7962 = vmatprep.mubr.msk.bf16.mxu1 %vm8481_vm6, %v10326_v27  ;;  %v3636_v59 = vadd.f32 %v3635_v9, %v3239_v7  ;;  %v3266_v34 = vmax.f32 %v9946_v41, 0.0  ;;  %v8404_v47 = vld [vmem:[#allocation2 + $0xa4] sm:$0xff]  }
 0x3b4   : > { %v7908_v16 = vpop.f32.mrf.mxu0  ;;  %v4438_v20 = vpop.f32.mrf.mxu1 }
 0x3b5   : > { %v5458_v35 = vadd.f32 %v5457_v36, %v5358_v8  ;;  %v5359_v23 = vmax.f32 %v4438_v20, 0.0  ;;  %v3637_v44 = vadd.f32 %v3636_v59, %v3248_v53 }
 0x3b6   : > { %v9953_v14 = vpop.f32.mrf.mxu0  ;;  %v4440_v11 = vpop.f32.mrf.mxu1 }
 0x3b7   : > { %v5493_v0 = vadd.f32 %v5492_v63, %v5359_v23  ;;  %v5367_v28 = vmax.f32 %v4440_v11, 0.0  ;;  %v3638_v6 = vadd.f32 %v3637_v44, %v3257_v57  ;;  %v3275_v43 = vmax.f32 %v9953_v14, 0.0 }
 0x3b8   : > { %v7909_v39 = vpop.f32.mrf.mxu0  ;;  %v4442_v42 = vpop.f32.mrf.mxu1 }
 0x3b9   : > { %v5459_v40 = vadd.f32 %v5458_v35, %v5367_v28  ;;  %v5368_v22 = vmax.f32 %v4442_v42, 0.0  ;;  %v3639_v41 = vadd.f32 %v3638_v6, %v3266_v34 }
 0x3ba   : > { %v3048_v24 = vpop.f32.mrf.mxu0  ;;  %v4446_v26 = vpop.f32.mrf.mxu1  ;;  %4928 = vmatmul.mubr.bf16.gmra.mxu0 %v8403_v38  ;;  %7963 = vmatmul.mubr.bf16.gmra.mxu1 %v8403_v38 }
 0x3bb   : > { %v5494_v12 = vadd.f32 %v5493_v0, %v5368_v22  ;;  %v5376_v37 = vmax.f32 %v4446_v26, 0.0  ;;  %4937 = vmatprep.mubr.bf16.mxu0 %v10325_v3  ;;  %7966 = vmatprep.mubr.msk.bf16.mxu1 %vm8481_vm6, %v10326_v27  ;;  %v3284_v60 = vmax.f32 %v3048_v24, 0.0  ;;  %v3640_v23 = vadd.f32 %v3639_v41, %v3275_v43 }
 0x3bc   : > { %v7912_v1 = vpop.f32.mrf.mxu0  ;;  %v4448_v46 = vpop.f32.mrf.mxu1 }
 0x3bd   : > { %v5460_v17 = vadd.f32 %v5459_v40, %v5376_v37  ;;  %v5377_v48 = vmax.f32 %v4448_v46, 0.0  ;;  %v3641_v13 = vadd.f32 %v3640_v23, %v3284_v60 }
 0x3be   : > { %v3051_v4 = vpop.f32.mrf.mxu0  ;;  %v4450_v49 = vpop.f32.mrf.mxu1 }
 0x3bf   : > { %v5495_v18 = vadd.f32 %v5494_v12, %v5377_v48  ;;  %v5385_v15 = vmax.f32 %v4450_v49, 0.0  ;;  %v3293_v25 = vmax.f32 %v3051_v4, 0.0 }
 0x3c0   : > { %v7913_v50 = vpop.f32.mrf.mxu0  ;;  %v4452_v5 = vpop.f32.mrf.mxu1 }
 0x3c1   : > { %v5461_v29 = vadd.f32 %v5460_v17, %v5385_v15  ;;  %v5386_v10 = vmax.f32 %v4452_v5, 0.0  ;;  %v3642_v22 = vadd.f32 %v3641_v13, %v3293_v25 }
 0x3c2   : > { %v3056_v2 = vpop.f32.mrf.mxu0  ;;  %v4456_v36 = vpop.f32.mrf.mxu1  ;;  %4938 = vmatmul.mubr.bf16.gmra.mxu0 %v8404_v47  ;;  %7967 = vmatmul.mubr.bf16.gmra.mxu1 %v8404_v47 }
 0x3c3   : > { %v5496_v45 = vadd.f32 %v5495_v18, %v5386_v10  ;;  %v5394_v62 = vmax.f32 %v4456_v36, 0.0  ;;  %4947 = vmatprep.mubr.bf16.mxu0 %v10325_v3  ;;  %7970 = vmatprep.mubr.msk.bf16.mxu1 %vm8481_vm6, %v10326_v27  ;;  %v3302_v30 = vmax.f32 %v3056_v2, 0.0 }
 0x3c4   : > { %v7916_v54 = vpop.f32.mrf.mxu0  ;;  %v4458_v31 = vpop.f32.mrf.mxu1 }
 0x3c5   : > { %v5462_v63 = vadd.f32 %v5461_v29, %v5394_v62  ;;  %v5395_v8 = vmax.f32 %v4458_v31, 0.0  ;;  %v3643_v12 = vadd.f32 %v3642_v22, %v3302_v30 }
 0x3c6   : > { %v3059_v51 = vpop.f32.mrf.mxu0  ;;  %v4460_v16 = vpop.f32.mrf.mxu1 }
 0x3c7   : > { %v5497_v20 = vadd.f32 %v5496_v45, %v5395_v8  ;;  %v5403_v35 = vmax.f32 %v4460_v16, 0.0  ;;  %v3311_v58 = vmax.f32 %v3059_v51, 0.0 }
 0x3c8   : > { %v7917_v21 = vpop.f32.mrf.mxu0  ;;  %v4462_v11 = vpop.f32.mrf.mxu1 }
 0x3c9   : > { %v5463_v0 = vadd.f32 %v5462_v63, %v5403_v35  ;;  %v5404_v28 = vmax.f32 %v4462_v11, 0.0 }
 0x3ca   : > { %v3064_v39 = vpop.f32.mrf.mxu0  ;;  %v4466_v14 = vpop.f32.mrf.mxu1  ;;  %4948 = vmatmul.mubr.bf16.gmra.mxu0 %v9829_v61  ;;  %7971 = vmatmul.mubr.bf16.gmra.mxu1 %v9829_v61  ;;  %v3644_v61 = vadd.f32 %v3643_v12, %v3311_v58 }
 0x3cb   : > { %v5498_v42 = vadd.f32 %v5497_v20, %v5404_v28  ;;  %v5412_v40 = vmax.f32 %v4466_v14, 0.0  ;;  %4957 = vmatprep.mubr.bf16.mxu0 %v10325_v3  ;;  %7974 = vmatprep.mubr.msk.bf16.mxu1 %vm8481_vm6, %v10326_v27  ;;  %v3320_v37 = vmax.f32 %v3064_v39, 0.0 }
 0x3cc   : > { %v7920_v56 = vpop.f32.mrf.mxu0  ;;  %v4468_v24 = vpop.f32.mrf.mxu1 }
 0x3cd   : > { %v5464_v26 = vadd.f32 %v5463_v0, %v5412_v40  ;;  %v5413_v38 = vmax.f32 %v4468_v24, 0.0  ;;  %v3645_v49 = vadd.f32 %v3644_v61, %v3320_v37 }
 0x3ce   : > { %v3067_v52 = vpop.f32.mrf.mxu0  ;;  %v4470_v7 = vpop.f32.mrf.mxu1 }
 0x3cf   : > { %v5499_v1 = vadd.f32 %v5498_v42, %v5413_v38  ;;  %v5421_v46 = vmax.f32 %v4470_v7, 0.0  ;;  %v3329_v17 = vmax.f32 %v3067_v52, 0.0 }
 0x3d0   : > { %v7921_v48 = vpop.f32.mrf.mxu0  ;;  %v4472_v9 = vpop.f32.mrf.mxu1 }
 0x3d1   : > { %v5465_v53 = vadd.f32 %v5464_v26, %v5421_v46  ;;  %v5422_v4 = vmax.f32 %v4472_v9, 0.0  ;;  %v3646_v5 = vadd.f32 %v3645_v49, %v3329_v17 }
 0x3d2   : > { %v3072_v18 = vpop.f32.mrf.mxu0  ;;  %v4476_v15 = vpop.f32.mrf.mxu1  ;;  %4958 = vmatmul.mubr.bf16.gmra.mxu0 %v9835_v33  ;;  %7975 = vmatmul.mubr.bf16.gmra.mxu1 %v9835_v33 }
 0x3d3   : > { %v5500_v59 = vadd.f32 %v5499_v1, %v5422_v4  ;;  %v3338_v57 = vmax.f32 %v3072_v18, 0.0  ;;  %v5430_v50 = vmax.f32 %v4476_v15, 0.0  ;;  %4967 = vmatprep.mubr.bf16.mxu0 %v10325_v3  ;;  %7978 = vmatprep.mubr.msk.bf16.mxu1 %vm8481_vm6, %v10326_v27  ;;  %v10328_v15 = vlaneseq }
 0x3d4   : > { %v7924_v29 = vpop.f32.mrf.mxu0  ;;  %v4478_v10 = vpop.f32.mrf.mxu1 }
 0x3d5   : > { %v3647_v44 = vsel %vm3366_vm7, %v3338_v57, 0.0  ;;  %v5466_v34 = vsel %vm3366_vm7, %v5430_v50, 0.0  ;;  %v5431_v2 = vmax.f32 %v4478_v10, 0.0  ;;  %vm9995_vm8 = vcmp.lt.s32.totalorder %v10328_v15, 128 }
 0x3d6   : > { %v3648_v36 = vadd.f32 %v3647_v44, %v3646_v5  ;;  %v5467_v47 = vadd.f32 %v5466_v34, %v5465_v53  ;;  %v3075_v45 = vpop.f32.mrf.mxu0  ;;  %v4480_v33 = vpop.f32.mrf.mxu1 }
 0x3d7   : > { %v5501_v62 = vsel %vm3366_vm7, %v5431_v2, 0.0 }
 0x3d8   : > { %v3649_v6 = vrot.slane %v3648_v36, 4  ;;  %v5468_v43 = vrot.slane %v5467_v47, 4  ;;  %v5502_v54 = vadd.f32 %v5501_v62, %v5500_v59  ;;  %v7925_v31 = vpop.f32.mrf.mxu0  ;;  %v4481_v63 = vpop.f32.mrf.mxu1 }
 0x3da   : > { %v3650_v8 = vadd.f32 %v3649_v6, %v3648_v36  ;;  %v5469_v41 = vadd.f32 %v5468_v43, %v5467_v47  ;;  %v5503_v60 = vrot.slane %v5502_v54, 4  ;;  %v4517_v51 = vpop.f32.mrf.mxu0  ;;  %v4698_v16 = vpop.f32.mrf.mxu1  ;;  %4968 = vmatmul.mubr.bf16.gmra.mxu0 %v9847_v19  ;;  %7979 = vmatmul.mubr.bf16.gmra.mxu1 %v9847_v19 }
 0x3db   : > { %4977 = vmatprep.mubr.bf16.mxu0 %v10325_v3  ;;  %7982 = vmatprep.mubr.msk.bf16.mxu1 %vm8481_vm6, %v10326_v27  ;;  %v5182_v11 = vmax.f32 %v4698_v16, 0.0  ;;  %v5180_v14 = vmax.f32 %v4517_v51, 0.0  ;;  %v8405_v16 = vld [vmem:[#allocation2 + $0xcc] sm:$0xff]  }
 0x3dc   : > { %v3651_v20 = vrot.slane %v3650_v8, 2  ;;  %v5470_v35 = vrot.slane %v5469_v41, 2  ;;  %v5504_v23 = vadd.f32 %v5503_v60, %v5502_v54  ;;  %v4519_v25 = vpop.f32.mrf.mxu0  ;;  %v4700_v21 = vpop.f32.mrf.mxu1 }
 0x3dd   : > { %v5183_v42 = vmax.f32 %v4700_v21, 0.0  ;;  %v5181_v24 = vmax.f32 %v4519_v25, 0.0 }
 0x3de   : > { %v3652_v0 = vadd.f32 %v3651_v20, %v3650_v8  ;;  %v5471_v28 = vadd.f32 %v5470_v35, %v5469_v41  ;;  %v5505_v13 = vrot.slane %v5504_v23, 2  ;;  %v4521_v30 = vpop.f32.mrf.mxu0  ;;  %v4702_v39 = vpop.f32.mrf.mxu1 }
 0x3df   : > { %v5189_v40 = vmax.f32 %v4521_v30, 0.0  ;;  %v5191_v19 = vmax.f32 %v4702_v39, 0.0 }
 0x3e0   : > { %v3653_v22 = vrot.slane %v3652_v0, 1  ;;  %v5472_v58 = vrot.slane %v5471_v28, 1  ;;  %v5506_v56 = vadd.f32 %v5505_v13, %v5504_v23  ;;  %v4523_v26 = vpop.f32.mrf.mxu0  ;;  %v4704_v38 = vpop.f32.mrf.mxu1 }
 0x3e1   : > { %v5509_v12 = vadd.f32 %v5189_v40, %v5180_v14  ;;  %v5579_v37 = vadd.f32 %v5191_v19, %v5182_v11  ;;  %v5190_v52 = vmax.f32 %v4523_v26, 0.0  ;;  %v5192_v7 = vmax.f32 %v4704_v38, 0.0 }
 0x3e2   : > { %v3654_v1 = vadd.f32 %v3653_v22, %v3652_v0  ;;  %v9986_v46 = vadd.f32 %v5472_v58, %v5471_v28  ;;  %v5507_v61 = vrot.slane %v5506_v56, 1  ;;  %v4527_v17 = vpop.f32.mrf.mxu0  ;;  %v4708_v48 = vpop.f32.mrf.mxu1  ;;  %4978 = vmatmul.mubr.bf16.gmra.mxu0 %v9857_v32  ;;  %7983 = vmatmul.mubr.bf16.gmra.mxu1 %v9857_v32 }
 0x3e3   : > { %v5544_v9 = vadd.f32 %v5190_v52, %v5181_v24  ;;  %v5614_v53 = vadd.f32 %v5192_v7, %v5183_v42  ;;  %v5198_v4 = vmax.f32 %v4527_v17, 0.0  ;;  %v5200_v49 = vmax.f32 %v4708_v48, 0.0  ;;  %4987 = vmatprep.mubr.bf16.mxu0 %v10325_v3  ;;  %7986 = vmatprep.mubr.msk.bf16.mxu1 %vm8481_vm6, %v10326_v27  ;;  %v8406_v7 = vld [vmem:[#allocation2 + $0xd4] sm:$0xff]  }
 0x3e4   : > { %v3719_v18 = vrot.slane %v3654_v1, %v9604_v55  ;;  %v9999_v57 = vadd.f32 %v5507_v61, %v5506_v56  ;;  %v4529_v50 = vpop.f32.mrf.mxu0  ;;  %v4710_v32 = vpop.f32.mrf.mxu1 }
 0x3e5   : > { %v5510_v5 = vadd.f32 %v5509_v12, %v5198_v4  ;;  %v5580_v29 = vadd.f32 %v5579_v37, %v5200_v49  ;;  %v5199_v10 = vmax.f32 %v4529_v50, 0.0  ;;  %v5201_v44 = vmax.f32 %v4710_v32, 0.0 }
 0x3e6   : > { %v3726_v34 = vrot.slane %v3719_v18, %v9604_v55  ;;  %v5763_v2 = vcombine.low %v9986_v46, %v9999_v57  ;;  %v4531_v36 = vpop.f32.mrf.mxu0  ;;  %v4712_v47 = vpop.f32.mrf.mxu1 }
 0x3e7   : > { %v5545_v45 = vadd.f32 %v5544_v9, %v5199_v10  ;;  %v5615_v33 = vadd.f32 %v5614_v53, %v5201_v44  ;;  %v5207_v62 = vmax.f32 %v4531_v36, 0.0  ;;  %v5209_v6 = vmax.f32 %v4712_v47, 0.0 }
 0x3e8   : > { %3735 = vst.msk [vmem:[#allocation3 + $0x10] ss:$2 sm:$0x1] %vm9995_vm8, %v3726_v34  ;;  %v4533_v43 = vpop.f32.mrf.mxu0  ;;  %v4714_v54 = vpop.f32.mrf.mxu1 }
 0x3e9   : > { %v5511_v31 = vadd.f32 %v5510_v5, %v5207_v62  ;;  %v5581_v63 = vadd.f32 %v5580_v29, %v5209_v6  ;;  %v5208_v8 = vmax.f32 %v4533_v43, 0.0  ;;  %v5210_v41 = vmax.f32 %v4714_v54, 0.0  ;;  %v8292_v6 = vld [vmem:[%s8740_s8 + $0x78] sm:$0xff]  }
 0x3ea   : > { %v4537_v60 = vpop.f32.mrf.mxu0  ;;  %v4718_v51 = vpop.f32.mrf.mxu1  ;;  %4988 = vmatmul.mubr.bf16.gmra.mxu0 %v8405_v16  ;;  %7987 = vmatmul.mubr.bf16.gmra.mxu1 %v8405_v16 }
 0x3eb   : > { %v5546_v20 = vadd.f32 %v5545_v45, %v5208_v8  ;;  %v5616_v35 = vadd.f32 %v5615_v33, %v5210_v41  ;;  %v5216_v23 = vmax.f32 %v4537_v60, 0.0  ;;  %v5218_v25 = vmax.f32 %v4718_v51, 0.0  ;;  %4997 = vmatprep.mubr.bf16.mxu0 %v10325_v3  ;;  %7990 = vmatprep.mubr.msk.bf16.mxu1 %vm8481_vm6, %v10326_v27  ;;  %v8293_v60 = vld [vmem:[%s8740_s8 + $0x38] sm:$0xff]  }
 0x3ec   : > { %v4539_v21 = vpop.f32.mrf.mxu0  ;;  %v4720_v11 = vpop.f32.mrf.mxu1  ;;  %7563 = vmatprep.subr.bf16.mxu0 %v8292_v6 }
 0x3ed   : > { %v5512_v0 = vadd.f32 %v5511_v31, %v5216_v23  ;;  %v5582_v28 = vadd.f32 %v5581_v63, %v5218_v25  ;;  %v5217_v13 = vmax.f32 %v4539_v21, 0.0  ;;  %v5219_v30 = vmax.f32 %v4720_v11, 0.0  ;;  %v8407_v31 = vld [vmem:[#allocation2 + $0xdc] sm:$0xff]   ;;  %7564 = vmatpush3.bf16.msra.mxu0 %v8293_v60 }
 0x3ee   : > { %v4541_v39 = vpop.f32.mrf.mxu0  ;;  %v4722_v14 = vpop.f32.mrf.mxu1 }
 0x3ef   : > { %v5547_v42 = vadd.f32 %v5546_v20, %v5217_v13  ;;  %v5617_v40 = vadd.f32 %v5616_v35, %v5219_v30  ;;  %v5225_v19 = vmax.f32 %v4541_v39, 0.0  ;;  %v5227_v22 = vmax.f32 %v4722_v14, 0.0 }
 0x3f0   : > { %v4543_v58 = vpop.f32.mrf.mxu0  ;;  %v4724_v56 = vpop.f32.mrf.mxu1 }
 0x3f1   : > { %v5513_v24 = vadd.f32 %v5512_v0, %v5225_v19  ;;  %v5583_v26 = vadd.f32 %v5582_v28, %v5227_v22  ;;  %v5226_v38 = vmax.f32 %v4543_v58, 0.0  ;;  %v5228_v12 = vmax.f32 %v4724_v56, 0.0 }
 0x3f2   : > { %v4547_v37 = vpop.f32.mrf.mxu0  ;;  %v4728_v52 = vpop.f32.mrf.mxu1  ;;  %4998 = vmatmul.mubr.bf16.gmra.mxu0 %v8406_v7  ;;  %7991 = vmatmul.mubr.bf16.gmra.mxu1 %v8406_v7 }
 0x3f3   : > { %v5618_v1 = vadd.f32 %v5617_v40, %v5228_v12  ;;  %v5234_v61 = vmax.f32 %v4547_v37, 0.0  ;;  %v5236_v17 = vmax.f32 %v4728_v52, 0.0  ;;  %5007 = vmatprep.mubr.bf16.mxu0 %v10325_v3  ;;  %7994 = vmatprep.mubr.msk.bf16.mxu1 %vm8481_vm6, %v10326_v27  ;;  %v5548_v48 = vadd.f32 %v5547_v42, %v5226_v38 }
 0x3f4   : > { %v4549_v9 = vpop.f32.mrf.mxu0  ;;  %v4730_v53 = vpop.f32.mrf.mxu1 }
 0x3f5   : > { %v5514_v4 = vadd.f32 %v5513_v24, %v5234_v61  ;;  %v5584_v49 = vadd.f32 %v5583_v26, %v5236_v17  ;;  %v5235_v18 = vmax.f32 %v4549_v9, 0.0  ;;  %v5237_v15 = vmax.f32 %v4730_v53, 0.0  ;;  %v8408_v24 = vld [vmem:[#allocation2 + $0xe4] ss:$0 sps:$4 sm:$0x11]  }
 0x3f6   : > { %v4551_v50 = vpop.f32.mrf.mxu0  ;;  %v4732_v32 = vpop.f32.mrf.mxu1 }
 0x3f7   : > { %v5549_v5 = vadd.f32 %v5548_v48, %v5235_v18  ;;  %v5619_v29 = vadd.f32 %v5618_v1, %v5237_v15  ;;  %v5243_v10 = vmax.f32 %v4551_v50, 0.0  ;;  %v5245_v44 = vmax.f32 %v4732_v32, 0.0 }
 0x3f8   : > { %v4553_v34 = vpop.f32.mrf.mxu0  ;;  %v4734_v36 = vpop.f32.mrf.mxu1 }
 0x3f9   : > { %v5515_v47 = vadd.f32 %v5514_v4, %v5243_v10  ;;  %v5585_v45 = vadd.f32 %v5584_v49, %v5245_v44  ;;  %v5244_v33 = vmax.f32 %v4553_v34, 0.0  ;;  %v5246_v62 = vmax.f32 %v4734_v36, 0.0  ;;  %v8294_v34 = vld [vmem:[%s8740_s8 + $0x70] sm:$0xff]  }
 0x3fa   : > { %v4557_v43 = vpop.f32.mrf.mxu0  ;;  %v4738_v54 = vpop.f32.mrf.mxu1  ;;  %5008 = vmatmul.mubr.bf16.gmra.mxu0 %v8407_v31  ;;  %7995 = vmatmul.mubr.bf16.gmra.mxu1 %v8407_v31  ;;  %v8295_v36 = vld [vmem:[%s8740_s8 + $0x30] sm:$0xff]  }
 0x3fb   : > { %v5620_v63 = vadd.f32 %v5619_v29, %v5246_v62  ;;  %v5252_v8 = vmax.f32 %v4557_v43, 0.0  ;;  %v5254_v41 = vmax.f32 %v4738_v54, 0.0  ;;  %5017 = vmatprep.mubr.bf16.mxu0 %v10325_v3  ;;  %7998 = vmatprep.mubr.msk.bf16.mxu1 %vm8481_vm6, %v10326_v27  ;;  %v5550_v51 = vadd.f32 %v5549_v5, %v5244_v33 }
 0x3fc   : > { %v4559_v16 = vpop.f32.mrf.mxu0  ;;  %v4740_v20 = vpop.f32.mrf.mxu1  ;;  %7565 = vmatprep.subr.bf16.mxu0 %v8294_v34 }
 0x3fd   : > { %v5516_v35 = vadd.f32 %v5515_v47, %v5252_v8  ;;  %v5586_v23 = vadd.f32 %v5585_v45, %v5254_v41  ;;  %v5253_v25 = vmax.f32 %v4559_v16, 0.0  ;;  %v5255_v21 = vmax.f32 %v4740_v20, 0.0  ;;  %7566 = vmatpush3.bf16.msra.mxu0 %v8295_v36 }
 0x3fe   : > { %v4561_v11 = vpop.f32.mrf.mxu0  ;;  %v4742_v0 = vpop.f32.mrf.mxu1 }
 0x3ff   : > { %v5551_v28 = vadd.f32 %v5550_v51, %v5253_v25  ;;  %v5621_v13 = vadd.f32 %v5620_v63, %v5255_v21  ;;  %v5261_v30 = vmax.f32 %v4561_v11, 0.0  ;;  %v5263_v39 = vmax.f32 %v4742_v0, 0.0 }
 0x400   : > { %v4563_v3 = vpop.f32.mrf.mxu0  ;;  %v4744_v14 = vpop.f32.mrf.mxu1 }
 0x401   : > { %v5517_v42 = vadd.f32 %v5516_v35, %v5261_v30  ;;  %v5587_v40 = vadd.f32 %v5586_v23, %v5263_v39  ;;  %v5262_v19 = vmax.f32 %v4563_v3, 0.0  ;;  %v5264_v22 = vmax.f32 %v4744_v14, 0.0 }
 0x402   : > { %v4567_v58 = vpop.f32.mrf.mxu0  ;;  %v4748_v56 = vpop.f32.mrf.mxu1  ;;  %5018 = vmatmul.mubr.bf16.gmra.mxu0 %v8408_v24  ;;  %7999 = vmatmul.mubr.bf16.gmra.mxu1 %v8408_v24 }
 0x403   : > { %v5622_v26 = vadd.f32 %v5621_v13, %v5264_v22  ;;  %v5270_v38 = vmax.f32 %v4567_v58, 0.0  ;;  %v5272_v12 = vmax.f32 %v4748_v56, 0.0  ;;  %v5552_v37 = vadd.f32 %v5551_v28, %v5262_v19 }
 0x404   : > { %v4569_v52 = vpop.f32.mrf.mxu0  ;;  %v4750_v7 = vpop.f32.mrf.mxu1 }
 0x405   : > { %v5518_v1 = vadd.f32 %v5517_v42, %v5270_v38  ;;  %v5588_v61 = vadd.f32 %v5587_v40, %v5272_v12  ;;  %v5271_v17 = vmax.f32 %v4569_v52, 0.0  ;;  %v5273_v48 = vmax.f32 %v4750_v7, 0.0  ;;  %v8296_v12 = vld [vmem:[%s8740_s8 + $0xf8] sm:$0xff]  }
 0x406   : > { %v4571_v9 = vpop.f32.mrf.mxu0  ;;  %v4752_v53 = vpop.f32.mrf.mxu1  ;;  %7585 = vmatprep.subr.bf16.mxu1 %v8296_v12 }
 0x407   : > { %v5553_v4 = vadd.f32 %v5552_v37, %v5271_v17  ;;  %v5623_v49 = vadd.f32 %v5622_v26, %v5273_v48  ;;  %v5279_v18 = vmax.f32 %v4571_v9, 0.0  ;;  %v5281_v15 = vmax.f32 %v4752_v53, 0.0  ;;  %v8297_v37 = vld [vmem:[%s8740_s8 + $0xb8] sm:$0xff]   ;;  %v8298_v9 = vld [vmem:[%s8740_s8 + $0x68] sm:$0xff]  }
 0x408   : > { %v4573_v50 = vpop.f32.mrf.mxu0  ;;  %v4754_v32 = vpop.f32.mrf.mxu1  ;;  %7586 = vmatpush3.bf16.msra.mxu1 %v8297_v37  ;;  %7567 = vmatprep.subr.bf16.mxu0 %v8298_v9 }
 0x409   : > { %v5519_v5 = vadd.f32 %v5518_v1, %v5279_v18  ;;  %v5589_v29 = vadd.f32 %v5588_v61, %v5281_v15  ;;  %v5280_v10 = vmax.f32 %v4573_v50, 0.0  ;;  %v5282_v44 = vmax.f32 %v4754_v32, 0.0  ;;  %v8299_v32 = vld [vmem:[%s8740_s8 + $0x28] sm:$0xff]  }
 0x40a   : > { %v4577_v47 = vpop.f32.mrf.mxu0  ;;  %v4758_v45 = vpop.f32.mrf.mxu1  ;;  %7568 = vmatpush3.bf16.msra.mxu0 %v8299_v32 }
 0x40b   : > { %v5554_v33 = vadd.f32 %v5553_v4, %v5280_v10  ;;  %v5624_v62 = vadd.f32 %v5623_v49, %v5282_v44  ;;  %v5288_v6 = vmax.f32 %v4577_v47, 0.0  ;;  %v5290_v43 = vmax.f32 %v4758_v45, 0.0 }
 0x40c   : > { %v4579_v54 = vpop.f32.mrf.mxu0  ;;  %v4760_v31 = vpop.f32.mrf.mxu1 }
 0x40d   : > { %v5520_v63 = vadd.f32 %v5519_v5, %v5288_v6  ;;  %v5590_v8 = vadd.f32 %v5589_v29, %v5290_v43  ;;  %v5289_v41 = vmax.f32 %v4579_v54, 0.0  ;;  %v5291_v60 = vmax.f32 %v4760_v31, 0.0 }
 0x40e   : > { %v4581_v51 = vpop.f32.mrf.mxu0  ;;  %v4762_v16 = vpop.f32.mrf.mxu1 }
 0x40f   : > { %v5555_v20 = vadd.f32 %v5554_v33, %v5289_v41  ;;  %v5625_v35 = vadd.f32 %v5624_v62, %v5291_v60  ;;  %v5297_v23 = vmax.f32 %v4581_v51, 0.0  ;;  %v5299_v25 = vmax.f32 %v4762_v16, 0.0 }
 0x410   : > { %v4583_v21 = vpop.f32.mrf.mxu0  ;;  %v4764_v11 = vpop.f32.mrf.mxu1 }
 0x411   : > { %v5521_v0 = vadd.f32 %v5520_v63, %v5297_v23  ;;  %v5591_v28 = vadd.f32 %v5590_v8, %v5299_v25  ;;  %v5298_v13 = vmax.f32 %v4583_v21, 0.0  ;;  %v5300_v30 = vmax.f32 %v4764_v11, 0.0 }
 0x412   : > { %v4587_v39 = vpop.f32.mrf.mxu0  ;;  %v4768_v3 = vpop.f32.mrf.mxu1 }
 0x413   : > { %v5556_v14 = vadd.f32 %v5555_v20, %v5298_v13  ;;  %v5626_v42 = vadd.f32 %v5625_v35, %v5300_v30  ;;  %v5306_v40 = vmax.f32 %v4587_v39, 0.0  ;;  %v5308_v19 = vmax.f32 %v4768_v3, 0.0  ;;  %v8300_v39 = vld [vmem:[%s8740_s8 + $0xf0] sm:$0xff]  }
 0x414   : > { %v4589_v22 = vpop.f32.mrf.mxu0  ;;  %v4770_v58 = vpop.f32.mrf.mxu1  ;;  %7587 = vmatprep.subr.bf16.mxu1 %v8300_v39 }
 0x415   : > { %v5522_v56 = vadd.f32 %v5521_v0, %v5306_v40  ;;  %v5592_v24 = vadd.f32 %v5591_v28, %v5308_v19  ;;  %v5307_v26 = vmax.f32 %v4589_v22, 0.0  ;;  %v5309_v38 = vmax.f32 %v4770_v58, 0.0  ;;  %v8301_v58 = vld [vmem:[%s8740_s8 + $0xb0] sm:$0xff]  }
 0x416   : > { %v4591_v52 = vpop.f32.mrf.mxu0  ;;  %v4772_v7 = vpop.f32.mrf.mxu1  ;;  %7588 = vmatpush3.bf16.msra.mxu1 %v8301_v58 }
 0x417   : > { %v5557_v1 = vadd.f32 %v5556_v14, %v5307_v26  ;;  %v5627_v61 = vadd.f32 %v5626_v42, %v5309_v38  ;;  %v5315_v17 = vmax.f32 %v4591_v52, 0.0  ;;  %v5317_v48 = vmax.f32 %v4772_v7, 0.0  ;;  %v8302_v52 = vld [vmem:[%s8740_s8 + $0x60] sm:$0xff]  }
 0x418   : > { %v4593_v53 = vpop.f32.mrf.mxu0  ;;  %v4774_v4 = vpop.f32.mrf.mxu1  ;;  %v8303_v7 = vld [vmem:[%s8740_s8 + $0x20] sm:$0xff]   ;;  %7569 = vmatprep.subr.bf16.mxu0 %v8302_v52 }
 0x419   : > { %v5523_v49 = vadd.f32 %v5522_v56, %v5315_v17  ;;  %v5593_v18 = vadd.f32 %v5592_v24, %v5317_v48  ;;  %v5316_v15 = vmax.f32 %v4593_v53, 0.0  ;;  %v5318_v50 = vmax.f32 %v4774_v4, 0.0  ;;  %7570 = vmatpush3.bf16.msra.mxu0 %v8303_v7 }
 0x41a   : > { %v4597_v5 = vpop.f32.mrf.mxu0  ;;  %v4778_v29 = vpop.f32.mrf.mxu1 }
 0x41b   : > { %v5558_v10 = vadd.f32 %v5557_v1, %v5316_v15  ;;  %v5628_v44 = vadd.f32 %v5627_v61, %v5318_v50  ;;  %v5324_v34 = vmax.f32 %v4597_v5, 0.0  ;;  %v5326_v36 = vmax.f32 %v4778_v29, 0.0 }
 0x41c   : > { %v4599_v47 = vpop.f32.mrf.mxu0  ;;  %v4780_v45 = vpop.f32.mrf.mxu1 }
 0x41d   : > { %v5524_v33 = vadd.f32 %v5523_v49, %v5324_v34  ;;  %v5594_v62 = vadd.f32 %v5593_v18, %v5326_v36  ;;  %v5325_v6 = vmax.f32 %v4599_v47, 0.0  ;;  %v5327_v43 = vmax.f32 %v4780_v45, 0.0 }
 0x41e   : > { %v4601_v54 = vpop.f32.mrf.mxu0  ;;  %v4782_v31 = vpop.f32.mrf.mxu1 }
 0x41f   : > { %v5559_v63 = vadd.f32 %v5558_v10, %v5325_v6  ;;  %v5629_v8 = vadd.f32 %v5628_v44, %v5327_v43  ;;  %v5333_v41 = vmax.f32 %v4601_v54, 0.0  ;;  %v5335_v60 = vmax.f32 %v4782_v31, 0.0 }
 0x420   : > { %v4603_v51 = vpop.f32.mrf.mxu0  ;;  %v4784_v16 = vpop.f32.mrf.mxu1 }
 0x421   : > { %v5525_v20 = vadd.f32 %v5524_v33, %v5333_v41  ;;  %v5595_v35 = vadd.f32 %v5594_v62, %v5335_v60  ;;  %v5334_v23 = vmax.f32 %v4603_v51, 0.0  ;;  %v5336_v25 = vmax.f32 %v4784_v16, 0.0 }
 0x422   : > { %v4607_v21 = vpop.f32.mrf.mxu0  ;;  %v4788_v11 = vpop.f32.mrf.mxu1 }
 0x423   : > { %v5560_v0 = vadd.f32 %v5559_v63, %v5334_v23  ;;  %v5630_v28 = vadd.f32 %v5629_v8, %v5336_v25  ;;  %v5342_v13 = vmax.f32 %v4607_v21, 0.0  ;;  %v5344_v30 = vmax.f32 %v4788_v11, 0.0  ;;  %v8304_v21 = vld [vmem:[%s8740_s8 + $0xe8] sm:$0xff]  }
 0x424   : > { %v4609_v3 = vpop.f32.mrf.mxu0  ;;  %v4790_v14 = vpop.f32.mrf.mxu1  ;;  %v8305_v11 = vld [vmem:[%s8740_s8 + $0xa8] sm:$0xff]   ;;  %7589 = vmatprep.subr.bf16.mxu1 %v8304_v21 }
 0x425   : > { %v5526_v42 = vadd.f32 %v5525_v20, %v5342_v13  ;;  %v5596_v40 = vadd.f32 %v5595_v35, %v5344_v30  ;;  %v5343_v19 = vmax.f32 %v4609_v3, 0.0  ;;  %v5345_v22 = vmax.f32 %v4790_v14, 0.0  ;;  %v8306_v14 = vld [vmem:[%s8740_s8 + $0x58] sm:$0xff]   ;;  %7590 = vmatpush3.bf16.msra.mxu1 %v8305_v11 }
 0x426   : > { %v4611_v56 = vpop.f32.mrf.mxu0  ;;  %v4792_v24 = vpop.f32.mrf.mxu1  ;;  %7571 = vmatprep.subr.bf16.mxu0 %v8306_v14 }
 0x427   : > { %v5561_v26 = vadd.f32 %v5560_v0, %v5343_v19  ;;  %v5631_v38 = vadd.f32 %v5630_v28, %v5345_v22  ;;  %v5351_v12 = vmax.f32 %v4611_v56, 0.0  ;;  %v5353_v37 = vmax.f32 %v4792_v24, 0.0  ;;  %v8307_v24 = vld [vmem:[%s8740_s8 + $0x18] sm:$0xff]  }
 0x428   : > { %v4613_v1 = vpop.f32.mrf.mxu0  ;;  %v4794_v61 = vpop.f32.mrf.mxu1  ;;  %7572 = vmatpush3.bf16.msra.mxu0 %v8307_v24 }
 0x429   : > { %v5527_v17 = vadd.f32 %v5526_v42, %v5351_v12  ;;  %v5597_v48 = vadd.f32 %v5596_v40, %v5353_v37  ;;  %v5352_v9 = vmax.f32 %v4613_v1, 0.0  ;;  %v5354_v53 = vmax.f32 %v4794_v61, 0.0 }
 0x42a   : > { %v4617_v4 = vpop.f32.mrf.mxu0  ;;  %v4798_v49 = vpop.f32.mrf.mxu1 }
 0x42b   : > { %v5562_v18 = vadd.f32 %v5561_v26, %v5352_v9  ;;  %v5632_v15 = vadd.f32 %v5631_v38, %v5354_v53  ;;  %v5360_v50 = vmax.f32 %v4617_v4, 0.0  ;;  %v5362_v32 = vmax.f32 %v4798_v49, 0.0 }
 0x42c   : > { %v4619_v5 = vpop.f32.mrf.mxu0  ;;  %v4800_v29 = vpop.f32.mrf.mxu1 }
 0x42d   : > { %v5528_v10 = vadd.f32 %v5527_v17, %v5360_v50  ;;  %v5598_v44 = vadd.f32 %v5597_v48, %v5362_v32  ;;  %v5361_v34 = vmax.f32 %v4619_v5, 0.0  ;;  %v5363_v36 = vmax.f32 %v4800_v29, 0.0 }
 0x42e   : > { %v4621_v47 = vpop.f32.mrf.mxu0  ;;  %v4802_v45 = vpop.f32.mrf.mxu1 }
 0x42f   : > { %v5563_v33 = vadd.f32 %v5562_v18, %v5361_v34  ;;  %v5633_v62 = vadd.f32 %v5632_v15, %v5363_v36  ;;  %v5369_v6 = vmax.f32 %v4621_v47, 0.0  ;;  %v5371_v43 = vmax.f32 %v4802_v45, 0.0 }
 0x430   : > { %v4623_v54 = vpop.f32.mrf.mxu0  ;;  %v4804_v31 = vpop.f32.mrf.mxu1 }
 0x431   : > { %v5529_v63 = vadd.f32 %v5528_v10, %v5369_v6  ;;  %v5599_v8 = vadd.f32 %v5598_v44, %v5371_v43  ;;  %v5370_v41 = vmax.f32 %v4623_v54, 0.0  ;;  %v5372_v60 = vmax.f32 %v4804_v31, 0.0  ;;  %v8308_v54 = vld [vmem:[%s8740_s8 + $0xe0] sm:$0xff]  }
 0x432   : > { %v4627_v51 = vpop.f32.mrf.mxu0  ;;  %v4808_v16 = vpop.f32.mrf.mxu1  ;;  %7591 = vmatprep.subr.bf16.mxu1 %v8308_v54 }
 0x433   : > { %v5564_v20 = vadd.f32 %v5563_v33, %v5370_v41  ;;  %v5634_v35 = vadd.f32 %v5633_v62, %v5372_v60  ;;  %v5378_v23 = vmax.f32 %v4627_v51, 0.0  ;;  %v5380_v25 = vmax.f32 %v4808_v16, 0.0  ;;  %v8309_v16 = vld [vmem:[%s8740_s8 + $0xa0] sm:$0xff]  }
 0x434   : > { %v4629_v0 = vpop.f32.mrf.mxu0  ;;  %v4810_v28 = vpop.f32.mrf.mxu1  ;;  %7592 = vmatpush3.bf16.msra.mxu1 %v8309_v16 }
 0x435   : > { %v5530_v13 = vadd.f32 %v5529_v63, %v5378_v23  ;;  %v5600_v30 = vadd.f32 %v5599_v8, %v5380_v25  ;;  %v5379_v39 = vmax.f32 %v4629_v0, 0.0  ;;  %v5381_v3 = vmax.f32 %v4810_v28, 0.0 }
 0x436   : > { %v4631_v42 = vpop.f32.mrf.mxu0  ;;  %v4812_v40 = vpop.f32.mrf.mxu1 }
 0x437   : > { %v5565_v19 = vadd.f32 %v5564_v20, %v5379_v39  ;;  %v5635_v22 = vadd.f32 %v5634_v35, %v5381_v3  ;;  %v5387_v58 = vmax.f32 %v4631_v42, 0.0  ;;  %v5389_v56 = vmax.f32 %v4812_v40, 0.0 }
 0x438   : > { %v4633_v26 = vpop.f32.mrf.mxu0  ;;  %v4814_v38 = vpop.f32.mrf.mxu1 }
 0x439   : > { %v5531_v12 = vadd.f32 %v5530_v13, %v5387_v58  ;;  %v5601_v37 = vadd.f32 %v5600_v30, %v5389_v56  ;;  %v5388_v52 = vmax.f32 %v4633_v26, 0.0  ;;  %v5390_v7 = vmax.f32 %v4814_v38, 0.0 }
 0x43a   : > { %v4637_v1 = vpop.f32.mrf.mxu0  ;;  %v4818_v61 = vpop.f32.mrf.mxu1 }
 0x43b   : > { %v5566_v17 = vadd.f32 %v5565_v19, %v5388_v52  ;;  %v5636_v48 = vadd.f32 %v5635_v22, %v5390_v7  ;;  %v5396_v9 = vmax.f32 %v4637_v1, 0.0  ;;  %v5398_v53 = vmax.f32 %v4818_v61, 0.0 }
 0x43c   : > { %v4639_v4 = vpop.f32.mrf.mxu0  ;;  %v4820_v49 = vpop.f32.mrf.mxu1 }
 0x43d   : > { %v5532_v18 = vadd.f32 %v5531_v12, %v5396_v9  ;;  %v5602_v15 = vadd.f32 %v5601_v37, %v5398_v53  ;;  %v5397_v50 = vmax.f32 %v4639_v4, 0.0  ;;  %v5399_v32 = vmax.f32 %v4820_v49, 0.0 }
 0x43e   : > { %v4641_v5 = vpop.f32.mrf.mxu0  ;;  %v4822_v29 = vpop.f32.mrf.mxu1 }
 0x43f   : > { %v5567_v10 = vadd.f32 %v5566_v17, %v5397_v50  ;;  %v5637_v44 = vadd.f32 %v5636_v48, %v5399_v32  ;;  %v5405_v34 = vmax.f32 %v4641_v5, 0.0  ;;  %v5407_v36 = vmax.f32 %v4822_v29, 0.0 }
 0x440   : > { %v4643_v47 = vpop.f32.mrf.mxu0  ;;  %v4824_v45 = vpop.f32.mrf.mxu1 }
 0x441   : > { %v5533_v33 = vadd.f32 %v5532_v18, %v5405_v34  ;;  %v5603_v62 = vadd.f32 %v5602_v15, %v5407_v36  ;;  %v5406_v6 = vmax.f32 %v4643_v47, 0.0  ;;  %v5408_v43 = vmax.f32 %v4824_v45, 0.0 }
 0x442   : > { %v4647_v31 = vpop.f32.mrf.mxu0  ;;  %v4828_v63 = vpop.f32.mrf.mxu1 }
 0x443   : > { %v5568_v8 = vadd.f32 %v5567_v10, %v5406_v6  ;;  %v5638_v41 = vadd.f32 %v5637_v44, %v5408_v43  ;;  %v5414_v60 = vmax.f32 %v4647_v31, 0.0  ;;  %v5416_v51 = vmax.f32 %v4828_v63, 0.0 }
 0x444   : > { %v4649_v20 = vpop.f32.mrf.mxu0  ;;  %v4830_v35 = vpop.f32.mrf.mxu1 }
 0x445   : > { %v5534_v23 = vadd.f32 %v5533_v33, %v5414_v60  ;;  %v5604_v25 = vadd.f32 %v5603_v62, %v5416_v51  ;;  %v5415_v21 = vmax.f32 %v4649_v20, 0.0  ;;  %v5417_v11 = vmax.f32 %v4830_v35, 0.0 }
 0x446   : > { %v4651_v0 = vpop.f32.mrf.mxu0  ;;  %v4832_v28 = vpop.f32.mrf.mxu1 }
 0x447   : > { %v5569_v13 = vadd.f32 %v5568_v8, %v5415_v21  ;;  %v5639_v30 = vadd.f32 %v5638_v41, %v5417_v11  ;;  %v5423_v39 = vmax.f32 %v4651_v0, 0.0  ;;  %v5425_v3 = vmax.f32 %v4832_v28, 0.0 }
 0x448   : > { %v4653_v14 = vpop.f32.mrf.mxu0  ;;  %v4834_v42 = vpop.f32.mrf.mxu1 }
 0x449   : > { %v5535_v40 = vadd.f32 %v5534_v23, %v5423_v39  ;;  %v5605_v19 = vadd.f32 %v5604_v25, %v5425_v3  ;;  %v5424_v22 = vmax.f32 %v4653_v14, 0.0  ;;  %v5426_v58 = vmax.f32 %v4834_v42, 0.0  ;;  %v8310_v39 = vld [vmem:[%s8740_s8 + $0x50] sm:$0xff]  }
 0x44a   : > { %v4657_v56 = vpop.f32.mrf.mxu0  ;;  %v4838_v24 = vpop.f32.mrf.mxu1  ;;  %v8311_v3 = vld [vmem:[%s8740_s8 + $0x10] sm:$0xff]   ;;  %7573 = vmatprep.subr.bf16.mxu0 %v8310_v39 }
 0x44b   : > { %v5570_v26 = vadd.f32 %v5569_v13, %v5424_v22  ;;  %v5640_v38 = vadd.f32 %v5639_v30, %v5426_v58  ;;  %v5432_v12 = vmax.f32 %v4657_v56, 0.0  ;;  %v5434_v37 = vmax.f32 %v4838_v24, 0.0  ;;  %7574 = vmatpush3.bf16.msra.mxu0 %v8311_v3 }
 0x44c   : > { %v4659_v52 = vpop.f32.mrf.mxu0  ;;  %v4840_v7 = vpop.f32.mrf.mxu1 }
 0x44d   : > { %v5536_v1 = vsel %vm3366_vm7, %v5432_v12, 0.0  ;;  %v5606_v61 = vsel %vm3366_vm7, %v5434_v37, 0.0  ;;  %v5433_v17 = vmax.f32 %v4659_v52, 0.0  ;;  %v5435_v48 = vmax.f32 %v4840_v7, 0.0 }
 0x44e   : > { %v5537_v9 = vadd.f32 %v5536_v1, %v5535_v40  ;;  %v5607_v53 = vadd.f32 %v5606_v61, %v5605_v19  ;;  %v4661_v4 = vpop.f32.mrf.mxu0  ;;  %v4842_v49 = vpop.f32.mrf.mxu1 }
 0x44f   : > { %v5571_v18 = vsel %vm3366_vm7, %v5433_v17, 0.0  ;;  %v5641_v15 = vsel %vm3366_vm7, %v5435_v48, 0.0  ;;  %v8312_v48 = vld [vmem:[%s8740_s8 + $0xd8] sm:$0xff]   ;;  %v10065_v4 = vrot.slane %v5763_v2, %v9604_v55 }
 0x450   : > { %v5538_v50 = vrot.slane %v5537_v9, 4  ;;  %v5608_v32 = vrot.slane %v5607_v53, 4  ;;  %v5572_v5 = vadd.f32 %v5571_v18, %v5570_v26  ;;  %v5642_v29 = vadd.f32 %v5641_v15, %v5640_v38  ;;  %v4662_v10 = vpop.f32.mrf.mxu0  ;;  %v4843_v44 = vpop.f32.mrf.mxu1  ;;  %7593 = vmatprep.subr.bf16.mxu1 %v8312_v48 }
 0x451   : > { %v8318_v10 = vld [vmem:[%s8740_s8 + $0x40] sm:$0xff]  }
 0x452   : > { %v5539_v34 = vadd.f32 %v5538_v50, %v5537_v9  ;;  %v5609_v36 = vadd.f32 %v5608_v32, %v5607_v53  ;;  %v5573_v47 = vrot.slane %v5572_v5, 4  ;;  %v5643_v45 = vrot.slane %v5642_v29, 4  ;;  %v10037_v33 = vpop.f32.mrf.mxu0  ;;  %v5060_v62 = vpop.f32.mrf.mxu1  ;;  %v8313_v53 = vld [vmem:[%s8740_s8 + $0x98] sm:$0xff]   ;;  %v8314_v50 = vld [vmem:[%s8740_s8 + $0x48] sm:$0xff]  }
 0x453   : > { %v5186_v41 = vmax.f32 %v5060_v62, 0.0  ;;  %v8315_v32 = vld [vmem:[%s8740_s8 + $0x8] sm:$0xff]   ;;  %7594 = vmatpush3.bf16.msra.mxu1 %v8313_v53  ;;  %7575 = vmatprep.subr.bf16.mxu0 %v8314_v50 }
 0x454   : > { %v5540_v6 = vrot.slane %v5539_v34, 2  ;;  %v5610_v43 = vrot.slane %v5609_v36, 2  ;;  %v5574_v54 = vadd.f32 %v5573_v47, %v5572_v5  ;;  %v5644_v31 = vadd.f32 %v5643_v45, %v5642_v29  ;;  %v10039_v63 = vpop.f32.mrf.mxu0  ;;  %v7944_v8 = vpop.f32.mrf.mxu1  ;;  %v8316_v5 = vld [vmem:[%s8740_s8 + $0xd0] sm:$0xff]   ;;  %7576 = vmatpush3.bf16.msra.mxu0 %v8315_v32  ;;  %v8319_v47 = vld [vmem:[%s8740_s8] sm:$0xff]  }
 0x455   : > { %v8317_v29 = vld [vmem:[%s8740_s8 + $0x90] sm:$0xff]   ;;  %7595 = vmatprep.subr.bf16.mxu1 %v8316_v5  ;;  %7577 = vmatprep.subr.bf16.mxu0 %v8318_v10  ;;  %v8322_v8 = vld [vmem:[%s8740_s8 + $0xc0] sm:$0xff]  }
 0x456   : > { %v5541_v60 = vadd.f32 %v5540_v6, %v5539_v34  ;;  %v5611_v51 = vadd.f32 %v5610_v43, %v5609_v36  ;;  %v5575_v16 = vrot.slane %v5574_v54, 2  ;;  %v5645_v20 = vrot.slane %v5644_v31, 2  ;;  %v10041_v35 = vpop.f32.mrf.mxu0  ;;  %v5063_v23 = vpop.f32.mrf.mxu1  ;;  %v8320_v34 = vld [vmem:[%s8740_s8 + $0xc8] sm:$0xff]  }
 0x457   : > { %v5195_v25 = vmax.f32 %v5063_v23, 0.0  ;;  %7596 = vmatpush3.bf16.msra.mxu1 %v8317_v29  ;;  %v8321_v6 = vld [vmem:[%s8740_s8 + $0x88] sm:$0xff]  }
 0x458   : > { %v5542_v21 = vrot.slane %v5541_v60, 1  ;;  %v5612_v11 = vrot.slane %v5611_v51, 1  ;;  %v5576_v0 = vadd.f32 %v5575_v16, %v5574_v54  ;;  %v5646_v28 = vadd.f32 %v5645_v20, %v5644_v31  ;;  %v10043_v13 = vpop.f32.mrf.mxu0  ;;  %v7945_v30 = vpop.f32.mrf.mxu1  ;;  %7597 = vmatprep.subr.bf16.mxu1 %v8320_v34  ;;  %7578 = vmatpush3.bf16.msra.mxu0 %v8319_v47  ;;  %v8323_v16 = vld [vmem:[%s8740_s8 + $0x80] sm:$0xff]  }
 0x459   : > { %v5719_v19 = vadd.f32 %v5195_v25, %v5186_v41 }
 0x45a   : > { %v10047_v14 = vadd.f32 %v5612_v11, %v5611_v51  ;;  %v5577_v42 = vrot.slane %v5576_v0, 1  ;;  %v5647_v40 = vrot.slane %v5646_v28, 1  ;;  %v10049_v22 = vpop.f32.mrf.mxu0  ;;  %v5068_v58 = vpop.f32.mrf.mxu1  ;;  %v5543_v24 = vadd.f32 %v5542_v21, %v5541_v60 }
 0x45b   : > { %v5204_v56 = vmax.f32 %v5068_v58, 0.0  ;;  %7598 = vmatpush3.bf16.msra.mxu1 %v8321_v6 }
 0x45c   : > { %v5578_v26 = vadd.f32 %v5577_v42, %v5576_v0  ;;  %v10051_v38 = vadd.f32 %v5647_v40, %v5646_v28  ;;  %v10053_v12 = vpop.f32.mrf.mxu0  ;;  %v7948_v37 = vpop.f32.mrf.mxu1  ;;  %7599 = vmatprep.subr.bf16.mxu1 %v8322_v8  ;;  %v8324_v28 = vld [vmem:[%s8740_s8 + $0x178] sm:$0xff]  }
 0x45d   : > { %v5720_v1 = vadd.f32 %v5719_v19, %v5204_v56  ;;  %7607 = vmatprep.subr.bf16.mxu0 %v8324_v28  ;;  %v8327_v40 = vld [vmem:[%s8740_s8 + $0x1f8] sm:$0xff]  }
 0x45e   : > { %v5764_v52 = vcombine.low %v5543_v24, %v5578_v26  ;;  %v5765_v7 = vcombine.low %v10047_v14, %v10051_v38  ;;  %v10057_v61 = vpop.f32.mrf.mxu0  ;;  %v5071_v17 = vpop.f32.mrf.mxu1  ;;  %v10331_v38 = vld [vmem:[#allocation9_spill] sm:$0xff] }
 0x45f   : > { %v5213_v9 = vmax.f32 %v5071_v17, 0.0  ;;  %7600 = vmatpush3.bf16.msra.mxu1 %v8323_v16 }
 0x460   : > { %v10068_v49 = vrot.slane %v5764_v52, %v9604_v55  ;;  %v10070_v18 = vpop.f32.mrf.mxu0  ;;  %v7949_v15 = vpop.f32.mrf.mxu1  ;;  %7629 = vmatprep.subr.bf16.mxu1 %v8327_v40 }
 0x461   : > { %v5721_v57 = vadd.f32 %v5720_v1, %v5213_v9 }
 0x462   : > { %v5795_v46 = vcombine.low %v10065_v4, %v10068_v49  ;;  %v10079_v2 = vpop.f32.mrf.mxu0  ;;  %v5076_v44 = vpop.f32.mrf.mxu1 }
 0x463   : > { %v5222_v36 = vmax.f32 %v5076_v44, 0.0 }
 0x464   : > { %v10083_v45 = vpop.f32.mrf.mxu0  ;;  %v7952_v62 = vpop.f32.mrf.mxu1 }
 0x465   : > { %v5722_v43 = vadd.f32 %v5721_v57, %v5222_v36 }
 0x466   : > { %v10086_v54 = vpop.f32.mrf.mxu0  ;;  %v5079_v31 = vpop.f32.mrf.mxu1 }
 0x467   : > { %v5231_v41 = vmax.f32 %v5079_v31, 0.0 }
 0x468   : > { %v10089_v60 = vpop.f32.mrf.mxu0  ;;  %v7953_v51 = vpop.f32.mrf.mxu1 }
 0x469   : > { %v5723_v20 = vadd.f32 %v5722_v43, %v5231_v41 }
 0x46a   : > { %v10092_v23 = vpop.f32.mrf.mxu0  ;;  %v5084_v25 = vpop.f32.mrf.mxu1 }
 0x46b   : > { %v5240_v21 = vmax.f32 %v5084_v25, 0.0 }
 0x46c   : > { %v10094_v11 = vpop.f32.mrf.mxu0  ;;  %v7956_v0 = vpop.f32.mrf.mxu1 }
 0x46d   : > { %v5724_v30 = vadd.f32 %v5723_v20, %v5240_v21 }
 0x46e   : > { %v10097_v39 = vpop.f32.mrf.mxu0  ;;  %v5087_v3 = vpop.f32.mrf.mxu1 }
 0x46f   : > { %v5249_v42 = vmax.f32 %v5087_v3, 0.0 }
 0x470   : > { %v10100_v19 = vpop.f32.mrf.mxu0  ;;  %v7957_v58 = vpop.f32.mrf.mxu1 }
 0x471   : > { %v5725_v56 = vadd.f32 %v5724_v30, %v5249_v42 }
 0x472   : > { %v10102_v24 = vpop.f32.mrf.mxu0  ;;  %v5092_v26 = vpop.f32.mrf.mxu1 }
 0x473   : > { %v5258_v37 = vmax.f32 %v5092_v26, 0.0  ;;  %v5193_v26 = vmax.f32 %v10041_v35, 0.0  ;;  %v5211_v35 = vmax.f32 %v10057_v61, 0.0  ;;  %v5229_v61 = vmax.f32 %v10086_v54, 0.0 }
 0x474   : > { %v10104_v52 = vpop.f32.mrf.mxu0  ;;  %v7960_v1 = vpop.f32.mrf.mxu1  ;;  %v5247_v54 = vmax.f32 %v10097_v39, 0.0 }
 0x475   : > { %v5726_v17 = vadd.f32 %v5725_v56, %v5258_v37 }
 0x476   : > { %v10106_v48 = vpop.f32.mrf.mxu0  ;;  %v5095_v9 = vpop.f32.mrf.mxu1 }
 0x477   : > { %v5267_v53 = vmax.f32 %v5095_v9, 0.0  ;;  %v5184_v9 = vmax.f32 %v10037_v33, 0.0  ;;  %v5212_v33 = vmax.f32 %v10070_v18, 0.0  ;;  %v5230_v18 = vmax.f32 %v10089_v60, 0.0 }
 0x478   : > { %v10108_v15 = vpop.f32.mrf.mxu0  ;;  %v7961_v50 = vpop.f32.mrf.mxu1  ;;  %v5248_v60 = vmax.f32 %v10100_v19, 0.0  ;;  %v5265_v39 = vmax.f32 %v10106_v48, 0.0 }
 0x479   : > { %v5727_v32 = vadd.f32 %v5726_v17, %v5267_v53  ;;  %v5194_v17 = vmax.f32 %v10043_v13, 0.0  ;;  %v5202_v53 = vmax.f32 %v10049_v22, 0.0  ;;  %v5220_v22 = vmax.f32 %v10079_v2, 0.0 }
 0x47a   : > { %v10110_v5 = vpop.f32.mrf.mxu0  ;;  %v5100_v29 = vpop.f32.mrf.mxu1  ;;  %v5238_v2 = vmax.f32 %v10092_v23, 0.0  ;;  %v5256_v23 = vmax.f32 %v10102_v24, 0.0  ;;  %v5266_v19 = vmax.f32 %v10108_v15, 0.0 }
 0x47b   : > { %v5276_v10 = vmax.f32 %v5100_v29, 0.0  ;;  %v5274_v24 = vmax.f32 %v10110_v5, 0.0 }
 0x47c   : > { %v10112_v57 = vpop.f32.mrf.mxu0  ;;  %v7964_v44 = vpop.f32.mrf.mxu1 }
 0x47d   : > { %v5728_v34 = vadd.f32 %v5727_v32, %v5276_v10  ;;  %v5185_v10 = vmax.f32 %v10039_v63, 0.0  ;;  %v5203_v44 = vmax.f32 %v10053_v12, 0.0  ;;  %v5221_v12 = vmax.f32 %v10083_v45, 0.0 }
 0x47e   : > { %v10114_v36 = vpop.f32.mrf.mxu0  ;;  %v5103_v47 = vpop.f32.mrf.mxu1  ;;  %v5239_v45 = vmax.f32 %v10094_v11, 0.0  ;;  %v5257_v11 = vmax.f32 %v10104_v52, 0.0  ;;  %v5275_v52 = vmax.f32 %v10112_v57, 0.0 }
 0x47f   : > { %v5285_v62 = vmax.f32 %v5103_v47, 0.0  ;;  %v5649_v47 = vadd.f32 %v5193_v26, %v5184_v9  ;;  %v5684_v13 = vadd.f32 %v5194_v17, %v5185_v10  ;;  %v5283_v48 = vmax.f32 %v10114_v36, 0.0 }
 0x480   : > { %v10116_v6 = vpop.f32.mrf.mxu0  ;;  %v7965_v43 = vpop.f32.mrf.mxu1 }
 0x481   : > { %v5729_v31 = vadd.f32 %v5728_v34, %v5285_v62  ;;  %v5685_v63 = vadd.f32 %v5684_v13, %v5203_v44  ;;  %v5284_v15 = vmax.f32 %v10116_v6, 0.0 }
 0x482   : > { %v10118_v8 = vpop.f32.mrf.mxu0  ;;  %v5108_v41 = vpop.f32.mrf.mxu1 }
 0x483   : > { %v5294_v51 = vmax.f32 %v5108_v41, 0.0  ;;  %v5292_v5 = vmax.f32 %v10118_v8, 0.0 }
 0x484   : > { %v10120_v16 = vpop.f32.mrf.mxu0  ;;  %v7968_v20 = vpop.f32.mrf.mxu1 }
 0x485   : > { %v5730_v25 = vadd.f32 %v5729_v31, %v5294_v51  ;;  %v5650_v31 = vadd.f32 %v5649_v47, %v5202_v53  ;;  %v5293_v57 = vmax.f32 %v10120_v16, 0.0 }
 0x486   : > { %v10122_v21 = vpop.f32.mrf.mxu0  ;;  %v5111_v0 = vpop.f32.mrf.mxu1 }
 0x487   : > { %v5303_v28 = vmax.f32 %v5111_v0, 0.0  ;;  %v5651_v0 = vadd.f32 %v5650_v31, %v5211_v35  ;;  %v5301_v36 = vmax.f32 %v10122_v21, 0.0 }
 0x488   : > { %v10124_v30 = vpop.f32.mrf.mxu0  ;;  %v7969_v3 = vpop.f32.mrf.mxu1 }
 0x489   : > { %v5731_v42 = vadd.f32 %v5730_v25, %v5303_v28  ;;  %v5302_v6 = vmax.f32 %v10124_v30, 0.0 }
 0x48a   : > { %v10126_v40 = vpop.f32.mrf.mxu0  ;;  %v5116_v58 = vpop.f32.mrf.mxu1 }
 0x48b   : > { %v5312_v56 = vmax.f32 %v5116_v58, 0.0  ;;  %v5652_v58 = vadd.f32 %v5651_v0, %v5220_v22  ;;  %v5310_v8 = vmax.f32 %v10126_v40, 0.0 }
 0x48c   : > { %v10129_v37 = vpop.f32.mrf.mxu0  ;;  %v7972_v1 = vpop.f32.mrf.mxu1 }
 0x48d   : > { %v5732_v50 = vadd.f32 %v5731_v42, %v5312_v56  ;;  %v5686_v42 = vadd.f32 %v5685_v63, %v5212_v33  ;;  %v5653_v53 = vadd.f32 %v5652_v58, %v5229_v61 }
 0x48e   : > { %v10134_v32 = vpop.f32.mrf.mxu0  ;;  %v5119_v29 = vpop.f32.mrf.mxu1 }
 0x48f   : > { %v5321_v34 = vmax.f32 %v5119_v29, 0.0  ;;  %v5687_v17 = vadd.f32 %v5686_v42, %v5221_v12  ;;  %v5654_v44 = vadd.f32 %v5653_v53, %v5238_v2 }
 0x490   : > { %v10139_v62 = vpop.f32.mrf.mxu0  ;;  %v7973_v43 = vpop.f32.mrf.mxu1 }
 0x491   : > { %v5733_v41 = vadd.f32 %v5732_v50, %v5321_v34  ;;  %v5688_v10 = vadd.f32 %v5687_v17, %v5230_v18  ;;  %v5655_v33 = vadd.f32 %v5654_v44, %v5247_v54 }
 0x492   : > { %v10143_v51 = vpop.f32.mrf.mxu0  ;;  %v5124_v20 = vpop.f32.mrf.mxu1 }
 0x493   : > { %v5330_v25 = vmax.f32 %v5124_v20, 0.0  ;;  %v5689_v43 = vadd.f32 %v5688_v10, %v5239_v45  ;;  %v5656_v20 = vadd.f32 %v5655_v33, %v5256_v23  ;;  %v5328_v30 = vmax.f32 %v10143_v51, 0.0 }
 0x494   : > { %v10147_v28 = vpop.f32.mrf.mxu0  ;;  %v7976_v3 = vpop.f32.mrf.mxu1 }
 0x495   : > { %v5734_v56 = vadd.f32 %v5733_v41, %v5330_v25  ;;  %v5690_v41 = vadd.f32 %v5689_v43, %v5248_v60  ;;  %v5657_v3 = vadd.f32 %v5656_v20, %v5265_v39  ;;  %v5311_v43 = vmax.f32 %v10129_v37, 0.0 }
 0x496   : > { %v10151_v26 = vpop.f32.mrf.mxu0  ;;  %v5127_v1 = vpop.f32.mrf.mxu1 }
 0x497   : > { %v5339_v9 = vmax.f32 %v5127_v1, 0.0  ;;  %v5691_v0 = vadd.f32 %v5690_v41, %v5257_v11  ;;  %v5658_v2 = vadd.f32 %v5657_v3, %v5274_v24 }
 0x498   : > { %v10155_v50 = vpop.f32.mrf.mxu0  ;;  %v7977_v29 = vpop.f32.mrf.mxu1 }
 0x499   : > { %v5735_v34 = vadd.f32 %v5734_v56, %v5339_v9  ;;  %v5692_v58 = vadd.f32 %v5691_v0, %v5266_v19  ;;  %v5659_v53 = vadd.f32 %v5658_v2, %v5283_v48  ;;  %v5337_v0 = vmax.f32 %v10151_v26, 0.0 }
 0x49a   : > { %v10159_v47 = vpop.f32.mrf.mxu0  ;;  %v5132_v35 = vpop.f32.mrf.mxu1  ;;  %v5338_v3 = vmax.f32 %v10155_v50, 0.0 }
 0x49b   : > { %v5348_v13 = vmax.f32 %v5132_v35, 0.0  ;;  %v5693_v45 = vadd.f32 %v5692_v58, %v5275_v52  ;;  %v5660_v60 = vadd.f32 %v5659_v53, %v5292_v5 }
 0x49c   : > { %v10163_v31 = vpop.f32.mrf.mxu0  ;;  %v7980_v22 = vpop.f32.mrf.mxu1 }
 0x49d   : > { %v5736_v63 = vadd.f32 %v5735_v34, %v5348_v13  ;;  %v5694_v10 = vadd.f32 %v5693_v45, %v5284_v15  ;;  %v5661_v11 = vadd.f32 %v5660_v60, %v5301_v36  ;;  %v5319_v13 = vmax.f32 %v10134_v32, 0.0 }
 0x49e   : > { %v10167_v12 = vpop.f32.mrf.mxu0  ;;  %v5135_v25 = vpop.f32.mrf.mxu1  ;;  %v5320_v22 = vmax.f32 %v10139_v62, 0.0  ;;  %v5346_v62 = vmax.f32 %v10159_v47, 0.0  ;;  %v5347_v2 = vmax.f32 %v10163_v31, 0.0 }
 0x49f   : > { %v5357_v61 = vmax.f32 %v5135_v25, 0.0  ;;  %v5695_v35 = vadd.f32 %v5694_v10, %v5293_v57  ;;  %v5662_v41 = vadd.f32 %v5661_v11, %v5310_v8 }
 0x4a0   : > { %v10171_v42 = vpop.f32.mrf.mxu0  ;;  %v7981_v18 = vpop.f32.mrf.mxu1 }
 0x4a1   : > { %v5737_v56 = vadd.f32 %v5736_v63, %v5357_v61  ;;  %v5696_v39 = vadd.f32 %v5695_v35, %v5302_v6  ;;  %v5329_v63 = vmax.f32 %v10147_v28, 0.0  ;;  %v5663_v37 = vadd.f32 %v5662_v41, %v5319_v13 }
 0x4a2   : > { %v10175_v1 = vpop.f32.mrf.mxu0  ;;  %v5140_v17 = vpop.f32.mrf.mxu1  ;;  %v5356_v57 = vmax.f32 %v10171_v42, 0.0 }
 0x4a3   : > { %v5366_v9 = vmax.f32 %v5140_v17, 0.0  ;;  %v5697_v24 = vadd.f32 %v5696_v39, %v5311_v43  ;;  %v5664_v48 = vadd.f32 %v5663_v37, %v5328_v30  ;;  %v5364_v50 = vmax.f32 %v10175_v1, 0.0 }
 0x4a4   : > { %v10179_v54 = vpop.f32.mrf.mxu0  ;;  %v7984_v29 = vpop.f32.mrf.mxu1 }
 0x4a5   : > { %v5738_v44 = vadd.f32 %v5737_v56, %v5366_v9  ;;  %v5698_v61 = vadd.f32 %v5697_v24, %v5320_v22  ;;  %v5665_v28 = vadd.f32 %v5664_v48, %v5337_v0  ;;  %v5355_v56 = vmax.f32 %v10167_v12, 0.0 }
 0x4a6   : > { %v4983_v23 = vpop.f32.mrf.mxu0  ;;  %v5143_v34 = vpop.f32.mrf.mxu1  ;;  %v5365_v10 = vmax.f32 %v10179_v54, 0.0 }
 0x4a7   : > { %v5375_v16 = vmax.f32 %v5143_v34, 0.0  ;;  %v5699_v15 = vadd.f32 %v5698_v61, %v5329_v63  ;;  %v5666_v9 = vadd.f32 %v5665_v28, %v5346_v62  ;;  %v5373_v60 = vmax.f32 %v4983_v23, 0.0 }
 0x4a8   : > { %v4985_v21 = vpop.f32.mrf.mxu0  ;;  %v7985_v33 = vpop.f32.mrf.mxu1 }
 0x4a9   : > { %v5739_v19 = vadd.f32 %v5738_v44, %v5375_v16  ;;  %v5700_v45 = vadd.f32 %v5699_v15, %v5338_v3  ;;  %v5667_v31 = vadd.f32 %v5666_v9, %v5355_v56  ;;  %v5374_v34 = vmax.f32 %v4985_v21, 0.0 }
 0x4aa   : > { %v4989_v40 = vpop.f32.mrf.mxu0  ;;  %v5148_v20 = vpop.f32.mrf.mxu1 }
 0x4ab   : > { %v5384_v25 = vmax.f32 %v5148_v20, 0.0  ;;  %v5701_v29 = vadd.f32 %v5700_v45, %v5347_v2  ;;  %v5668_v35 = vadd.f32 %v5667_v31, %v5364_v50  ;;  %v5382_v43 = vmax.f32 %v4989_v40, 0.0 }
 0x4ac   : > { %v4991_v52 = vpop.f32.mrf.mxu0  ;;  %v7988_v32 = vpop.f32.mrf.mxu1 }
 0x4ad   : > { %v5740_v18 = vadd.f32 %v5739_v19, %v5384_v25  ;;  %v5702_v12 = vadd.f32 %v5701_v29, %v5356_v57  ;;  %v5383_v1 = vmax.f32 %v4991_v52, 0.0  ;;  %v5669_v39 = vadd.f32 %v5668_v35, %v5373_v60 }
 0x4ae   : > { %v4993_v51 = vpop.f32.mrf.mxu0  ;;  %v5151_v58 = vpop.f32.mrf.mxu1 }
 0x4af   : > { %v5393_v5 = vmax.f32 %v5151_v58, 0.0  ;;  %v5703_v13 = vadd.f32 %v5702_v12, %v5365_v10  ;;  %v5391_v22 = vmax.f32 %v4993_v51, 0.0  ;;  %v5670_v20 = vadd.f32 %v5669_v39, %v5382_v43 }
 0x4b0   : > { %v4995_v17 = vpop.f32.mrf.mxu0  ;;  %v7989_v26 = vpop.f32.mrf.mxu1 }
 0x4b1   : > { %v5741_v53 = vadd.f32 %v5740_v18, %v5393_v5  ;;  %v5704_v54 = vadd.f32 %v5703_v13, %v5374_v34  ;;  %v5392_v19 = vmax.f32 %v4995_v17, 0.0  ;;  %v5671_v40 = vadd.f32 %v5670_v20, %v5391_v22 }
 0x4b2   : > { %v4999_v47 = vpop.f32.mrf.mxu0  ;;  %v5156_v36 = vpop.f32.mrf.mxu1 }
 0x4b3   : > { %v5402_v6 = vmax.f32 %v5156_v36, 0.0  ;;  %v5400_v23 = vmax.f32 %v4999_v47, 0.0  ;;  %v5705_v21 = vadd.f32 %v5704_v54, %v5383_v1 }
 0x4b4   : > { %v5001_v8 = vpop.f32.mrf.mxu0  ;;  %v7992_v44 = vpop.f32.mrf.mxu1 }
 0x4b5   : > { %v5742_v16 = vadd.f32 %v5741_v53, %v5402_v6  ;;  %v5401_v0 = vmax.f32 %v5001_v8, 0.0  ;;  %v5706_v52 = vadd.f32 %v5705_v21, %v5392_v19  ;;  %v5672_v48 = vadd.f32 %v5671_v40, %v5400_v23 }
 0x4b6   : > { %v5003_v42 = vpop.f32.mrf.mxu0  ;;  %v5159_v11 = vpop.f32.mrf.mxu1 }
 0x4b7   : > { %v5411_v33 = vmax.f32 %v5159_v11, 0.0  ;;  %v5409_v32 = vmax.f32 %v5003_v42, 0.0  ;;  %v5707_v5 = vadd.f32 %v5706_v52, %v5401_v0 }
 0x4b8   : > { %v5005_v41 = vpop.f32.mrf.mxu0  ;;  %v7993_v30 = vpop.f32.mrf.mxu1 }
 0x4b9   : > { %v5743_v24 = vadd.f32 %v5742_v16, %v5411_v33  ;;  %v5410_v62 = vmax.f32 %v5005_v41, 0.0  ;;  %v5673_v28 = vadd.f32 %v5672_v48, %v5409_v32 }
 0x4ba   : > { %v5009_v63 = vpop.f32.mrf.mxu0  ;;  %v5164_v25 = vpop.f32.mrf.mxu1 }
 0x4bb   : > { %v5420_v37 = vmax.f32 %v5164_v25, 0.0  ;;  %v5418_v18 = vmax.f32 %v5009_v63, 0.0  ;;  %v5708_v57 = vadd.f32 %v5707_v5, %v5410_v62 }
 0x4bc   : > { %v5011_v61 = vpop.f32.mrf.mxu0  ;;  %v7996_v3 = vpop.f32.mrf.mxu1 }
 0x4bd   : > { %v5744_v51 = vadd.f32 %v5743_v24, %v5420_v37  ;;  %v5419_v56 = vmax.f32 %v5011_v61, 0.0  ;;  %v5674_v9 = vadd.f32 %v5673_v28, %v5418_v18  ;;  %v8483_v28 = vmov 1983009808  }
 0x4be   : > { %v5013_v58 = vpop.f32.mrf.mxu0  ;;  %v5167_v15 = vpop.f32.mrf.mxu1 }
 0x4bf   : > { %v5429_v2 = vmax.f32 %v5167_v15, 0.0  ;;  %v5427_v17 = vmax.f32 %v5013_v58, 0.0  ;;  %v5709_v6 = vadd.f32 %v5708_v57, %v5419_v56  ;;  %v5841_v56 = vunpack.c.l.s4 %v8483_v28  ;;  %v8365_v28 = vld [vmem:[%s8740_s8 + $0x200] sm:$0xff]  }
 0x4c0   : > { %v5015_v26 = vpop.f32.mrf.mxu0  ;;  %v7997_v45 = vpop.f32.mrf.mxu1 }
 0x4c1   : > { %v5745_v50 = vadd.f32 %v5744_v51, %v5429_v2  ;;  %v5428_v53 = vmax.f32 %v5015_v26, 0.0  ;;  %v5675_v31 = vadd.f32 %v5674_v9, %v5427_v17  ;;  %v5787_v51 = vrot.slane %v5765_v7, %v9604_v55 }
 0x4c2   : > { %v5019_v47 = vpop.f32.mrf.mxu0  ;;  %v5172_v36 = vpop.f32.mrf.mxu1  ;;  %v5803_v2 = vrot.slane %v5795_v46, %v9604_v55  ;;  %v5842_v14 = vunpack.c.0.s8 %v5841_v56 }
 0x4c3   : > { %v5436_v29 = vmax.f32 %v5019_v47, 0.0  ;;  %v5438_v10 = vmax.f32 %v5172_v36, 0.0  ;;  %v5710_v35 = vadd.f32 %v5709_v6, %v5428_v53  ;;  %v8325_v47 = vld [vmem:[%s8740_s8 + $0x138] sm:$0xff]  }
 0x4c4   : > { %v5021_v60 = vpop.f32.mrf.mxu0  ;;  %v8000_v8 = vpop.f32.mrf.mxu1  ;;  %v5845_v7 = vsub.s32 %v5842_v14, %v10331_v38 }
 0x4c5   : > { %v5676_v44 = vsel %vm3366_vm7, %v5436_v29, 0.0  ;;  %v5746_v12 = vsel %vm3366_vm7, %v5438_v10, 0.0  ;;  %v5437_v34 = vmax.f32 %v5021_v60, 0.0  ;;  %v8329_v60 = vld [vmem:[%s8740_s8 + $0x170] sm:$0xff]  }
 0x4c6   : > { %v5677_v43 = vadd.f32 %v5676_v44, %v5675_v31  ;;  %v5747_v16 = vadd.f32 %v5746_v12, %v5745_v50  ;;  %v5023_v42 = vpop.f32.mrf.mxu0  ;;  %v5175_v11 = vpop.f32.mrf.mxu1  ;;  %v8328_v31 = vld [vmem:[%s8740_s8 + $0x1b8] sm:$0xff]   ;;  %v8332_v12 = vld [vmem:[%s8740_s8 + $0x1f0] sm:$0xff]  }
 0x4c7   : > { %v5711_v13 = vsel %vm3366_vm7, %v5437_v34, 0.0  ;;  %v8331_v34 = vld [vmem:[%s8740_s8 + $0x130] sm:$0xff]   ;;  %v8336_v42 = vld [vmem:[%s8740_s8 + $0x1e8] sm:$0xff]  }
 0x4c8   : > { %v5678_v1 = vrot.slane %v5677_v43, 4  ;;  %v5748_v33 = vrot.slane %v5747_v16, 4  ;;  %v5712_v39 = vadd.f32 %v5711_v13, %v5710_v35  ;;  %v5024_v22 = vpop.f32.mrf.mxu0  ;;  %v8001_v41 = vpop.f32.mrf.mxu1  ;;  %v8335_v11 = vld [vmem:[%s8740_s8 + $0x128] sm:$0xff]   ;;  %v8338_v13 = vld [vmem:[%s8740_s8 + $0x160] sm:$0xff]  }
 0x4c9   : > { %v8342_v22 = vld [vmem:[%s8740_s8 + $0x158] sm:$0xff]   ;;  %v8341_v41 = vld [vmem:[%s8740_s8 + $0x1a0] sm:$0xff]  }
 0x4ca   : > { %v5679_v30 = vadd.f32 %v5678_v1, %v5677_v43  ;;  %v5749_v54 = vadd.f32 %v5748_v33, %v5747_v16  ;;  %v5713_v19 = vrot.slane %v5712_v39, 4  ;;  %v8334_v43 = vld [vmem:[%s8740_s8 + $0x168] sm:$0xff]   ;;  %v8333_v16 = vld [vmem:[%s8740_s8 + $0x1b0] sm:$0xff]   ;;  %v8340_v33 = vld [vmem:[%s8740_s8 + $0x1e0] sm:$0xff]  }
 0x4cb   : > { %v8337_v1 = vld [vmem:[%s8740_s8 + $0x1a8] sm:$0xff]  }
 0x4cc   : > { %v5680_v20 = vrot.slane %v5679_v30, 2  ;;  %v5750_v23 = vrot.slane %v5749_v54, 2  ;;  %v5714_v24 = vadd.f32 %v5713_v19, %v5712_v39  ;;  %v8339_v39 = vld [vmem:[%s8740_s8 + $0x120] sm:$0xff]   ;;  %v8346_v19 = vld [vmem:[%s8740_s8 + $0x150] sm:$0xff]  }
 0x4ce   : > { %v5681_v63 = vadd.f32 %v5680_v20, %v5679_v30  ;;  %v5751_v25 = vadd.f32 %v5750_v23, %v5749_v54  ;;  %v5715_v21 = vrot.slane %v5714_v24, 2  ;;  %v8344_v30 = vld [vmem:[%s8740_s8 + $0x1d8] sm:$0xff]   ;;  %v8348_v23 = vld [vmem:[%s8740_s8 + $0x1d0] sm:$0xff]  }
 0x4cf   : > { %v8343_v54 = vld [vmem:[%s8740_s8 + $0x118] sm:$0xff]  }
 0x4d0   : > { %v5682_v37 = vrot.slane %v5681_v63, 1  ;;  %v5752_v40 = vrot.slane %v5751_v25, 1  ;;  %v5716_v0 = vadd.f32 %v5715_v21, %v5714_v24  ;;  %v8345_v20 = vld [vmem:[%s8740_s8 + $0x198] sm:$0xff]   ;;  %v8347_v24 = vld [vmem:[%s8740_s8 + $0x110] sm:$0xff]   ;;  %v8352_v21 = vld [vmem:[%s8740_s8 + $0x1c8] sm:$0xff]  }
 0x4d2   : > { %v5753_v32 = vadd.f32 %v5752_v40, %v5751_v25  ;;  %v5717_v61 = vrot.slane %v5716_v0, 1  ;;  %v5683_v3 = vadd.f32 %v5682_v37, %v5681_v63  ;;  %v8350_v63 = vld [vmem:[%s8740_s8 + $0x148] sm:$0xff]   ;;  %v8349_v25 = vld [vmem:[%s8740_s8 + $0x190] sm:$0xff]   ;;  %v8354_v40 = vld [vmem:[%s8740_s8 + $0x140] sm:$0xff]  }
 0x4d3   : > { %v8351_v37 = vld [vmem:[%s8740_s8 + $0x108] sm:$0xff]  }
 0x4d4   : > { %v5818_v52 = vrot.slane %v5753_v32, %v9604_v55  ;;  %v5718_v48 = vadd.f32 %v5717_v61, %v5716_v0  ;;  %v8353_v0 = vld [vmem:[%s8740_s8 + $0x188] sm:$0xff]   ;;  %v8356_v32 = vld [vmem:[%s8740_s8 + $0x1c0] sm:$0xff]  }
 0x4d5   : > { %v8355_v61 = vld [vmem:[%s8740_s8 + $0x100] sm:$0xff]  }
 0x4d6   : > { %v5825_v62 = vrot.slane %v5818_v52, %v9604_v55  ;;  %v5766_v18 = vcombine.low %v5683_v3, %v5718_v48  ;;  %v8357_v3 = vld [vmem:[%s8740_s8 + $0x180] sm:$0xff]   ;;  %v8358_v52 = vld [vmem:[%s8740_s8 + $0x238] sm:$0xff]  }
 0x4d8   : > { %5831 = vst.msk [vmem:[#allocation3 + $0x11] ss:$2 sm:$0x1] %vm9995_vm8, %v5825_v62  ;;  %v5794_v58 = vrot.slane %v5766_v18, %v9604_v55  ;;  %v8359_v18 = vld [vmem:[%s8740_s8 + $0x230] sm:$0xff]  }
 0x4da   : > { %v5796_v15 = vcombine.low %v5787_v51, %v5794_v58  ;;  %v8360_v51 = vld [vmem:[%s8740_s8 + $0x228] sm:$0xff]   ;;  %v8361_v58 = vld [vmem:[%s8740_s8 + $0x220] sm:$0xff]  }
 0x4dc   : > { %v5810_v5 = vrot.slane %v5796_v15, %v9604_v55  ;;  %v8362_v15 = vld [vmem:[%s8740_s8 + $0x218] sm:$0xff]  }
 0x4de   : > { %v5811_v17 = vcombine.low %v5803_v2, %v5810_v5  ;;  %v8363_v2 = vld [vmem:[%s8740_s8 + $0x210] sm:$0xff]   ;;  %v8364_v5 = vld [vmem:[%s8740_s8 + $0x208] sm:$0xff]  }
 0x4df   : > { %v7152_v56 = vld.sshfl [vmem:[#allocation3 + $0x10] sm:$0x3 pattern:$0x76325410] }
 0x4e0   : > { %5829 = vst [vmem:[#allocation3 + $0x1] ss:$2 sm:$0xff] %v5811_v17  ;;  %v5897_v17 = vpack.c.bf16 %v7152_v56, %v7152_v56 }
 0x4e7   : > { %v5833_v59 = vld [vmem:[#allocation3] sm:$0xff]  ;;  %v5834_v26 = vld [vmem:[#allocation3 + $0x8] sm:$0xff] }
 0x4e8   : > { %v5846_v45 = vrot.slane %v5833_v59, %v5845_v7  ;;  %v5839_v57 = vcombine.high %v5833_v59, %v5833_v59  ;;  %v10214_v9 = vrot.slane %v5834_v26, %v5845_v7  ;;  %v5856_v4 = vcombine.high %v5834_v26, %v5834_v26 }
 0x4ea   : > { %v5854_v49 = vcombine.high %v5846_v45, %v5846_v45  ;;  %v5853_v55 = vrot.slane %v5839_v57, %v5845_v7  ;;  %v5871_v46 = vcombine.high %v10214_v9, %v10214_v9  ;;  %v10218_v50 = vrot.slane %v5856_v4, %v5845_v7 }
 0x4eb   : > { %v5889_v29 = vpack.c.bf16 %v5846_v45, %v5846_v45  ;;  %v5893_v48 = vpack.c.bf16 %v10214_v9, %v10214_v9 }
 0x4ec   : > { %v5890_v53 = vpack.c.bf16 %v5854_v49, %v5854_v49  ;;  %v5855_v36 = vcombine.high %v5853_v55, %v5853_v55  ;;  %v5872_v10 = vcombine.high %v10218_v50, %v10218_v50  ;;  %v5891_v8 = vpack.c.bf16 %v5853_v55, %v5853_v55 }
 0x4ed   : > { %v5894_v44 = vpack.c.bf16 %v5871_v46, %v5871_v46  ;;  %v5895_v62 = vpack.c.bf16 %v10218_v50, %v10218_v50 }
 0x4ee   : > { %6506 = vmatprep.mubr.bf16.mxu0 %v5890_v53  ;;  %v5892_v6 = vpack.c.bf16 %v5855_v36, %v5855_v36  ;;  %v5896_v35 = vpack.c.bf16 %v5872_v10, %v5872_v10 }
 0x4ef   : > { %6507 = vmatmul.mubr.bf16.vlgmr.msra.gmra.mxu0 %v5889_v29 }
 0x4f0   : > { %7608 = vmatpush3.bf16.msra.mxu0 %v8325_v47  ;;  %6546 = vmatprep.mubr.bf16.mxu1 %v5892_v6 }
 0x4f1   : > { %6586 = vmatprep.mubr.bf16.mxu0 %v5894_v44  ;;  %6547 = vmatmul.mubr.bf16.vlgmr.msra.gmra.mxu1 %v5891_v8  ;;  %v5832_v44 = vld [vmem:[#allocation4] sm:$0x3] }
 0x4f2   : > { %7630 = vmatpush3.bf16.msra.mxu1 %v8328_v31  ;;  %7609 = vmatprep.subr.bf16.mxu0 %v8329_v60 }
 0x4f3   : > { %6626 = vmatprep.mubr.bf16.mxu1 %v5896_v35  ;;  %7631 = vmatprep.subr.bf16.mxu1 %v8332_v12 }
 0x4f4   : > { %7610 = vmatpush3.bf16.msra.mxu0 %v8331_v34 }
 0x4f5   : > { %7611 = vmatprep.subr.bf16.mxu0 %v8334_v43 }
 0x4f6   : > { %7632 = vmatpush3.bf16.msra.mxu1 %v8333_v16 }
 0x4f7   : > { %7633 = vmatprep.subr.bf16.mxu1 %v8336_v42 }
 0x4f8   : > { %7612 = vmatpush3.bf16.msra.mxu0 %v8335_v11 }
 0x4f9   : > { %7613 = vmatprep.subr.bf16.mxu0 %v8338_v13 }
 0x4fa   : > { %7634 = vmatpush3.bf16.msra.mxu1 %v8337_v1 }
 0x4fb   : > { %7635 = vmatprep.subr.bf16.mxu1 %v8340_v33 }
 0x4fc   : > { %7614 = vmatpush3.bf16.msra.mxu0 %v8339_v39 }
 0x4fd   : > { %7615 = vmatprep.subr.bf16.mxu0 %v8342_v22 }
 0x4fe   : > { %7636 = vmatpush3.bf16.msra.mxu1 %v8341_v41 }
 0x4ff   : > { %7637 = vmatprep.subr.bf16.mxu1 %v8344_v30 }
 0x500   : > { %7616 = vmatpush3.bf16.msra.mxu0 %v8343_v54 }
 0x501   : > { %7617 = vmatprep.subr.bf16.mxu0 %v8346_v19 }
 0x502   : > { %7638 = vmatpush3.bf16.msra.mxu1 %v8345_v20 }
 0x503   : > { %7639 = vmatprep.subr.bf16.mxu1 %v8348_v23 }
 0x504   : > { %7618 = vmatpush3.bf16.msra.mxu0 %v8347_v24 }
 0x505   : > { %7619 = vmatprep.subr.bf16.mxu0 %v8350_v63 }
 0x506   : > { %7640 = vmatpush3.bf16.msra.mxu1 %v8349_v25 }
 0x507   : > { %7641 = vmatprep.subr.bf16.mxu1 %v8352_v21 }
 0x508   : > { %7620 = vmatpush3.bf16.msra.mxu0 %v8351_v37 }
 0x509   : > { %7621 = vmatprep.subr.bf16.mxu0 %v8354_v40 }
 0x50a   : > { %7642 = vmatpush3.bf16.msra.mxu1 %v8353_v0 }
 0x50b   : > { %7643 = vmatprep.subr.bf16.mxu1 %v8356_v32 }
 0x50c   : > { %7622 = vmatpush3.bf16.msra.mxu0 %v8355_v61 }
 0x50d   : > { %8002 = vmatprep.subr.bf16.mxu0 %v10326_v27 }
 0x50e   : > { %7644 = vmatpush3.bf16.msra.mxu1 %v8357_v3 }
 0x50f   : > { %6587 = vmatmul.mubr.bf16.vlgmr.msra.gmra.mxu0 %v5893_v48 }
 0x510   : > { %8003 = vmatpush3.bf16.msra.mxu0 %v8358_v52  ;;  %8018 = vmatprep.mubr.msk.bf16.mxu0 %vm8481_vm6, %v10326_v27 }
 0x511   : > { %6627 = vmatmul.mubr.bf16.vlgmr.msra.gmra.mxu1 %v5895_v62  ;;  %8004 = vmatprep.subr.bf16.mxu0 %v10326_v27 }
 0x514   : > { %8005 = vmatpush3.bf16.msra.mxu0 %v8359_v18 }
 0x515   : > { %8006 = vmatprep.subr.bf16.mxu0 %v10326_v27 }
 0x518   : > { %8007 = vmatpush3.bf16.msra.mxu0 %v8360_v51 }
 0x519   : > { %8008 = vmatprep.subr.bf16.mxu0 %v10326_v27 }
 0x51c   : > { %8009 = vmatpush3.bf16.msra.mxu0 %v8361_v58 }
 0x51d   : > { %8010 = vmatprep.subr.bf16.mxu0 %v10326_v27 }
 0x520   : > { %8011 = vmatpush3.bf16.msra.mxu0 %v8362_v15 }
 0x521   : > { %8012 = vmatprep.subr.bf16.mxu0 %v10326_v27 }
 0x524   : > { %8013 = vmatpush3.bf16.msra.mxu0 %v8363_v2 }
 0x525   : > { %8014 = vmatprep.subr.bf16.mxu0 %v10326_v27 }
 0x528   : > { %8015 = vmatpush3.bf16.msra.mxu0 %v8364_v5 }
 0x529   : > { %8016 = vmatprep.subr.bf16.mxu0 %v10326_v27 }
 0x52c   : > { %8017 = vmatpush3.bf16.msra.mxu0 %v8365_v28 }
 0x52f   : > { %8019 = vmatmul.mubr.bf16.vlgmr.msra.gmra.mxu0 %v5897_v17 }
 0x5af   : > { %v7579_v14 = vpop.f32.mrf.mxu0 }
 0x5b1   : > { %v7580_v38 = vpop.f32.mrf.mxu0  ;;  %v7601_v7 = vpop.f32.mrf.mxu1 }
 0x5b2   : > { %v7581_v29 = vadd.f32 %v7580_v38, %v7579_v14 }
 0x5b3   : > { %v7582_v59 = vpop.f32.mrf.mxu0  ;;  %v7602_v26 = vpop.f32.mrf.mxu1 }
 0x5b4   : > { %v7603_v36 = vadd.f32 %v7602_v26, %v7601_v7 }
 0x5b5   : > { %v7583_v45 = vpop.f32.mrf.mxu0  ;;  %v7604_v57 = vpop.f32.mrf.mxu1 }
 0x5b6   : > { %v6549_v6 = vadd.f32 %v7603_v36, %v7581_v29 }
 0x5b7   : > { %v7605_v9 = vpop.f32.mrf.mxu1 }
 0x5cf   : > { %v7623_v4 = vpop.f32.mrf.mxu0 }
 0x5d1   : > { %v7624_v49 = vpop.f32.mrf.mxu0  ;;  %v7645_v55 = vpop.f32.mrf.mxu1 }
 0x5d2   : > { %v7625_v10 = vadd.f32 %v7624_v49, %v7623_v4 }
 0x5d3   : > { %v7626_v46 = vpop.f32.mrf.mxu0  ;;  %v7646_v50 = vpop.f32.mrf.mxu1 }
 0x5d4   : > { %v6589_v31 = vadd.f32 %v7625_v10, %v6549_v6  ;;  %v7647_v60 = vadd.f32 %v7646_v50, %v7645_v55 }
 0x5d5   : > { %v7627_v53 = vpop.f32.mrf.mxu0  ;;  %v7648_v47 = vpop.f32.mrf.mxu1 }
 0x5d6   : > { %v6629_v8 = vadd.f32 %v7647_v60, %v6589_v31 }
 0x5d7   : > { %v7649_v27 = vpop.f32.mrf.mxu1 }
 0x5ef   : > { %v6668_v12 = vpop.f32.mrf.mxu0 }
 0x5f0   : > { %v6669_v34 = vadd.f32 %v6668_v12, %v6629_v8 }
 0x5f1   : > { %v8020_v35 = vpop.f32.mrf.mxu0  ;;  %6679 = sbr.rel (%p7225_p11) target bundleno = 1537 (0x601), region = 82 }
 0x5f2   : > { %v6674_v43 = vadd.f32 %v6669_v34, %v5832_v44 }
 0x5f3   : > { %v6671_v16 = vpop.f32.mrf.mxu0 }
 0x5f4   : > { %6675 = vst [vmem:[#allocation4] sm:$0x3] %v6674_v43 }
 0x5f5   : > { %v8021_v42 = vpop.f32.mrf.mxu0 }
 0x5f6   : > { %v7226_v13 = vld [vmem:[%s10316_s6] ss:$0 sm:$0xff] }
 0x5fb   : > { %v6680_v11 = vld [vmem:[#allocation4] sm:$0x3] }
 0x5fc   : > { %v6681_v1 = vmul.f32 0.0044444446, %v6680_v11 }
 0x5fe   : > { %v6689_v33 = vadd.f32 %v7226_v13, %v6681_v1 }
 0x600   : > { %6690 = vst [vmem:[#allocation6] sm:$0x3] %v6689_v33 }
 0x601 PF: > { %p10280_p12 = scmp.eq.s32.totalorder %s6787_s29, 3  ;;  %s8484_s15 = smov [#allocation6]  }
 0x602   : > { %s6700_s16 = sshll.u32 %s8484_s15, 4  ;;  %s6701_s16 = int_to_ptr.vmem [resolvable:$true] %s6700_s16 }
 0x603   : > { %s8409_s26 = scalar_lea.vmem %s6701_s16, 32  ;;  %p8416_p2 = scmp.lt.s32.totalorder %s6701_s16, %s6701_s16 }
 0x604   : > { %p8410_p13 = scmp.ne.s32.totalorder %s6701_s16, %s8409_s26  ;;  %p8417_p3 = scmp.lt.s32.totalorder %s8409_s26, %s8409_s26 }
 0x606   : > { %p8411_p0 = pnand %p8410_p13, %p10280_p12  ;;  %p8418_p4 = por %p8417_p3, %p8416_p2 }
 0x608   : > { %p8412_p1 = pneg %p8411_p0 }
 0x60a   : > { %p8419_p5 = pnand %p8418_p4, %p8412_p1 }
 0x60c   : > { %8422 = shalt.err (!%p8419_p5)
}
 0x60d   : > { %8025 = dma.vmem_to_hbm [thread:$0]  (%p10280_p12), %s6701_s16, 32, %s10317_s7, [#allocation7]  }
 0x60e   : > { %8454 = dma.done.wait (%p10280_p12), [#allocation7], 32  }
 0x60f   : > { %8456 = vsyncadd (%p10280_p12), [#allocation7], 4294967264 }
 0x610 PF: > { %s18_s28 = sadd.s32 1, %s8475_s28   ;;  %s10333_s24 = smov %s8463_s25 }
 0x611   : > { %p15_p6 = scmp.ge.s32.totalorder %s18_s28, 6   ;;  %s10334_s25 = smov %s8561_s10 }
 0x612   : > { %s10335_s26 = smov %s8471_s27  ;;  %s10336_s27 = smov %s10338_s30 }
 0x613   :  { %17 = sbr.rel (!%p15_p6) target bundleno = 3 (0x3), region = 133 }
 0x618   :  { %6713 = vsyncpa [#allocation7], 1 }
 0x619   :  { %6715 = vsyncpa [#allocation7 + $0x1], 1 }

</bundles_post_ra>
